<compile_context>
chip_gen: v5e
topology: v5e:2x2
jax: 0.10.0
libtpu: 0.0.40
codegen_flags: <defaults>
</compile_context>

<pallas_src>
import functools

import jax
import jax.numpy as jnp
from jax import lax
from jax.experimental import pallas as pl
from jax.experimental.pallas import tpu as pltpu

INPUT_SIZE = 14
HIDDEN_SIZE = 64
NUM_LAYERS = 2      # hard-wired as 2 stacked LSTM layers in the kernel
OUTPUT_SIZE = 10
HP = 128            # padded hidden / per-gate width (lane-aligned)


def _lstm_kernel(xg1_ref, w1_ref, wih2_ref, whh2_ref, b2_ref, hs_ref,
                 h1_ref, c1_ref, h2_ref, c2_ref, *, unroll):
    """2-layer LSTM recurrence over one time-chunk.

    xg1_ref:  (Tt, Bp, 4*Hp) f32   precomputed layer-1 gate pre-activations
                                   (x @ W_ih_l0^T + b_ih_l0 + b_hh_l0), padded.
    w1_ref:   (Hp, 4*Hp)   bf16    padded W_hh_l0 (transposed).
    wih2_ref: (Hp, 4*Hp)   bf16    padded W_ih_l1 (transposed).
    whh2_ref: (Hp, 4*Hp)   bf16    padded W_hh_l1 (transposed).
    b2_ref:   (1, 4*Hp)    f32     padded (b_ih_l1 + b_hh_l1).
    hs_ref:   (Tt, Bp, Hp) f32     output: layer-2 hidden state per step.
    h1/c1/h2/c2_ref: (Bp, Hp) f32  carry, persistent VMEM scratch across chunks.
    """
    Tt = xg1_ref.shape[0]
    Bp = xg1_ref.shape[1]
    Hp = hs_ref.shape[2]

    # Zero the carry on the first time-chunk only.
    @pl.when(pl.program_id(0) == 0)
    def _():
        h1_ref[...] = jnp.zeros_like(h1_ref)
        c1_ref[...] = jnp.zeros_like(c1_ref)
        h2_ref[...] = jnp.zeros_like(h2_ref)
        c2_ref[...] = jnp.zeros_like(c2_ref)

    # Loop-invariant loads / broadcasts (hoisted out of the recurrence).
    w1 = w1_ref[...]                                        # (Hp, 4*Hp) bf16
    wih2 = wih2_ref[...]                                    # (Hp, 4*Hp) bf16
    whh2 = whh2_ref[...]                                    # (Hp, 4*Hp) bf16
    b2 = jnp.broadcast_to(b2_ref[...], (Bp, 4 * Hp))        # (Bp, 4*Hp) f32

    def gates(g):
        # PyTorch gate order: i, f, g, o ; each gate occupies an aligned
        # 128-lane group thanks to the padded layout.
        i = jax.nn.sigmoid(g[:, 0 * Hp:1 * Hp])
        f = jax.nn.sigmoid(g[:, 1 * Hp:2 * Hp])
        gg = jnp.tanh(g[:, 2 * Hp:3 * Hp])
        o = jax.nn.sigmoid(g[:, 3 * Hp:4 * Hp])
        return i, f, gg, o

    def step(t, carry):
        h1, c1, h2, c2 = carry                               # f32 (Bp, Hp)

        # ---- LSTM layer 1: input projection precomputed; only the recurrent
        #      bf16 matmul (f32 accumulate) is on the critical path. ----
        g1 = xg1_ref[t] + jnp.dot(h1.astype(jnp.bfloat16), w1,
                                  preferred_element_type=jnp.float32)
        i1, f1, gg1, o1 = gates(g1)
        c1 = f1 * c1 + i1 * gg1
        h1 = o1 * jnp.tanh(c1)

        # ---- LSTM layer 2: two K=128 bf16 dots (no per-step concat). ----
        g2 = (jnp.dot(h1.astype(jnp.bfloat16), wih2,
                      preferred_element_type=jnp.float32)
              + jnp.dot(h2.astype(jnp.bfloat16), whh2,
                        preferred_element_type=jnp.float32)
              + b2)
        i2, f2, gg2, o2 = gates(g2)
        c2 = f2 * c2 + i2 * gg2
        h2 = o2 * jnp.tanh(c2)

        hs_ref[t] = h2                                       # full (8,128) tile store
        return (h1, c1, h2, c2)

    carry0 = (h1_ref[...], c1_ref[...], h2_ref[...], c2_ref[...])
    h1, c1, h2, c2 = lax.fori_loop(0, Tt, step, carry0, unroll=unroll)

    # Persist the carry for the next time-chunk.
    h1_ref[...] = h1
    c1_ref[...] = c1
    h2_ref[...] = h2
    c2_ref[...] = c2


def _pad_gate_cols(w_t, H, Hp):
    """(in_dim, 4H) gate-major columns [i|f|g|o] -> (in_dim, 4*Hp), zero-padded."""
    in_dim = w_t.shape[0]
    w4 = w_t.reshape(in_dim, 4, H)
    w4 = jnp.pad(w4, ((0, 0), (0, 0), (0, Hp - H)))
    return w4.reshape(in_dim, 4 * Hp)


def _pad_gate_vec(b, H, Hp):
    """(4H,) gate-major bias [i|f|g|o] -> (4*Hp,), zero-padded per gate."""
    return jnp.pad(b.reshape(4, H), ((0, 0), (0, Hp - H))).reshape(4 * Hp)


def _pad_rows(w, rows_to):
    return jnp.pad(w, ((0, rows_to - w.shape[0]), (0, 0)))


def lstm_timeseries_forward(x, params):
    """x: [B, T, INPUT_SIZE] float32 -> [B, T, OUTPUT_SIZE] float32."""
    B, T, I = x.shape
    H = HIDDEN_SIZE
    Hp = HP

    # Pad batch to the f32 sublane tile (8) so per-step loads/stores are
    # full unmasked (8,128) tiles.
    Bp = max(8, ((B + 7) // 8) * 8)

    # Chunk the time axis over the grid so VMEM stays bounded and the xg1 DMA
    # double-buffers against the recurrence (relevant for long sequences; the
    # small test below uses a single chunk).
    if T <= 128:
        Tt = T
    else:
        Tt = 128
    Tp = ((T + Tt - 1) // Tt) * Tt
    n_chunks = Tp // Tt
    unroll = True if Tt <= 16 else 4

    x_tbi = jnp.transpose(x, (1, 0, 2)).astype(jnp.float32)          # (T, B, I)
    x_tbi = jnp.pad(x_tbi, ((0, Tp - T), (0, Bp - B), (0, 0)))       # (Tp, Bp, I)

    # --- Hoisted layer-1 input projection, built directly at padded width ---
    wih1 = _pad_gate_cols(params["w_ih_l0"].T, H, Hp)                 # (I, 4*Hp)
    b1 = _pad_gate_vec(params["b_ih_l0"] + params["b_hh_l0"], H, Hp)  # (4*Hp,)
    xg1 = jnp.einsum("tbi,ij->tbj", x_tbi, wih1) + b1                 # (Tp, Bp, 4*Hp)

    # --- Padded recurrent weights (bf16 for the MXU; zero-padded lanes keep
    #     the padded halves of h and c exactly 0 through the recurrence). ---
    w1 = _pad_rows(_pad_gate_cols(params["w_hh_l0"].T, H, Hp), Hp)
    wih2 = _pad_rows(_pad_gate_cols(params["w_ih_l1"].T, H, Hp), Hp)
    whh2 = _pad_rows(_pad_gate_cols(params["w_hh_l1"].T, H, Hp), Hp)
    w1 = w1.astype(jnp.bfloat16)                                      # (Hp, 4*Hp)
    wih2 = wih2.astype(jnp.bfloat16)                                  # (Hp, 4*Hp)
    whh2 = whh2.astype(jnp.bfloat16)                                  # (Hp, 4*Hp)

    b2 = _pad_gate_vec(params["b_ih_l1"] + params["b_hh_l1"], H, Hp)
    b2 = b2.reshape(1, 4 * Hp)                                        # (1, 4*Hp) f32

    kernel = functools.partial(_lstm_kernel, unroll=unroll)
    hs = pl.pallas_call(
        kernel,
        out_shape=jax.ShapeDtypeStruct((Tp, Bp, Hp), jnp.float32),
        grid_spec=pltpu.PrefetchScalarGridSpec(
            num_scalar_prefetch=0,
            grid=(n_chunks,),
            in_specs=[
                pl.BlockSpec((Tt, Bp, 4 * Hp), lambda t: (t, 0, 0)),  # layer-1 gates
                pl.BlockSpec((Hp, 4 * Hp), lambda t: (0, 0)),         # W_hh_l0
                pl.BlockSpec((Hp, 4 * Hp), lambda t: (0, 0)),         # W_ih_l1
                pl.BlockSpec((Hp, 4 * Hp), lambda t: (0, 0)),         # W_hh_l1
                pl.BlockSpec((1, 4 * Hp), lambda t: (0, 0)),          # layer-2 bias
            ],
            out_specs=pl.BlockSpec((Tt, Bp, Hp), lambda t: (t, 0, 0)),
            scratch_shapes=[
                pltpu.VMEM((Bp, Hp), jnp.float32),   # h1
                pltpu.VMEM((Bp, Hp), jnp.float32),   # c1
                pltpu.VMEM((Bp, Hp), jnp.float32),   # h2
                pltpu.VMEM((Bp, Hp), jnp.float32),   # c2
            ],
        ),
        compiler_params=pltpu.CompilerParams(
            dimension_semantics=("arbitrary",),      # recurrence: sequential
        ),
    )(xg1, w1, wih2, whh2, b2)

    # --- Hoisted final Linear: single matmul over all (real) steps ---
    hseq = hs[:T, :B, :H]                                             # (T, B, H)
    y = jnp.einsum("tbh,oh->tbo", hseq, params["fc_w"]) + params["fc_b"]
    return jnp.transpose(y, (1, 0, 2))                                # (B, T, O)


def init_params(key):
    """Deterministic init matching PyTorch shapes: U(-1/sqrt(H), 1/sqrt(H))."""
    H, I, O = HIDDEN_SIZE, INPUT_SIZE, OUTPUT_SIZE
    bound = 1.0 / jnp.sqrt(jnp.float32(H))
    keys = jax.random.split(key, 10)
    u = lambda k, shape: jax.random.uniform(k, shape, jnp.float32, -bound, bound)
    return {
        "w_ih_l0": u(keys[0], (4 * H, I)),
        "w_hh_l0": u(keys[1], (4 * H, H)),
        "b_ih_l0": u(keys[2], (4 * H,)),
        "b_hh_l0": u(keys[3], (4 * H,)),
        "w_ih_l1": u(keys[4], (4 * H, H)),
        "w_hh_l1": u(keys[5], (4 * H, H)),
        "b_ih_l1": u(keys[6], (4 * H,)),
        "b_hh_l1": u(keys[7], (4 * H,)),
        "fc_w": u(keys[8], (O, H)),
        "fc_b": u(keys[9], (O,)),
    }


def lstm_timeseries_ref(x, params):
    """Pure-JAX f32 reference mirroring torch.nn.LSTM(batch_first=True) + Linear."""
    B, T, _ = x.shape
    H = HIDDEN_SIZE

    def cell(h, c, inp, wih, whh, bih, bhh):
        g = inp @ wih.T + h @ whh.T + bih + bhh
        i, f, gg, o = jnp.split(g, 4, axis=-1)
        c = jax.nn.sigmoid(f) * c + jax.nn.sigmoid(i) * jnp.tanh(gg)
        h = jax.nn.sigmoid(o) * jnp.tanh(c)
        return h, c

    h1 = jnp.zeros((B, H), jnp.float32)
    c1 = jnp.zeros((B, H), jnp.float32)
    h2 = jnp.zeros((B, H), jnp.float32)
    c2 = jnp.zeros((B, H), jnp.float32)
    outs = []
    for t in range(T):
        h1, c1 = cell(h1, c1, x[:, t], params["w_ih_l0"], params["w_hh_l0"],
                      params["b_ih_l0"], params["b_hh_l0"])
        h2, c2 = cell(h2, c2, h1, params["w_ih_l1"], params["w_hh_l1"],
                      params["b_ih_l1"], params["b_hh_l1"])
        outs.append(h2 @ params["fc_w"].T + params["fc_b"])
    return jnp.stack(outs, axis=1)


if __name__ == "__main__":
    key = jax.random.PRNGKey(0)
    kx, kp = jax.random.split(key)

    B, T = 2, 8
    x = jax.random.normal(kx, (B, T, INPUT_SIZE), dtype=jnp.float32)
    params = init_params(kp)

    fwd = jax.jit(lstm_timeseries_forward)
    out = jax.block_until_ready(fwd(x, params))

    ref = lstm_timeseries_ref(x, params)
    assert out.shape == (B, T, OUTPUT_SIZE), out.shape
    # bf16-MXU recurrent matmuls (f32 accumulation / f32 cell state) vs the
    # pure-f32 reference: tolerance set accordingly.
    max_err = float(jnp.max(jnp.abs(out - ref)))
    assert jnp.allclose(out, ref, atol=1e-2, rtol=1e-2), (
        f"mismatch vs reference, max_abs_err={max_err}")

    print("KERNEL_OK")
</pallas_src>

<mosaic_0001>
module attributes {stable_mosaic.version = 11 : i64} {
  func.func @_lstm_kernel(%arg0: i32, %arg1: memref<8x8x512xf32, #tpu.memory_space<vmem>>, %arg2: memref<128x512xbf16, #tpu.memory_space<vmem>>, %arg3: memref<128x512xbf16, #tpu.memory_space<vmem>>, %arg4: memref<128x512xbf16, #tpu.memory_space<vmem>>, %arg5: memref<1x512xf32, #tpu.memory_space<vmem>>, %arg6: memref<8x8x128xf32, #tpu.memory_space<vmem>>, %arg7: memref<8x128xf32, #tpu.memory_space<vmem>>, %arg8: memref<8x128xf32, #tpu.memory_space<vmem>>, %arg9: memref<8x128xf32, #tpu.memory_space<vmem>>, %arg10: memref<8x128xf32, #tpu.memory_space<vmem>>) attributes {dimension_semantics = [#tpu.dimension_semantics<arbitrary>], iteration_bounds = array<i64: 1>, scalar_prefetch = 0 : i64, scratch_operands = 4 : i64, tpu.core_type = #tpu.core_type<tc>, window_params = [{transform_indices = @transform_0, window_bounds = array<i64: 8, 8, 512>}, {pipeline_mode = #tpu.pipeline_mode<synchronous>, transform_indices = @transform_1, window_bounds = array<i64: 128, 512>}, {pipeline_mode = #tpu.pipeline_mode<synchronous>, transform_indices = @transform_2, window_bounds = array<i64: 128, 512>}, {pipeline_mode = #tpu.pipeline_mode<synchronous>, transform_indices = @transform_3, window_bounds = array<i64: 128, 512>}, {pipeline_mode = #tpu.pipeline_mode<synchronous>, transform_indices = @transform_4, window_bounds = array<i64: 1, 512>}, {transform_indices = @transform_5, window_bounds = array<i64: 8, 8, 128>}]} {
    %c0_i32 = arith.constant 0 : i32
    %0 = arith.cmpi eq, %arg0, %c0_i32 : i32
    %1 = arith.extui %0 : i1 to i32
    %c0_i32_0 = arith.constant 0 : i32
    %2 = arith.cmpi ne, %1, %c0_i32_0 : i32
    scf.if %2 {
      %cst_128 = arith.constant 0.000000e+00 : f32
      %545 = vector.broadcast %cst_128 : f32 to vector<8x128xf32>
      %c0_129 = arith.constant 0 : index
      %c0_130 = arith.constant 0 : index
      %546 = vector.load %arg7[%c0_129, %c0_130] : memref<8x128xf32, #tpu.memory_space<vmem>>, vector<8x128xf32>
      tpu.vector_store %arg7[%c0_129, %c0_130], %545 {strides = array<i32>} : memref<8x128xf32, #tpu.memory_space<vmem>>, vector<8x128xf32>,
      %cst_131 = arith.constant 0.000000e+00 : f32
      %547 = vector.broadcast %cst_131 : f32 to vector<8x128xf32>
      %c0_132 = arith.constant 0 : index
      %c0_133 = arith.constant 0 : index
      %548 = vector.load %arg8[%c0_132, %c0_133] : memref<8x128xf32, #tpu.memory_space<vmem>>, vector<8x128xf32>
      tpu.vector_store %arg8[%c0_132, %c0_133], %547 {strides = array<i32>} : memref<8x128xf32, #tpu.memory_space<vmem>>, vector<8x128xf32>,
      %cst_134 = arith.constant 0.000000e+00 : f32
      %549 = vector.broadcast %cst_134 : f32 to vector<8x128xf32>
      %c0_135 = arith.constant 0 : index
      %c0_136 = arith.constant 0 : index
      %550 = vector.load %arg9[%c0_135, %c0_136] : memref<8x128xf32, #tpu.memory_space<vmem>>, vector<8x128xf32>
      tpu.vector_store %arg9[%c0_135, %c0_136], %549 {strides = array<i32>} : memref<8x128xf32, #tpu.memory_space<vmem>>, vector<8x128xf32>,
      %cst_137 = arith.constant 0.000000e+00 : f32
      %551 = vector.broadcast %cst_137 : f32 to vector<8x128xf32>
      %c0_138 = arith.constant 0 : index
      %c0_139 = arith.constant 0 : index
      %552 = vector.load %arg10[%c0_138, %c0_139] : memref<8x128xf32, #tpu.memory_space<vmem>>, vector<8x128xf32>
      tpu.vector_store %arg10[%c0_138, %c0_139], %551 {strides = array<i32>} : memref<8x128xf32, #tpu.memory_space<vmem>>, vector<8x128xf32>,
    } else {
    }
    %c0 = arith.constant 0 : index
    %c0_1 = arith.constant 0 : index
    %3 = vector.load %arg2[%c0, %c0_1] : memref<128x512xbf16, #tpu.memory_space<vmem>>, vector<128x512xbf16>
    %c0_2 = arith.constant 0 : index
    %c0_3 = arith.constant 0 : index
    %4 = vector.load %arg3[%c0_2, %c0_3] : memref<128x512xbf16, #tpu.memory_space<vmem>>, vector<128x512xbf16>
    %c0_4 = arith.constant 0 : index
    %c0_5 = arith.constant 0 : index
    %5 = vector.load %arg4[%c0_4, %c0_5] : memref<128x512xbf16, #tpu.memory_space<vmem>>, vector<128x512xbf16>
    %c0_6 = arith.constant 0 : index
    %c0_7 = arith.constant 0 : index
    %6 = vector.load %arg5[%c0_6, %c0_7] : memref<1x512xf32, #tpu.memory_space<vmem>>, vector<1x512xf32>
    %7 = vector.shape_cast %6 : vector<1x512xf32> to vector<1x512xf32>
    %8 = vector.broadcast %7 : vector<1x512xf32> to vector<8x512xf32>
    %c0_8 = arith.constant 0 : index
    %c0_9 = arith.constant 0 : index
    %9 = vector.load %arg7[%c0_8, %c0_9] : memref<8x128xf32, #tpu.memory_space<vmem>>, vector<8x128xf32>
    %c0_10 = arith.constant 0 : index
    %c0_11 = arith.constant 0 : index
    %10 = vector.load %arg8[%c0_10, %c0_11] : memref<8x128xf32, #tpu.memory_space<vmem>>, vector<8x128xf32>
    %c0_12 = arith.constant 0 : index
    %c0_13 = arith.constant 0 : index
    %11 = vector.load %arg9[%c0_12, %c0_13] : memref<8x128xf32, #tpu.memory_space<vmem>>, vector<8x128xf32>
    %c0_14 = arith.constant 0 : index
    %c0_15 = arith.constant 0 : index
    %12 = vector.load %arg10[%c0_14, %c0_15] : memref<8x128xf32, #tpu.memory_space<vmem>>, vector<8x128xf32>
    %c0_i32_16 = arith.constant 0 : i32
    %13 = arith.index_cast %c0_i32_16 : i32 to index
    %c0_17 = arith.constant 0 : index
    %c0_18 = arith.constant 0 : index
    %14 = vector.load %arg1[%13, %c0_17, %c0_18] : memref<8x8x512xf32, #tpu.memory_space<vmem>>, vector<1x8x512xf32>
    %15 = vector.shape_cast %14 : vector<1x8x512xf32> to vector<8x512xf32>
    %16 = arith.truncf %9 : vector<8x128xf32> to vector<8x128xbf16>
    %cst = arith.constant dense<0.000000e+00> : vector<8x512xf32>
    %17 = tpu.matmul %16, %3, %cst {dimension_numbers = #tpu.dot_dimension_numbers<[1], [0], [0], [1], [0, 0, 1, 1], [], []>} : vector<8x128xbf16>, vector<128x512xbf16>, vector<8x512xf32> -> vector<8x512xf32>
    %18 = arith.addf %15, %17 : vector<8x512xf32>
    %19 = vector.extract_strided_slice %18 {offsets = [0, 0], sizes = [8, 128], strides = [1, 1]} : vector<8x512xf32> to vector<8x128xf32>
    %20 = arith.negf %19 : vector<8x128xf32>
    %21 = math.exp %20 : vector<8x128xf32>
    %cst_19 = arith.constant 1.000000e+00 : f32
    %22 = vector.broadcast %cst_19 : f32 to vector<8x128xf32>
    %23 = arith.addf %22, %21 : vector<8x128xf32>
    %24 = arith.divf %22, %23 : vector<8x128xf32>
    %25 = vector.extract_strided_slice %18 {offsets = [0, 128], sizes = [8, 128], strides = [1, 1]} : vector<8x512xf32> to vector<8x128xf32>
    %26 = arith.negf %25 : vector<8x128xf32>
    %27 = math.exp %26 : vector<8x128xf32>
    %cst_20 = arith.constant 1.000000e+00 : f32
    %28 = vector.broadcast %cst_20 : f32 to vector<8x128xf32>
    %29 = arith.addf %28, %27 : vector<8x128xf32>
    %30 = arith.divf %28, %29 : vector<8x128xf32>
    %31 = vector.extract_strided_slice %18 {offsets = [0, 256], sizes = [8, 128], strides = [1, 1]} : vector<8x512xf32> to vector<8x128xf32>
    %32 = math.tanh %31 : vector<8x128xf32>
    %33 = vector.extract_strided_slice %18 {offsets = [0, 384], sizes = [8, 128], strides = [1, 1]} : vector<8x512xf32> to vector<8x128xf32>
    %34 = arith.negf %33 : vector<8x128xf32>
    %35 = math.exp %34 : vector<8x128xf32>
    %cst_21 = arith.constant 1.000000e+00 : f32
    %36 = vector.broadcast %cst_21 : f32 to vector<8x128xf32>
    %37 = arith.addf %36, %35 : vector<8x128xf32>
    %38 = arith.divf %36, %37 : vector<8x128xf32>
    %39 = arith.mulf %30, %10 : vector<8x128xf32>
    %40 = arith.mulf %24, %32 : vector<8x128xf32>
    %41 = arith.addf %39, %40 : vector<8x128xf32>
    %42 = math.tanh %41 : vector<8x128xf32>
    %43 = arith.mulf %38, %42 : vector<8x128xf32>
    %44 = arith.truncf %43 : vector<8x128xf32> to vector<8x128xbf16>
    %cst_22 = arith.constant dense<0.000000e+00> : vector<8x512xf32>
    %45 = tpu.matmul %44, %4, %cst_22 {dimension_numbers = #tpu.dot_dimension_numbers<[1], [0], [0], [1], [0, 0, 1, 1], [], []>} : vector<8x128xbf16>, vector<128x512xbf16>, vector<8x512xf32> -> vector<8x512xf32>
    %46 = arith.truncf %11 : vector<8x128xf32> to vector<8x128xbf16>
    %cst_23 = arith.constant dense<0.000000e+00> : vector<8x512xf32>
    %47 = tpu.matmul %46, %5, %cst_23 {dimension_numbers = #tpu.dot_dimension_numbers<[1], [0], [0], [1], [0, 0, 1, 1], [], []>} : vector<8x128xbf16>, vector<128x512xbf16>, vector<8x512xf32> -> vector<8x512xf32>
    %48 = arith.addf %45, %47 : vector<8x512xf32>
    %49 = arith.addf %48, %8 : vector<8x512xf32>
    %50 = vector.extract_strided_slice %49 {offsets = [0, 0], sizes = [8, 128], strides = [1, 1]} : vector<8x512xf32> to vector<8x128xf32>
    %51 = arith.negf %50 : vector<8x128xf32>
    %52 = math.exp %51 : vector<8x128xf32>
    %cst_24 = arith.constant 1.000000e+00 : f32
    %53 = vector.broadcast %cst_24 : f32 to vector<8x128xf32>
    %54 = arith.addf %53, %52 : vector<8x128xf32>
    %55 = arith.divf %53, %54 : vector<8x128xf32>
    %56 = vector.extract_strided_slice %49 {offsets = [0, 128], sizes = [8, 128], strides = [1, 1]} : vector<8x512xf32> to vector<8x128xf32>
    %57 = arith.negf %56 : vector<8x128xf32>
    %58 = math.exp %57 : vector<8x128xf32>
    %cst_25 = arith.constant 1.000000e+00 : f32
    %59 = vector.broadcast %cst_25 : f32 to vector<8x128xf32>
    %60 = arith.addf %59, %58 : vector<8x128xf32>
    %61 = arith.divf %59, %60 : vector<8x128xf32>
    %62 = vector.extract_strided_slice %49 {offsets = [0, 256], sizes = [8, 128], strides = [1, 1]} : vector<8x512xf32> to vector<8x128xf32>
    %63 = math.tanh %62 : vector<8x128xf32>
    %64 = vector.extract_strided_slice %49 {offsets = [0, 384], sizes = [8, 128], strides = [1, 1]} : vector<8x512xf32> to vector<8x128xf32>
    %65 = arith.negf %64 : vector<8x128xf32>
    %66 = math.exp %65 : vector<8x128xf32>
    %cst_26 = arith.constant 1.000000e+00 : f32
    %67 = vector.broadcast %cst_26 : f32 to vector<8x128xf32>
    %68 = arith.addf %67, %66 : vector<8x128xf32>
    %69 = arith.divf %67, %68 : vector<8x128xf32>
    %70 = arith.mulf %61, %12 : vector<8x128xf32>
    %71 = arith.mulf %55, %63 : vector<8x128xf32>
    %72 = arith.addf %70, %71 : vector<8x128xf32>
    %73 = math.tanh %72 : vector<8x128xf32>
    %74 = arith.mulf %69, %73 : vector<8x128xf32>
    %75 = arith.index_cast %c0_i32_16 : i32 to index
    %c0_27 = arith.constant 0 : index
    %c0_28 = arith.constant 0 : index
    %76 = vector.load %arg6[%75, %c0_27, %c0_28] : memref<8x8x128xf32, #tpu.memory_space<vmem>>, vector<1x8x128xf32>
    %77 = vector.shape_cast %76 : vector<1x8x128xf32> to vector<8x128xf32>
    %78 = vector.shape_cast %74 : vector<8x128xf32> to vector<1x8x128xf32>
    tpu.vector_store %arg6[%75, %c0_27, %c0_28], %78 {strides = array<i32>} : memref<8x8x128xf32, #tpu.memory_space<vmem>>, vector<1x8x128xf32>,
    %c1_i32 = arith.constant 1 : i32
    %79 = arith.index_cast %c1_i32 : i32 to index
    %c0_29 = arith.constant 0 : index
    %c0_30 = arith.constant 0 : index
    %80 = vector.load %arg1[%79, %c0_29, %c0_30] : memref<8x8x512xf32, #tpu.memory_space<vmem>>, vector<1x8x512xf32>
    %81 = vector.shape_cast %80 : vector<1x8x512xf32> to vector<8x512xf32>
    %82 = arith.truncf %43 : vector<8x128xf32> to vector<8x128xbf16>
    %cst_31 = arith.constant dense<0.000000e+00> : vector<8x512xf32>
    %83 = tpu.matmul %82, %3, %cst_31 {dimension_numbers = #tpu.dot_dimension_numbers<[1], [0], [0], [1], [0, 0, 1, 1], [], []>} : vector<8x128xbf16>, vector<128x512xbf16>, vector<8x512xf32> -> vector<8x512xf32>
    %84 = arith.addf %81, %83 : vector<8x512xf32>
    %85 = vector.extract_strided_slice %84 {offsets = [0, 0], sizes = [8, 128], strides = [1, 1]} : vector<8x512xf32> to vector<8x128xf32>
    %86 = arith.negf %85 : vector<8x128xf32>
    %87 = math.exp %86 : vector<8x128xf32>
    %cst_32 = arith.constant 1.000000e+00 : f32
    %88 = vector.broadcast %cst_32 : f32 to vector<8x128xf32>
    %89 = arith.addf %88, %87 : vector<8x128xf32>
    %90 = arith.divf %88, %89 : vector<8x128xf32>
    %91 = vector.extract_strided_slice %84 {offsets = [0, 128], sizes = [8, 128], strides = [1, 1]} : vector<8x512xf32> to vector<8x128xf32>
    %92 = arith.negf %91 : vector<8x128xf32>
    %93 = math.exp %92 : vector<8x128xf32>
    %cst_33 = arith.constant 1.000000e+00 : f32
    %94 = vector.broadcast %cst_33 : f32 to vector<8x128xf32>
    %95 = arith.addf %94, %93 : vector<8x128xf32>
    %96 = arith.divf %94, %95 : vector<8x128xf32>
    %97 = vector.extract_strided_slice %84 {offsets = [0, 256], sizes = [8, 128], strides = [1, 1]} : vector<8x512xf32> to vector<8x128xf32>
    %98 = math.tanh %97 : vector<8x128xf32>
    %99 = vector.extract_strided_slice %84 {offsets = [0, 384], sizes = [8, 128], strides = [1, 1]} : vector<8x512xf32> to vector<8x128xf32>
    %100 = arith.negf %99 : vector<8x128xf32>
    %101 = math.exp %100 : vector<8x128xf32>
    %cst_34 = arith.constant 1.000000e+00 : f32
    %102 = vector.broadcast %cst_34 : f32 to vector<8x128xf32>
    %103 = arith.addf %102, %101 : vector<8x128xf32>
    %104 = arith.divf %102, %103 : vector<8x128xf32>
    %105 = arith.mulf %96, %41 : vector<8x128xf32>
    %106 = arith.mulf %90, %98 : vector<8x128xf32>
    %107 = arith.addf %105, %106 : vector<8x128xf32>
    %108 = math.tanh %107 : vector<8x128xf32>
    %109 = arith.mulf %104, %108 : vector<8x128xf32>
    %110 = arith.truncf %109 : vector<8x128xf32> to vector<8x128xbf16>
    %cst_35 = arith.constant dense<0.000000e+00> : vector<8x512xf32>
    %111 = tpu.matmul %110, %4, %cst_35 {dimension_numbers = #tpu.dot_dimension_numbers<[1], [0], [0], [1], [0, 0, 1, 1], [], []>} : vector<8x128xbf16>, vector<128x512xbf16>, vector<8x512xf32> -> vector<8x512xf32>
    %112 = arith.truncf %74 : vector<8x128xf32> to vector<8x128xbf16>
    %cst_36 = arith.constant dense<0.000000e+00> : vector<8x512xf32>
    %113 = tpu.matmul %112, %5, %cst_36 {dimension_numbers = #tpu.dot_dimension_numbers<[1], [0], [0], [1], [0, 0, 1, 1], [], []>} : vector<8x128xbf16>, vector<128x512xbf16>, vector<8x512xf32> -> vector<8x512xf32>
    %114 = arith.addf %111, %113 : vector<8x512xf32>
    %115 = arith.addf %114, %8 : vector<8x512xf32>
    %116 = vector.extract_strided_slice %115 {offsets = [0, 0], sizes = [8, 128], strides = [1, 1]} : vector<8x512xf32> to vector<8x128xf32>
    %117 = arith.negf %116 : vector<8x128xf32>
    %118 = math.exp %117 : vector<8x128xf32>
    %cst_37 = arith.constant 1.000000e+00 : f32
    %119 = vector.broadcast %cst_37 : f32 to vector<8x128xf32>
    %120 = arith.addf %119, %118 : vector<8x128xf32>
    %121 = arith.divf %119, %120 : vector<8x128xf32>
    %122 = vector.extract_strided_slice %115 {offsets = [0, 128], sizes = [8, 128], strides = [1, 1]} : vector<8x512xf32> to vector<8x128xf32>
    %123 = arith.negf %122 : vector<8x128xf32>
    %124 = math.exp %123 : vector<8x128xf32>
    %cst_38 = arith.constant 1.000000e+00 : f32
    %125 = vector.broadcast %cst_38 : f32 to vector<8x128xf32>
    %126 = arith.addf %125, %124 : vector<8x128xf32>
    %127 = arith.divf %125, %126 : vector<8x128xf32>
    %128 = vector.extract_strided_slice %115 {offsets = [0, 256], sizes = [8, 128], strides = [1, 1]} : vector<8x512xf32> to vector<8x128xf32>
    %129 = math.tanh %128 : vector<8x128xf32>
    %130 = vector.extract_strided_slice %115 {offsets = [0, 384], sizes = [8, 128], strides = [1, 1]} : vector<8x512xf32> to vector<8x128xf32>
    %131 = arith.negf %130 : vector<8x128xf32>
    %132 = math.exp %131 : vector<8x128xf32>
    %cst_39 = arith.constant 1.000000e+00 : f32
    %133 = vector.broadcast %cst_39 : f32 to vector<8x128xf32>
    %134 = arith.addf %133, %132 : vector<8x128xf32>
    %135 = arith.divf %133, %134 : vector<8x128xf32>
    %136 = arith.mulf %127, %72 : vector<8x128xf32>
    %137 = arith.mulf %121, %129 : vector<8x128xf32>
    %138 = arith.addf %136, %137 : vector<8x128xf32>
    %139 = math.tanh %138 : vector<8x128xf32>
    %140 = arith.mulf %135, %139 : vector<8x128xf32>
    %141 = arith.index_cast %c1_i32 : i32 to index
    %c0_40 = arith.constant 0 : index
    %c0_41 = arith.constant 0 : index
    %142 = vector.load %arg6[%141, %c0_40, %c0_41] : memref<8x8x128xf32, #tpu.memory_space<vmem>>, vector<1x8x128xf32>
    %143 = vector.shape_cast %142 : vector<1x8x128xf32> to vector<8x128xf32>
    %144 = vector.shape_cast %140 : vector<8x128xf32> to vector<1x8x128xf32>
    tpu.vector_store %arg6[%141, %c0_40, %c0_41], %144 {strides = array<i32>} : memref<8x8x128xf32, #tpu.memory_space<vmem>>, vector<1x8x128xf32>,
    %c2_i32 = arith.constant 2 : i32
    %145 = arith.index_cast %c2_i32 : i32 to index
    %c0_42 = arith.constant 0 : index
    %c0_43 = arith.constant 0 : index
    %146 = vector.load %arg1[%145, %c0_42, %c0_43] : memref<8x8x512xf32, #tpu.memory_space<vmem>>, vector<1x8x512xf32>
    %147 = vector.shape_cast %146 : vector<1x8x512xf32> to vector<8x512xf32>
    %148 = arith.truncf %109 : vector<8x128xf32> to vector<8x128xbf16>
    %cst_44 = arith.constant dense<0.000000e+00> : vector<8x512xf32>
    %149 = tpu.matmul %148, %3, %cst_44 {dimension_numbers = #tpu.dot_dimension_numbers<[1], [0], [0], [1], [0, 0, 1, 1], [], []>} : vector<8x128xbf16>, vector<128x512xbf16>, vector<8x512xf32> -> vector<8x512xf32>
    %150 = arith.addf %147, %149 : vector<8x512xf32>
    %151 = vector.extract_strided_slice %150 {offsets = [0, 0], sizes = [8, 128], strides = [1, 1]} : vector<8x512xf32> to vector<8x128xf32>
    %152 = arith.negf %151 : vector<8x128xf32>
    %153 = math.exp %152 : vector<8x128xf32>
    %cst_45 = arith.constant 1.000000e+00 : f32
    %154 = vector.broadcast %cst_45 : f32 to vector<8x128xf32>
    %155 = arith.addf %154, %153 : vector<8x128xf32>
    %156 = arith.divf %154, %155 : vector<8x128xf32>
    %157 = vector.extract_strided_slice %150 {offsets = [0, 128], sizes = [8, 128], strides = [1, 1]} : vector<8x512xf32> to vector<8x128xf32>
    %158 = arith.negf %157 : vector<8x128xf32>
    %159 = math.exp %158 : vector<8x128xf32>
    %cst_46 = arith.constant 1.000000e+00 : f32
    %160 = vector.broadcast %cst_46 : f32 to vector<8x128xf32>
    %161 = arith.addf %160, %159 : vector<8x128xf32>
    %162 = arith.divf %160, %161 : vector<8x128xf32>
    %163 = vector.extract_strided_slice %150 {offsets = [0, 256], sizes = [8, 128], strides = [1, 1]} : vector<8x512xf32> to vector<8x128xf32>
    %164 = math.tanh %163 : vector<8x128xf32>
    %165 = vector.extract_strided_slice %150 {offsets = [0, 384], sizes = [8, 128], strides = [1, 1]} : vector<8x512xf32> to vector<8x128xf32>
    %166 = arith.negf %165 : vector<8x128xf32>
    %167 = math.exp %166 : vector<8x128xf32>
    %cst_47 = arith.constant 1.000000e+00 : f32
    %168 = vector.broadcast %cst_47 : f32 to vector<8x128xf32>
    %169 = arith.addf %168, %167 : vector<8x128xf32>
    %170 = arith.divf %168, %169 : vector<8x128xf32>
    %171 = arith.mulf %162, %107 : vector<8x128xf32>
    %172 = arith.mulf %156, %164 : vector<8x128xf32>
    %173 = arith.addf %171, %172 : vector<8x128xf32>
    %174 = math.tanh %173 : vector<8x128xf32>
    %175 = arith.mulf %170, %174 : vector<8x128xf32>
    %176 = arith.truncf %175 : vector<8x128xf32> to vector<8x128xbf16>
    %cst_48 = arith.constant dense<0.000000e+00> : vector<8x512xf32>
    %177 = tpu.matmul %176, %4, %cst_48 {dimension_numbers = #tpu.dot_dimension_numbers<[1], [0], [0], [1], [0, 0, 1, 1], [], []>} : vector<8x128xbf16>, vector<128x512xbf16>, vector<8x512xf32> -> vector<8x512xf32>
    %178 = arith.truncf %140 : vector<8x128xf32> to vector<8x128xbf16>
    %cst_49 = arith.constant dense<0.000000e+00> : vector<8x512xf32>
    %179 = tpu.matmul %178, %5, %cst_49 {dimension_numbers = #tpu.dot_dimension_numbers<[1], [0], [0], [1], [0, 0, 1, 1], [], []>} : vector<8x128xbf16>, vector<128x512xbf16>, vector<8x512xf32> -> vector<8x512xf32>
    %180 = arith.addf %177, %179 : vector<8x512xf32>
    %181 = arith.addf %180, %8 : vector<8x512xf32>
    %182 = vector.extract_strided_slice %181 {offsets = [0, 0], sizes = [8, 128], strides = [1, 1]} : vector<8x512xf32> to vector<8x128xf32>
    %183 = arith.negf %182 : vector<8x128xf32>
    %184 = math.exp %183 : vector<8x128xf32>
    %cst_50 = arith.constant 1.000000e+00 : f32
    %185 = vector.broadcast %cst_50 : f32 to vector<8x128xf32>
    %186 = arith.addf %185, %184 : vector<8x128xf32>
    %187 = arith.divf %185, %186 : vector<8x128xf32>
    %188 = vector.extract_strided_slice %181 {offsets = [0, 128], sizes = [8, 128], strides = [1, 1]} : vector<8x512xf32> to vector<8x128xf32>
    %189 = arith.negf %188 : vector<8x128xf32>
    %190 = math.exp %189 : vector<8x128xf32>
    %cst_51 = arith.constant 1.000000e+00 : f32
    %191 = vector.broadcast %cst_51 : f32 to vector<8x128xf32>
    %192 = arith.addf %191, %190 : vector<8x128xf32>
    %193 = arith.divf %191, %192 : vector<8x128xf32>
    %194 = vector.extract_strided_slice %181 {offsets = [0, 256], sizes = [8, 128], strides = [1, 1]} : vector<8x512xf32> to vector<8x128xf32>
    %195 = math.tanh %194 : vector<8x128xf32>
    %196 = vector.extract_strided_slice %181 {offsets = [0, 384], sizes = [8, 128], strides = [1, 1]} : vector<8x512xf32> to vector<8x128xf32>
    %197 = arith.negf %196 : vector<8x128xf32>
    %198 = math.exp %197 : vector<8x128xf32>
    %cst_52 = arith.constant 1.000000e+00 : f32
    %199 = vector.broadcast %cst_52 : f32 to vector<8x128xf32>
    %200 = arith.addf %199, %198 : vector<8x128xf32>
    %201 = arith.divf %199, %200 : vector<8x128xf32>
    %202 = arith.mulf %193, %138 : vector<8x128xf32>
    %203 = arith.mulf %187, %195 : vector<8x128xf32>
    %204 = arith.addf %202, %203 : vector<8x128xf32>
    %205 = math.tanh %204 : vector<8x128xf32>
    %206 = arith.mulf %201, %205 : vector<8x128xf32>
    %207 = arith.index_cast %c2_i32 : i32 to index
    %c0_53 = arith.constant 0 : index
    %c0_54 = arith.constant 0 : index
    %208 = vector.load %arg6[%207, %c0_53, %c0_54] : memref<8x8x128xf32, #tpu.memory_space<vmem>>, vector<1x8x128xf32>
    %209 = vector.shape_cast %208 : vector<1x8x128xf32> to vector<8x128xf32>
    %210 = vector.shape_cast %206 : vector<8x128xf32> to vector<1x8x128xf32>
    tpu.vector_store %arg6[%207, %c0_53, %c0_54], %210 {strides = array<i32>} : memref<8x8x128xf32, #tpu.memory_space<vmem>>, vector<1x8x128xf32>,
    %c3_i32 = arith.constant 3 : i32
    %211 = arith.index_cast %c3_i32 : i32 to index
    %c0_55 = arith.constant 0 : index
    %c0_56 = arith.constant 0 : index
    %212 = vector.load %arg1[%211, %c0_55, %c0_56] : memref<8x8x512xf32, #tpu.memory_space<vmem>>, vector<1x8x512xf32>
    %213 = vector.shape_cast %212 : vector<1x8x512xf32> to vector<8x512xf32>
    %214 = arith.truncf %175 : vector<8x128xf32> to vector<8x128xbf16>
    %cst_57 = arith.constant dense<0.000000e+00> : vector<8x512xf32>
    %215 = tpu.matmul %214, %3, %cst_57 {dimension_numbers = #tpu.dot_dimension_numbers<[1], [0], [0], [1], [0, 0, 1, 1], [], []>} : vector<8x128xbf16>, vector<128x512xbf16>, vector<8x512xf32> -> vector<8x512xf32>
    %216 = arith.addf %213, %215 : vector<8x512xf32>
    %217 = vector.extract_strided_slice %216 {offsets = [0, 0], sizes = [8, 128], strides = [1, 1]} : vector<8x512xf32> to vector<8x128xf32>
    %218 = arith.negf %217 : vector<8x128xf32>
    %219 = math.exp %218 : vector<8x128xf32>
    %cst_58 = arith.constant 1.000000e+00 : f32
    %220 = vector.broadcast %cst_58 : f32 to vector<8x128xf32>
    %221 = arith.addf %220, %219 : vector<8x128xf32>
    %222 = arith.divf %220, %221 : vector<8x128xf32>
    %223 = vector.extract_strided_slice %216 {offsets = [0, 128], sizes = [8, 128], strides = [1, 1]} : vector<8x512xf32> to vector<8x128xf32>
    %224 = arith.negf %223 : vector<8x128xf32>
    %225 = math.exp %224 : vector<8x128xf32>
    %cst_59 = arith.constant 1.000000e+00 : f32
    %226 = vector.broadcast %cst_59 : f32 to vector<8x128xf32>
    %227 = arith.addf %226, %225 : vector<8x128xf32>
    %228 = arith.divf %226, %227 : vector<8x128xf32>
    %229 = vector.extract_strided_slice %216 {offsets = [0, 256], sizes = [8, 128], strides = [1, 1]} : vector<8x512xf32> to vector<8x128xf32>
    %230 = math.tanh %229 : vector<8x128xf32>
    %231 = vector.extract_strided_slice %216 {offsets = [0, 384], sizes = [8, 128], strides = [1, 1]} : vector<8x512xf32> to vector<8x128xf32>
    %232 = arith.negf %231 : vector<8x128xf32>
    %233 = math.exp %232 : vector<8x128xf32>
    %cst_60 = arith.constant 1.000000e+00 : f32
    %234 = vector.broadcast %cst_60 : f32 to vector<8x128xf32>
    %235 = arith.addf %234, %233 : vector<8x128xf32>
    %236 = arith.divf %234, %235 : vector<8x128xf32>
    %237 = arith.mulf %228, %173 : vector<8x128xf32>
    %238 = arith.mulf %222, %230 : vector<8x128xf32>
    %239 = arith.addf %237, %238 : vector<8x128xf32>
    %240 = math.tanh %239 : vector<8x128xf32>
    %241 = arith.mulf %236, %240 : vector<8x128xf32>
    %242 = arith.truncf %241 : vector<8x128xf32> to vector<8x128xbf16>
    %cst_61 = arith.constant dense<0.000000e+00> : vector<8x512xf32>
    %243 = tpu.matmul %242, %4, %cst_61 {dimension_numbers = #tpu.dot_dimension_numbers<[1], [0], [0], [1], [0, 0, 1, 1], [], []>} : vector<8x128xbf16>, vector<128x512xbf16>, vector<8x512xf32> -> vector<8x512xf32>
    %244 = arith.truncf %206 : vector<8x128xf32> to vector<8x128xbf16>
    %cst_62 = arith.constant dense<0.000000e+00> : vector<8x512xf32>
    %245 = tpu.matmul %244, %5, %cst_62 {dimension_numbers = #tpu.dot_dimension_numbers<[1], [0], [0], [1], [0, 0, 1, 1], [], []>} : vector<8x128xbf16>, vector<128x512xbf16>, vector<8x512xf32> -> vector<8x512xf32>
    %246 = arith.addf %243, %245 : vector<8x512xf32>
    %247 = arith.addf %246, %8 : vector<8x512xf32>
    %248 = vector.extract_strided_slice %247 {offsets = [0, 0], sizes = [8, 128], strides = [1, 1]} : vector<8x512xf32> to vector<8x128xf32>
    %249 = arith.negf %248 : vector<8x128xf32>
    %250 = math.exp %249 : vector<8x128xf32>
    %cst_63 = arith.constant 1.000000e+00 : f32
    %251 = vector.broadcast %cst_63 : f32 to vector<8x128xf32>
    %252 = arith.addf %251, %250 : vector<8x128xf32>
    %253 = arith.divf %251, %252 : vector<8x128xf32>
    %254 = vector.extract_strided_slice %247 {offsets = [0, 128], sizes = [8, 128], strides = [1, 1]} : vector<8x512xf32> to vector<8x128xf32>
    %255 = arith.negf %254 : vector<8x128xf32>
    %256 = math.exp %255 : vector<8x128xf32>
    %cst_64 = arith.constant 1.000000e+00 : f32
    %257 = vector.broadcast %cst_64 : f32 to vector<8x128xf32>
    %258 = arith.addf %257, %256 : vector<8x128xf32>
    %259 = arith.divf %257, %258 : vector<8x128xf32>
    %260 = vector.extract_strided_slice %247 {offsets = [0, 256], sizes = [8, 128], strides = [1, 1]} : vector<8x512xf32> to vector<8x128xf32>
    %261 = math.tanh %260 : vector<8x128xf32>
    %262 = vector.extract_strided_slice %247 {offsets = [0, 384], sizes = [8, 128], strides = [1, 1]} : vector<8x512xf32> to vector<8x128xf32>
    %263 = arith.negf %262 : vector<8x128xf32>
    %264 = math.exp %263 : vector<8x128xf32>
    %cst_65 = arith.constant 1.000000e+00 : f32
    %265 = vector.broadcast %cst_65 : f32 to vector<8x128xf32>
    %266 = arith.addf %265, %264 : vector<8x128xf32>
    %267 = arith.divf %265, %266 : vector<8x128xf32>
    %268 = arith.mulf %259, %204 : vector<8x128xf32>
    %269 = arith.mulf %253, %261 : vector<8x128xf32>
    %270 = arith.addf %268, %269 : vector<8x128xf32>
    %271 = math.tanh %270 : vector<8x128xf32>
    %272 = arith.mulf %267, %271 : vector<8x128xf32>
    %273 = arith.index_cast %c3_i32 : i32 to index
    %c0_66 = arith.constant 0 : index
    %c0_67 = arith.constant 0 : index
    %274 = vector.load %arg6[%273, %c0_66, %c0_67] : memref<8x8x128xf32, #tpu.memory_space<vmem>>, vector<1x8x128xf32>
    %275 = vector.shape_cast %274 : vector<1x8x128xf32> to vector<8x128xf32>
    %276 = vector.shape_cast %272 : vector<8x128xf32> to vector<1x8x128xf32>
    tpu.vector_store %arg6[%273, %c0_66, %c0_67], %276 {strides = array<i32>} : memref<8x8x128xf32, #tpu.memory_space<vmem>>, vector<1x8x128xf32>,
    %c4_i32 = arith.constant 4 : i32
    %277 = arith.index_cast %c4_i32 : i32 to index
    %c0_68 = arith.constant 0 : index
    %c0_69 = arith.constant 0 : index
    %278 = vector.load %arg1[%277, %c0_68, %c0_69] : memref<8x8x512xf32, #tpu.memory_space<vmem>>, vector<1x8x512xf32>
    %279 = vector.shape_cast %278 : vector<1x8x512xf32> to vector<8x512xf32>
    %280 = arith.truncf %241 : vector<8x128xf32> to vector<8x128xbf16>
    %cst_70 = arith.constant dense<0.000000e+00> : vector<8x512xf32>
    %281 = tpu.matmul %280, %3, %cst_70 {dimension_numbers = #tpu.dot_dimension_numbers<[1], [0], [0], [1], [0, 0, 1, 1], [], []>} : vector<8x128xbf16>, vector<128x512xbf16>, vector<8x512xf32> -> vector<8x512xf32>
    %282 = arith.addf %279, %281 : vector<8x512xf32>
    %283 = vector.extract_strided_slice %282 {offsets = [0, 0], sizes = [8, 128], strides = [1, 1]} : vector<8x512xf32> to vector<8x128xf32>
    %284 = arith.negf %283 : vector<8x128xf32>
    %285 = math.exp %284 : vector<8x128xf32>
    %cst_71 = arith.constant 1.000000e+00 : f32
    %286 = vector.broadcast %cst_71 : f32 to vector<8x128xf32>
    %287 = arith.addf %286, %285 : vector<8x128xf32>
    %288 = arith.divf %286, %287 : vector<8x128xf32>
    %289 = vector.extract_strided_slice %282 {offsets = [0, 128], sizes = [8, 128], strides = [1, 1]} : vector<8x512xf32> to vector<8x128xf32>
    %290 = arith.negf %289 : vector<8x128xf32>
    %291 = math.exp %290 : vector<8x128xf32>
    %cst_72 = arith.constant 1.000000e+00 : f32
    %292 = vector.broadcast %cst_72 : f32 to vector<8x128xf32>
    %293 = arith.addf %292, %291 : vector<8x128xf32>
    %294 = arith.divf %292, %293 : vector<8x128xf32>
    %295 = vector.extract_strided_slice %282 {offsets = [0, 256], sizes = [8, 128], strides = [1, 1]} : vector<8x512xf32> to vector<8x128xf32>
    %296 = math.tanh %295 : vector<8x128xf32>
    %297 = vector.extract_strided_slice %282 {offsets = [0, 384], sizes = [8, 128], strides = [1, 1]} : vector<8x512xf32> to vector<8x128xf32>
    %298 = arith.negf %297 : vector<8x128xf32>
    %299 = math.exp %298 : vector<8x128xf32>
    %cst_73 = arith.constant 1.000000e+00 : f32
    %300 = vector.broadcast %cst_73 : f32 to vector<8x128xf32>
    %301 = arith.addf %300, %299 : vector<8x128xf32>
    %302 = arith.divf %300, %301 : vector<8x128xf32>
    %303 = arith.mulf %294, %239 : vector<8x128xf32>
    %304 = arith.mulf %288, %296 : vector<8x128xf32>
    %305 = arith.addf %303, %304 : vector<8x128xf32>
    %306 = math.tanh %305 : vector<8x128xf32>
    %307 = arith.mulf %302, %306 : vector<8x128xf32>
    %308 = arith.truncf %307 : vector<8x128xf32> to vector<8x128xbf16>
    %cst_74 = arith.constant dense<0.000000e+00> : vector<8x512xf32>
    %309 = tpu.matmul %308, %4, %cst_74 {dimension_numbers = #tpu.dot_dimension_numbers<[1], [0], [0], [1], [0, 0, 1, 1], [], []>} : vector<8x128xbf16>, vector<128x512xbf16>, vector<8x512xf32> -> vector<8x512xf32>
    %310 = arith.truncf %272 : vector<8x128xf32> to vector<8x128xbf16>
    %cst_75 = arith.constant dense<0.000000e+00> : vector<8x512xf32>
    %311 = tpu.matmul %310, %5, %cst_75 {dimension_numbers = #tpu.dot_dimension_numbers<[1], [0], [0], [1], [0, 0, 1, 1], [], []>} : vector<8x128xbf16>, vector<128x512xbf16>, vector<8x512xf32> -> vector<8x512xf32>
    %312 = arith.addf %309, %311 : vector<8x512xf32>
    %313 = arith.addf %312, %8 : vector<8x512xf32>
    %314 = vector.extract_strided_slice %313 {offsets = [0, 0], sizes = [8, 128], strides = [1, 1]} : vector<8x512xf32> to vector<8x128xf32>
    %315 = arith.negf %314 : vector<8x128xf32>
    %316 = math.exp %315 : vector<8x128xf32>
    %cst_76 = arith.constant 1.000000e+00 : f32
    %317 = vector.broadcast %cst_76 : f32 to vector<8x128xf32>
    %318 = arith.addf %317, %316 : vector<8x128xf32>
    %319 = arith.divf %317, %318 : vector<8x128xf32>
    %320 = vector.extract_strided_slice %313 {offsets = [0, 128], sizes = [8, 128], strides = [1, 1]} : vector<8x512xf32> to vector<8x128xf32>
    %321 = arith.negf %320 : vector<8x128xf32>
    %322 = math.exp %321 : vector<8x128xf32>
    %cst_77 = arith.constant 1.000000e+00 : f32
    %323 = vector.broadcast %cst_77 : f32 to vector<8x128xf32>
    %324 = arith.addf %323, %322 : vector<8x128xf32>
    %325 = arith.divf %323, %324 : vector<8x128xf32>
    %326 = vector.extract_strided_slice %313 {offsets = [0, 256], sizes = [8, 128], strides = [1, 1]} : vector<8x512xf32> to vector<8x128xf32>
    %327 = math.tanh %326 : vector<8x128xf32>
    %328 = vector.extract_strided_slice %313 {offsets = [0, 384], sizes = [8, 128], strides = [1, 1]} : vector<8x512xf32> to vector<8x128xf32>
    %329 = arith.negf %328 : vector<8x128xf32>
    %330 = math.exp %329 : vector<8x128xf32>
    %cst_78 = arith.constant 1.000000e+00 : f32
    %331 = vector.broadcast %cst_78 : f32 to vector<8x128xf32>
    %332 = arith.addf %331, %330 : vector<8x128xf32>
    %333 = arith.divf %331, %332 : vector<8x128xf32>
    %334 = arith.mulf %325, %270 : vector<8x128xf32>
    %335 = arith.mulf %319, %327 : vector<8x128xf32>
    %336 = arith.addf %334, %335 : vector<8x128xf32>
    %337 = math.tanh %336 : vector<8x128xf32>
    %338 = arith.mulf %333, %337 : vector<8x128xf32>
    %339 = arith.index_cast %c4_i32 : i32 to index
    %c0_79 = arith.constant 0 : index
    %c0_80 = arith.constant 0 : index
    %340 = vector.load %arg6[%339, %c0_79, %c0_80] : memref<8x8x128xf32, #tpu.memory_space<vmem>>, vector<1x8x128xf32>
    %341 = vector.shape_cast %340 : vector<1x8x128xf32> to vector<8x128xf32>
    %342 = vector.shape_cast %338 : vector<8x128xf32> to vector<1x8x128xf32>
    tpu.vector_store %arg6[%339, %c0_79, %c0_80], %342 {strides = array<i32>} : memref<8x8x128xf32, #tpu.memory_space<vmem>>, vector<1x8x128xf32>,
    %c5_i32 = arith.constant 5 : i32
    %343 = arith.index_cast %c5_i32 : i32 to index
    %c0_81 = arith.constant 0 : index
    %c0_82 = arith.constant 0 : index
    %344 = vector.load %arg1[%343, %c0_81, %c0_82] : memref<8x8x512xf32, #tpu.memory_space<vmem>>, vector<1x8x512xf32>
    %345 = vector.shape_cast %344 : vector<1x8x512xf32> to vector<8x512xf32>
    %346 = arith.truncf %307 : vector<8x128xf32> to vector<8x128xbf16>
    %cst_83 = arith.constant dense<0.000000e+00> : vector<8x512xf32>
    %347 = tpu.matmul %346, %3, %cst_83 {dimension_numbers = #tpu.dot_dimension_numbers<[1], [0], [0], [1], [0, 0, 1, 1], [], []>} : vector<8x128xbf16>, vector<128x512xbf16>, vector<8x512xf32> -> vector<8x512xf32>
    %348 = arith.addf %345, %347 : vector<8x512xf32>
    %349 = vector.extract_strided_slice %348 {offsets = [0, 0], sizes = [8, 128], strides = [1, 1]} : vector<8x512xf32> to vector<8x128xf32>
    %350 = arith.negf %349 : vector<8x128xf32>
    %351 = math.exp %350 : vector<8x128xf32>
    %cst_84 = arith.constant 1.000000e+00 : f32
    %352 = vector.broadcast %cst_84 : f32 to vector<8x128xf32>
    %353 = arith.addf %352, %351 : vector<8x128xf32>
    %354 = arith.divf %352, %353 : vector<8x128xf32>
    %355 = vector.extract_strided_slice %348 {offsets = [0, 128], sizes = [8, 128], strides = [1, 1]} : vector<8x512xf32> to vector<8x128xf32>
    %356 = arith.negf %355 : vector<8x128xf32>
    %357 = math.exp %356 : vector<8x128xf32>
    %cst_85 = arith.constant 1.000000e+00 : f32
    %358 = vector.broadcast %cst_85 : f32 to vector<8x128xf32>
    %359 = arith.addf %358, %357 : vector<8x128xf32>
    %360 = arith.divf %358, %359 : vector<8x128xf32>
    %361 = vector.extract_strided_slice %348 {offsets = [0, 256], sizes = [8, 128], strides = [1, 1]} : vector<8x512xf32> to vector<8x128xf32>
    %362 = math.tanh %361 : vector<8x128xf32>
    %363 = vector.extract_strided_slice %348 {offsets = [0, 384], sizes = [8, 128], strides = [1, 1]} : vector<8x512xf32> to vector<8x128xf32>
    %364 = arith.negf %363 : vector<8x128xf32>
    %365 = math.exp %364 : vector<8x128xf32>
    %cst_86 = arith.constant 1.000000e+00 : f32
    %366 = vector.broadcast %cst_86 : f32 to vector<8x128xf32>
    %367 = arith.addf %366, %365 : vector<8x128xf32>
    %368 = arith.divf %366, %367 : vector<8x128xf32>
    %369 = arith.mulf %360, %305 : vector<8x128xf32>
    %370 = arith.mulf %354, %362 : vector<8x128xf32>
    %371 = arith.addf %369, %370 : vector<8x128xf32>
    %372 = math.tanh %371 : vector<8x128xf32>
    %373 = arith.mulf %368, %372 : vector<8x128xf32>
    %374 = arith.truncf %373 : vector<8x128xf32> to vector<8x128xbf16>
    %cst_87 = arith.constant dense<0.000000e+00> : vector<8x512xf32>
    %375 = tpu.matmul %374, %4, %cst_87 {dimension_numbers = #tpu.dot_dimension_numbers<[1], [0], [0], [1], [0, 0, 1, 1], [], []>} : vector<8x128xbf16>, vector<128x512xbf16>, vector<8x512xf32> -> vector<8x512xf32>
    %376 = arith.truncf %338 : vector<8x128xf32> to vector<8x128xbf16>
    %cst_88 = arith.constant dense<0.000000e+00> : vector<8x512xf32>
    %377 = tpu.matmul %376, %5, %cst_88 {dimension_numbers = #tpu.dot_dimension_numbers<[1], [0], [0], [1], [0, 0, 1, 1], [], []>} : vector<8x128xbf16>, vector<128x512xbf16>, vector<8x512xf32> -> vector<8x512xf32>
    %378 = arith.addf %375, %377 : vector<8x512xf32>
    %379 = arith.addf %378, %8 : vector<8x512xf32>
    %380 = vector.extract_strided_slice %379 {offsets = [0, 0], sizes = [8, 128], strides = [1, 1]} : vector<8x512xf32> to vector<8x128xf32>
    %381 = arith.negf %380 : vector<8x128xf32>
    %382 = math.exp %381 : vector<8x128xf32>
    %cst_89 = arith.constant 1.000000e+00 : f32
    %383 = vector.broadcast %cst_89 : f32 to vector<8x128xf32>
    %384 = arith.addf %383, %382 : vector<8x128xf32>
    %385 = arith.divf %383, %384 : vector<8x128xf32>
    %386 = vector.extract_strided_slice %379 {offsets = [0, 128], sizes = [8, 128], strides = [1, 1]} : vector<8x512xf32> to vector<8x128xf32>
    %387 = arith.negf %386 : vector<8x128xf32>
    %388 = math.exp %387 : vector<8x128xf32>
    %cst_90 = arith.constant 1.000000e+00 : f32
    %389 = vector.broadcast %cst_90 : f32 to vector<8x128xf32>
    %390 = arith.addf %389, %388 : vector<8x128xf32>
    %391 = arith.divf %389, %390 : vector<8x128xf32>
    %392 = vector.extract_strided_slice %379 {offsets = [0, 256], sizes = [8, 128], strides = [1, 1]} : vector<8x512xf32> to vector<8x128xf32>
    %393 = math.tanh %392 : vector<8x128xf32>
    %394 = vector.extract_strided_slice %379 {offsets = [0, 384], sizes = [8, 128], strides = [1, 1]} : vector<8x512xf32> to vector<8x128xf32>
    %395 = arith.negf %394 : vector<8x128xf32>
    %396 = math.exp %395 : vector<8x128xf32>
    %cst_91 = arith.constant 1.000000e+00 : f32
    %397 = vector.broadcast %cst_91 : f32 to vector<8x128xf32>
    %398 = arith.addf %397, %396 : vector<8x128xf32>
    %399 = arith.divf %397, %398 : vector<8x128xf32>
    %400 = arith.mulf %391, %336 : vector<8x128xf32>
    %401 = arith.mulf %385, %393 : vector<8x128xf32>
    %402 = arith.addf %400, %401 : vector<8x128xf32>
    %403 = math.tanh %402 : vector<8x128xf32>
    %404 = arith.mulf %399, %403 : vector<8x128xf32>
    %405 = arith.index_cast %c5_i32 : i32 to index
    %c0_92 = arith.constant 0 : index
    %c0_93 = arith.constant 0 : index
    %406 = vector.load %arg6[%405, %c0_92, %c0_93] : memref<8x8x128xf32, #tpu.memory_space<vmem>>, vector<1x8x128xf32>
    %407 = vector.shape_cast %406 : vector<1x8x128xf32> to vector<8x128xf32>
    %408 = vector.shape_cast %404 : vector<8x128xf32> to vector<1x8x128xf32>
    tpu.vector_store %arg6[%405, %c0_92, %c0_93], %408 {strides = array<i32>} : memref<8x8x128xf32, #tpu.memory_space<vmem>>, vector<1x8x128xf32>,
    %c6_i32 = arith.constant 6 : i32
    %409 = arith.index_cast %c6_i32 : i32 to index
    %c0_94 = arith.constant 0 : index
    %c0_95 = arith.constant 0 : index
    %410 = vector.load %arg1[%409, %c0_94, %c0_95] : memref<8x8x512xf32, #tpu.memory_space<vmem>>, vector<1x8x512xf32>
    %411 = vector.shape_cast %410 : vector<1x8x512xf32> to vector<8x512xf32>
    %412 = arith.truncf %373 : vector<8x128xf32> to vector<8x128xbf16>
    %cst_96 = arith.constant dense<0.000000e+00> : vector<8x512xf32>
    %413 = tpu.matmul %412, %3, %cst_96 {dimension_numbers = #tpu.dot_dimension_numbers<[1], [0], [0], [1], [0, 0, 1, 1], [], []>} : vector<8x128xbf16>, vector<128x512xbf16>, vector<8x512xf32> -> vector<8x512xf32>
    %414 = arith.addf %411, %413 : vector<8x512xf32>
    %415 = vector.extract_strided_slice %414 {offsets = [0, 0], sizes = [8, 128], strides = [1, 1]} : vector<8x512xf32> to vector<8x128xf32>
    %416 = arith.negf %415 : vector<8x128xf32>
    %417 = math.exp %416 : vector<8x128xf32>
    %cst_97 = arith.constant 1.000000e+00 : f32
    %418 = vector.broadcast %cst_97 : f32 to vector<8x128xf32>
    %419 = arith.addf %418, %417 : vector<8x128xf32>
    %420 = arith.divf %418, %419 : vector<8x128xf32>
    %421 = vector.extract_strided_slice %414 {offsets = [0, 128], sizes = [8, 128], strides = [1, 1]} : vector<8x512xf32> to vector<8x128xf32>
    %422 = arith.negf %421 : vector<8x128xf32>
    %423 = math.exp %422 : vector<8x128xf32>
    %cst_98 = arith.constant 1.000000e+00 : f32
    %424 = vector.broadcast %cst_98 : f32 to vector<8x128xf32>
    %425 = arith.addf %424, %423 : vector<8x128xf32>
    %426 = arith.divf %424, %425 : vector<8x128xf32>
    %427 = vector.extract_strided_slice %414 {offsets = [0, 256], sizes = [8, 128], strides = [1, 1]} : vector<8x512xf32> to vector<8x128xf32>
    %428 = math.tanh %427 : vector<8x128xf32>
    %429 = vector.extract_strided_slice %414 {offsets = [0, 384], sizes = [8, 128], strides = [1, 1]} : vector<8x512xf32> to vector<8x128xf32>
    %430 = arith.negf %429 : vector<8x128xf32>
    %431 = math.exp %430 : vector<8x128xf32>
    %cst_99 = arith.constant 1.000000e+00 : f32
    %432 = vector.broadcast %cst_99 : f32 to vector<8x128xf32>
    %433 = arith.addf %432, %431 : vector<8x128xf32>
    %434 = arith.divf %432, %433 : vector<8x128xf32>
    %435 = arith.mulf %426, %371 : vector<8x128xf32>
    %436 = arith.mulf %420, %428 : vector<8x128xf32>
    %437 = arith.addf %435, %436 : vector<8x128xf32>
    %438 = math.tanh %437 : vector<8x128xf32>
    %439 = arith.mulf %434, %438 : vector<8x128xf32>
    %440 = arith.truncf %439 : vector<8x128xf32> to vector<8x128xbf16>
    %cst_100 = arith.constant dense<0.000000e+00> : vector<8x512xf32>
    %441 = tpu.matmul %440, %4, %cst_100 {dimension_numbers = #tpu.dot_dimension_numbers<[1], [0], [0], [1], [0, 0, 1, 1], [], []>} : vector<8x128xbf16>, vector<128x512xbf16>, vector<8x512xf32> -> vector<8x512xf32>
    %442 = arith.truncf %404 : vector<8x128xf32> to vector<8x128xbf16>
    %cst_101 = arith.constant dense<0.000000e+00> : vector<8x512xf32>
    %443 = tpu.matmul %442, %5, %cst_101 {dimension_numbers = #tpu.dot_dimension_numbers<[1], [0], [0], [1], [0, 0, 1, 1], [], []>} : vector<8x128xbf16>, vector<128x512xbf16>, vector<8x512xf32> -> vector<8x512xf32>
    %444 = arith.addf %441, %443 : vector<8x512xf32>
    %445 = arith.addf %444, %8 : vector<8x512xf32>
    %446 = vector.extract_strided_slice %445 {offsets = [0, 0], sizes = [8, 128], strides = [1, 1]} : vector<8x512xf32> to vector<8x128xf32>
    %447 = arith.negf %446 : vector<8x128xf32>
    %448 = math.exp %447 : vector<8x128xf32>
    %cst_102 = arith.constant 1.000000e+00 : f32
    %449 = vector.broadcast %cst_102 : f32 to vector<8x128xf32>
    %450 = arith.addf %449, %448 : vector<8x128xf32>
    %451 = arith.divf %449, %450 : vector<8x128xf32>
    %452 = vector.extract_strided_slice %445 {offsets = [0, 128], sizes = [8, 128], strides = [1, 1]} : vector<8x512xf32> to vector<8x128xf32>
    %453 = arith.negf %452 : vector<8x128xf32>
    %454 = math.exp %453 : vector<8x128xf32>
    %cst_103 = arith.constant 1.000000e+00 : f32
    %455 = vector.broadcast %cst_103 : f32 to vector<8x128xf32>
    %456 = arith.addf %455, %454 : vector<8x128xf32>
    %457 = arith.divf %455, %456 : vector<8x128xf32>
    %458 = vector.extract_strided_slice %445 {offsets = [0, 256], sizes = [8, 128], strides = [1, 1]} : vector<8x512xf32> to vector<8x128xf32>
    %459 = math.tanh %458 : vector<8x128xf32>
    %460 = vector.extract_strided_slice %445 {offsets = [0, 384], sizes = [8, 128], strides = [1, 1]} : vector<8x512xf32> to vector<8x128xf32>
    %461 = arith.negf %460 : vector<8x128xf32>
    %462 = math.exp %461 : vector<8x128xf32>
    %cst_104 = arith.constant 1.000000e+00 : f32
    %463 = vector.broadcast %cst_104 : f32 to vector<8x128xf32>
    %464 = arith.addf %463, %462 : vector<8x128xf32>
    %465 = arith.divf %463, %464 : vector<8x128xf32>
    %466 = arith.mulf %457, %402 : vector<8x128xf32>
    %467 = arith.mulf %451, %459 : vector<8x128xf32>
    %468 = arith.addf %466, %467 : vector<8x128xf32>
    %469 = math.tanh %468 : vector<8x128xf32>
    %470 = arith.mulf %465, %469 : vector<8x128xf32>
    %471 = arith.index_cast %c6_i32 : i32 to index
    %c0_105 = arith.constant 0 : index
    %c0_106 = arith.constant 0 : index
    %472 = vector.load %arg6[%471, %c0_105, %c0_106] : memref<8x8x128xf32, #tpu.memory_space<vmem>>, vector<1x8x128xf32>
    %473 = vector.shape_cast %472 : vector<1x8x128xf32> to vector<8x128xf32>
    %474 = vector.shape_cast %470 : vector<8x128xf32> to vector<1x8x128xf32>
    tpu.vector_store %arg6[%471, %c0_105, %c0_106], %474 {strides = array<i32>} : memref<8x8x128xf32, #tpu.memory_space<vmem>>, vector<1x8x128xf32>,
    %c7_i32 = arith.constant 7 : i32
    %475 = arith.index_cast %c7_i32 : i32 to index
    %c0_107 = arith.constant 0 : index
    %c0_108 = arith.constant 0 : index
    %476 = vector.load %arg1[%475, %c0_107, %c0_108] : memref<8x8x512xf32, #tpu.memory_space<vmem>>, vector<1x8x512xf32>
    %477 = vector.shape_cast %476 : vector<1x8x512xf32> to vector<8x512xf32>
    %478 = arith.truncf %439 : vector<8x128xf32> to vector<8x128xbf16>
    %cst_109 = arith.constant dense<0.000000e+00> : vector<8x512xf32>
    %479 = tpu.matmul %478, %3, %cst_109 {dimension_numbers = #tpu.dot_dimension_numbers<[1], [0], [0], [1], [0, 0, 1, 1], [], []>} : vector<8x128xbf16>, vector<128x512xbf16>, vector<8x512xf32> -> vector<8x512xf32>
    %480 = arith.addf %477, %479 : vector<8x512xf32>
    %481 = vector.extract_strided_slice %480 {offsets = [0, 0], sizes = [8, 128], strides = [1, 1]} : vector<8x512xf32> to vector<8x128xf32>
    %482 = arith.negf %481 : vector<8x128xf32>
    %483 = math.exp %482 : vector<8x128xf32>
    %cst_110 = arith.constant 1.000000e+00 : f32
    %484 = vector.broadcast %cst_110 : f32 to vector<8x128xf32>
    %485 = arith.addf %484, %483 : vector<8x128xf32>
    %486 = arith.divf %484, %485 : vector<8x128xf32>
    %487 = vector.extract_strided_slice %480 {offsets = [0, 128], sizes = [8, 128], strides = [1, 1]} : vector<8x512xf32> to vector<8x128xf32>
    %488 = arith.negf %487 : vector<8x128xf32>
    %489 = math.exp %488 : vector<8x128xf32>
    %cst_111 = arith.constant 1.000000e+00 : f32
    %490 = vector.broadcast %cst_111 : f32 to vector<8x128xf32>
    %491 = arith.addf %490, %489 : vector<8x128xf32>
    %492 = arith.divf %490, %491 : vector<8x128xf32>
    %493 = vector.extract_strided_slice %480 {offsets = [0, 256], sizes = [8, 128], strides = [1, 1]} : vector<8x512xf32> to vector<8x128xf32>
    %494 = math.tanh %493 : vector<8x128xf32>
    %495 = vector.extract_strided_slice %480 {offsets = [0, 384], sizes = [8, 128], strides = [1, 1]} : vector<8x512xf32> to vector<8x128xf32>
    %496 = arith.negf %495 : vector<8x128xf32>
    %497 = math.exp %496 : vector<8x128xf32>
    %cst_112 = arith.constant 1.000000e+00 : f32
    %498 = vector.broadcast %cst_112 : f32 to vector<8x128xf32>
    %499 = arith.addf %498, %497 : vector<8x128xf32>
    %500 = arith.divf %498, %499 : vector<8x128xf32>
    %501 = arith.mulf %492, %437 : vector<8x128xf32>
    %502 = arith.mulf %486, %494 : vector<8x128xf32>
    %503 = arith.addf %501, %502 : vector<8x128xf32>
    %504 = math.tanh %503 : vector<8x128xf32>
    %505 = arith.mulf %500, %504 : vector<8x128xf32>
    %506 = arith.truncf %505 : vector<8x128xf32> to vector<8x128xbf16>
    %cst_113 = arith.constant dense<0.000000e+00> : vector<8x512xf32>
    %507 = tpu.matmul %506, %4, %cst_113 {dimension_numbers = #tpu.dot_dimension_numbers<[1], [0], [0], [1], [0, 0, 1, 1], [], []>} : vector<8x128xbf16>, vector<128x512xbf16>, vector<8x512xf32> -> vector<8x512xf32>
    %508 = arith.truncf %470 : vector<8x128xf32> to vector<8x128xbf16>
    %cst_114 = arith.constant dense<0.000000e+00> : vector<8x512xf32>
    %509 = tpu.matmul %508, %5, %cst_114 {dimension_numbers = #tpu.dot_dimension_numbers<[1], [0], [0], [1], [0, 0, 1, 1], [], []>} : vector<8x128xbf16>, vector<128x512xbf16>, vector<8x512xf32> -> vector<8x512xf32>
    %510 = arith.addf %507, %509 : vector<8x512xf32>
    %511 = arith.addf %510, %8 : vector<8x512xf32>
    %512 = vector.extract_strided_slice %511 {offsets = [0, 0], sizes = [8, 128], strides = [1, 1]} : vector<8x512xf32> to vector<8x128xf32>
    %513 = arith.negf %512 : vector<8x128xf32>
    %514 = math.exp %513 : vector<8x128xf32>
    %cst_115 = arith.constant 1.000000e+00 : f32
    %515 = vector.broadcast %cst_115 : f32 to vector<8x128xf32>
    %516 = arith.addf %515, %514 : vector<8x128xf32>
    %517 = arith.divf %515, %516 : vector<8x128xf32>
    %518 = vector.extract_strided_slice %511 {offsets = [0, 128], sizes = [8, 128], strides = [1, 1]} : vector<8x512xf32> to vector<8x128xf32>
    %519 = arith.negf %518 : vector<8x128xf32>
    %520 = math.exp %519 : vector<8x128xf32>
    %cst_116 = arith.constant 1.000000e+00 : f32
    %521 = vector.broadcast %cst_116 : f32 to vector<8x128xf32>
    %522 = arith.addf %521, %520 : vector<8x128xf32>
    %523 = arith.divf %521, %522 : vector<8x128xf32>
    %524 = vector.extract_strided_slice %511 {offsets = [0, 256], sizes = [8, 128], strides = [1, 1]} : vector<8x512xf32> to vector<8x128xf32>
    %525 = math.tanh %524 : vector<8x128xf32>
    %526 = vector.extract_strided_slice %511 {offsets = [0, 384], sizes = [8, 128], strides = [1, 1]} : vector<8x512xf32> to vector<8x128xf32>
    %527 = arith.negf %526 : vector<8x128xf32>
    %528 = math.exp %527 : vector<8x128xf32>
    %cst_117 = arith.constant 1.000000e+00 : f32
    %529 = vector.broadcast %cst_117 : f32 to vector<8x128xf32>
    %530 = arith.addf %529, %528 : vector<8x128xf32>
    %531 = arith.divf %529, %530 : vector<8x128xf32>
    %532 = arith.mulf %523, %468 : vector<8x128xf32>
    %533 = arith.mulf %517, %525 : vector<8x128xf32>
    %534 = arith.addf %532, %533 : vector<8x128xf32>
    %535 = math.tanh %534 : vector<8x128xf32>
    %536 = arith.mulf %531, %535 : vector<8x128xf32>
    %537 = arith.index_cast %c7_i32 : i32 to index
    %c0_118 = arith.constant 0 : index
    %c0_119 = arith.constant 0 : index
    %538 = vector.load %arg6[%537, %c0_118, %c0_119] : memref<8x8x128xf32, #tpu.memory_space<vmem>>, vector<1x8x128xf32>
    %539 = vector.shape_cast %538 : vector<1x8x128xf32> to vector<8x128xf32>
    %540 = vector.shape_cast %536 : vector<8x128xf32> to vector<1x8x128xf32>
    tpu.vector_store %arg6[%537, %c0_118, %c0_119], %540 {strides = array<i32>} : memref<8x8x128xf32, #tpu.memory_space<vmem>>, vector<1x8x128xf32>,
    %c8_i32 = arith.constant 8 : i32
    %c0_120 = arith.constant 0 : index
    %c0_121 = arith.constant 0 : index
    %541 = vector.load %arg7[%c0_120, %c0_121] : memref<8x128xf32, #tpu.memory_space<vmem>>, vector<8x128xf32>
    tpu.vector_store %arg7[%c0_120, %c0_121], %505 {strides = array<i32>} : memref<8x128xf32, #tpu.memory_space<vmem>>, vector<8x128xf32>,
    %c0_122 = arith.constant 0 : index
    %c0_123 = arith.constant 0 : index
    %542 = vector.load %arg8[%c0_122, %c0_123] : memref<8x128xf32, #tpu.memory_space<vmem>>, vector<8x128xf32>
    tpu.vector_store %arg8[%c0_122, %c0_123], %503 {strides = array<i32>} : memref<8x128xf32, #tpu.memory_space<vmem>>, vector<8x128xf32>,
    %c0_124 = arith.constant 0 : index
    %c0_125 = arith.constant 0 : index
    %543 = vector.load %arg9[%c0_124, %c0_125] : memref<8x128xf32, #tpu.memory_space<vmem>>, vector<8x128xf32>
    tpu.vector_store %arg9[%c0_124, %c0_125], %536 {strides = array<i32>} : memref<8x128xf32, #tpu.memory_space<vmem>>, vector<8x128xf32>,
    %c0_126 = arith.constant 0 : index
    %c0_127 = arith.constant 0 : index
    %544 = vector.load %arg10[%c0_126, %c0_127] : memref<8x128xf32, #tpu.memory_space<vmem>>, vector<8x128xf32>
    tpu.vector_store %arg10[%c0_126, %c0_127], %534 {strides = array<i32>} : memref<8x128xf32, #tpu.memory_space<vmem>>, vector<8x128xf32>,
    return
  }
  func.func @transform_0(%arg0: i32) -> (i32, i32, i32) {
    %c0_i32 = arith.constant 0 : i32
    %c0_i32_0 = arith.constant 0 : i32
    %c0_i32_1 = arith.constant 0 : i32
    return %arg0, %c0_i32, %c0_i32_0 : i32, i32, i32
  }
  func.func @transform_1(%arg0: i32) -> (i32, i32) {
    %c0_i32 = arith.constant 0 : i32
    %c0_i32_0 = arith.constant 0 : i32
    %c0_i32_1 = arith.constant 0 : i32
    return %c0_i32, %c0_i32_0 : i32, i32
  }
  func.func @transform_2(%arg0: i32) -> (i32, i32) {
    %c0_i32 = arith.constant 0 : i32
    %c0_i32_0 = arith.constant 0 : i32
    %c0_i32_1 = arith.constant 0 : i32
    return %c0_i32, %c0_i32_0 : i32, i32
  }
  func.func @transform_3(%arg0: i32) -> (i32, i32) {
    %c0_i32 = arith.constant 0 : i32
    %c0_i32_0 = arith.constant 0 : i32
    %c0_i32_1 = arith.constant 0 : i32
    return %c0_i32, %c0_i32_0 : i32, i32
  }
  func.func @transform_4(%arg0: i32) -> (i32, i32) {
    %c0_i32 = arith.constant 0 : i32
    %c0_i32_0 = arith.constant 0 : i32
    %c0_i32_1 = arith.constant 0 : i32
    return %c0_i32, %c0_i32_0 : i32, i32
  }
  func.func @transform_5(%arg0: i32) -> (i32, i32, i32) {
    %c0_i32 = arith.constant 0 : i32
    %c0_i32_0 = arith.constant 0 : i32
    %c0_i32_1 = arith.constant 0 : i32
    return %arg0, %c0_i32, %c0_i32_0 : i32, i32, i32
  }
}

</mosaic_0001>

<bundles_post_ra>
// kernel: lstm_timeseries_forward.1
= control target key start
LH: loop header
LB: loop body
LE: loop exit
PB: predicated region body
PF: predicated region fallthrough
CT: control target
= control target key end

     0   :  { %s5976_s1 = inlined_call_operand.vmem [shape: bf16[128,512], index: 1, kind: input, shape index: {}]   ;;  %s5977_s3 = inlined_call_operand.vmem [shape: bf16[128,512], index: 3, kind: input, shape index: {}]   ;;  %s5978_s2 = inlined_call_operand.vmem [shape: bf16[128,512], index: 2, kind: input, shape index: {}]   ;;  %s5979_s0 = inlined_call_operand.vmem [shape: f32[8,8,512], index: 0, kind: input, shape index: {}]   ;;  %s5980_s4 = inlined_call_operand.vmem [shape: f32[1,512], index: 4, kind: input, shape index: {}]   ;;  %s5981_s5 = inlined_call_operand.vmem [shape: f32[8,8,128], index: 5, kind: output, shape index: {}]  }
   0x1   :  { %v3131_v0 = vld [vmem:[%s5976_s1 + $0xe0] sm:$0xf]  ;;  %v3514_v1 = vld [vmem:[%s5976_s1 + $0xec] sm:$0xf0]  ;;  %v3512_v2 = vld [vmem:[%s5976_s1 + $0xe4] sm:$0xf] }
   0x2   :  { %v3877_v3 = vor.u32 %v3514_v1, %v3131_v0  ;;  %v3133_v4 = vld [vmem:[%s5976_s1 + $0xf0] sm:$0xf0]  ;;  %v3513_v5 = vld [vmem:[%s5976_s1 + $0xec] sm:$0xf]  ;;  %v3141_v6 = vld [vmem:[%s5976_s1 + $0xf8] sm:$0xf0] }
   0x3   :  { %v3888_v7 = vor.u32 %v3512_v2, %v3133_v4  ;;  %v3890_v8 = vor.u32 %v3513_v5, %v3141_v6  ;;  %v3115_v9 = vld [vmem:[%s5976_s1 + $0xc0] sm:$0xf]  ;;  %v3510_v10 = vld [vmem:[%s5976_s1 + $0xcc] sm:$0xf0]  ;;  %v3508_v11 = vld [vmem:[%s5976_s1 + $0xc4] sm:$0xf] }
   0x4   :  { %303 = vmatpush.bf16.msra.mxu0 %v3877_v3  ;;  %v3902_v12 = vor.u32 %v3510_v10, %v3115_v9  ;;  %v3117_v13 = vld [vmem:[%s5976_s1 + $0xd0] sm:$0xf0]  ;;  %v3509_v14 = vld [vmem:[%s5976_s1 + $0xcc] sm:$0xf]  ;;  %v3125_v15 = vld [vmem:[%s5976_s1 + $0xd8] sm:$0xf0] }
   0x5   :  { %316 = vmatpush.bf16.msra.mxu1 %v3888_v7  ;;  %342 = vmatpush.bf16.msra.mxu3 %v3890_v8  ;;  %v3915_v16 = vor.u32 %v3508_v11, %v3117_v13  ;;  %v3917_v17 = vor.u32 %v3509_v14, %v3125_v15  ;;  %v3139_v18 = vld [vmem:[%s5976_s1 + $0xe8] sm:$0xf]  ;;  %v3515_v19 = vld [vmem:[%s5976_s1 + $0xf4] sm:$0xf0]  ;;  %v3099_v20 = vld [vmem:[%s5976_s1 + $0xa0] sm:$0xf] }
   0x6   :  { %v3928_v21 = vor.u32 %v3515_v19, %v3139_v18  ;;  %v3506_v22 = vld [vmem:[%s5976_s1 + $0xac] sm:$0xf0]  ;;  %v3504_v23 = vld [vmem:[%s5976_s1 + $0xa4] sm:$0xf]  ;;  %v3101_v24 = vld [vmem:[%s5976_s1 + $0xb0] sm:$0xf0] }
   0x7   :  { %v3505_v25 = vld [vmem:[%s5976_s1 + $0xac] sm:$0xf]  ;;  %v3109_v26 = vld [vmem:[%s5976_s1 + $0xb8] sm:$0xf0]  ;;  %v3123_v27 = vld [vmem:[%s5976_s1 + $0xc8] sm:$0xf]  ;;  %v3950_v28 = vor.u32 %v3506_v22, %v3099_v20  ;;  %v3963_v32 = vor.u32 %v3504_v23, %v3101_v24 }
   0x8   :  { %304 = vmatpush.bf16.msra.mxu0 %v3902_v12  ;;  %329 = vmatpush.bf16.msra.mxu2 %v3928_v21  ;;  %v3511_v29 = vld [vmem:[%s5976_s1 + $0xd4] sm:$0xf0]  ;;  %v3083_v30 = vld [vmem:[%s5976_s1 + $0x80] sm:$0xf]  ;;  %v3502_v31 = vld [vmem:[%s5976_s1 + $0x8c] sm:$0xf0]  ;;  %v3965_v33 = vor.u32 %v3505_v25, %v3109_v26 }
   0x9   :  { %317 = vmatpush.bf16.msra.mxu1 %v3915_v16  ;;  %343 = vmatpush.bf16.msra.mxu3 %v3917_v17  ;;  %v3967_v34 = vor.u32 %v3511_v29, %v3123_v27  ;;  %v3500_v35 = vld [vmem:[%s5976_s1 + $0x84] sm:$0xf]  ;;  %v3085_v36 = vld [vmem:[%s5976_s1 + $0x90] sm:$0xf0]  ;;  %v3501_v37 = vld [vmem:[%s5976_s1 + $0x8c] sm:$0xf]  ;;  %v3989_v41 = vor.u32 %v3502_v31, %v3083_v30 }
   0xa   :  { %v3093_v38 = vld [vmem:[%s5976_s1 + $0x98] sm:$0xf0]  ;;  %v3107_v39 = vld [vmem:[%s5976_s1 + $0xa8] sm:$0xf]  ;;  %v3507_v40 = vld [vmem:[%s5976_s1 + $0xb4] sm:$0xf0]  ;;  %v4001_v45 = vor.u32 %v3500_v35, %v3085_v36 }
   0xb   :  { %v3991_v42 = vor.u32 %v3507_v40, %v3107_v39  ;;  %v3067_v43 = vld [vmem:[%s5976_s1 + $0x60] sm:$0xf]  ;;  %v3498_v44 = vld [vmem:[%s5976_s1 + $0x6c] sm:$0xf0]  ;;  %v4003_v46 = vor.u32 %v3501_v37, %v3093_v38  ;;  %v3496_v47 = vld [vmem:[%s5976_s1 + $0x64] sm:$0xf] }
   0xc   :  { %305 = vmatpush.bf16.msra.mxu0 %v3950_v28  ;;  %330 = vmatpush.bf16.msra.mxu2 %v3967_v34  ;;  %v3091_v48 = vld [vmem:[%s5976_s1 + $0x88] sm:$0xf]  ;;  %v3503_v49 = vld [vmem:[%s5976_s1 + $0x94] sm:$0xf0]  ;;  %v3069_v50 = vld [vmem:[%s5976_s1 + $0x70] sm:$0xf0]  ;;  %v4025_v53 = vor.u32 %v3498_v44, %v3067_v43 }
   0xd   :  { %318 = vmatpush.bf16.msra.mxu1 %v3963_v32  ;;  %344 = vmatpush.bf16.msra.mxu3 %v3965_v33  ;;  %6129 = vst [vmem:[#allocation6_spill] sm:$0xff] %v4003_v46  ;;  %v3497_v51 = vld [vmem:[%s5976_s1 + $0x6c] sm:$0xf]  ;;  %v3077_v52 = vld [vmem:[%s5976_s1 + $0x78] sm:$0xf0]  ;;  %v4027_v54 = vor.u32 %v3503_v49, %v3091_v48  ;;  %v4037_v57 = vor.u32 %v3496_v47, %v3069_v50 }
   0xe   :  { %6130 = vst [vmem:[#allocation7_spill] sm:$0xff] %v4025_v53  ;;  %v3051_v55 = vld [vmem:[%s5976_s1 + $0x40] sm:$0xf]  ;;  %v3494_v56 = vld [vmem:[%s5976_s1 + $0x4c] sm:$0xf0]  ;;  %v4039_v58 = vor.u32 %v3497_v51, %v3077_v52 }
   0xf   :  { %6131 = vst [vmem:[#allocation8_spill] sm:$0xff] %v4037_v57  ;;  %v3492_v59 = vld [vmem:[%s5976_s1 + $0x44] sm:$0xf]  ;;  %v3075_v60 = vld [vmem:[%s5976_s1 + $0x68] sm:$0xf]  ;;  %v4061_v1 = vor.u32 %v3494_v56, %v3051_v55 }
  0x10   :  { %306 = vmatpush.bf16.msra.mxu0 %v3989_v41  ;;  %331 = vmatpush.bf16.msra.mxu2 %v3991_v42  ;;  %6132 = vst [vmem:[#allocation9_spill] sm:$0xff] %v4039_v58  ;;  %v3499_v61 = vld [vmem:[%s5976_s1 + $0x74] sm:$0xf0]  ;;  %v3053_v62 = vld [vmem:[%s5976_s1 + $0x50] sm:$0xf0] }
  0x11   :  { %319 = vmatpush.bf16.msra.mxu1 %v4001_v45  ;;  %345 = vmatpush.bf16.msra.mxu3 %v4003_v46  ;;  %v3493_v63 = vld [vmem:[%s5976_s1 + $0x4c] sm:$0xf]  ;;  %v3061_v0 = vld [vmem:[%s5976_s1 + $0x58] sm:$0xf0]  ;;  %v4063_v2 = vor.u32 %v3499_v61, %v3075_v60  ;;  %v3035_v4 = vld [vmem:[%s5976_s1 + $0x20] sm:$0xf]  ;;  %v4073_v6 = vor.u32 %v3492_v59, %v3053_v62 }
  0x12   :  { %v3490_v5 = vld [vmem:[%s5976_s1 + $0x2c] sm:$0xf0]  ;;  %v4075_v9 = vor.u32 %v3493_v63, %v3061_v0  ;;  %v3488_v10 = vld [vmem:[%s5976_s1 + $0x24] sm:$0xf]  ;;  %v3059_v11 = vld [vmem:[%s5976_s1 + $0x48] sm:$0xf] }
  0x13   :  { %6133 = vst [vmem:[#allocation10_spill] sm:$0xff] %v4063_v2  ;;  %v3495_v13 = vld [vmem:[%s5976_s1 + $0x54] sm:$0xf0]  ;;  %v3037_v14 = vld [vmem:[%s5976_s1 + $0x30] sm:$0xf0]  ;;  %v4097_v19 = vor.u32 %v3490_v5, %v3035_v4 }
  0x14   :  { %307 = vmatpush.bf16.msra.mxu0 %v4025_v53  ;;  %332 = vmatpush.bf16.msra.mxu2 %v4027_v54  ;;  %6134 = vst [vmem:[#allocation11_spill] sm:$0xff] %v4073_v6  ;;  %v3489_v15 = vld [vmem:[%s5976_s1 + $0x2c] sm:$0xf]  ;;  %v3045_v18 = vld [vmem:[%s5976_s1 + $0x38] sm:$0xf0]  ;;  %v4099_v20 = vor.u32 %v3495_v13, %v3059_v11  ;;  %v4112_v25 = vor.u32 %v3488_v10, %v3037_v14 }
  0x15   :  { %320 = vmatpush.bf16.msra.mxu1 %v4037_v57  ;;  %346 = vmatpush.bf16.msra.mxu3 %v4039_v58  ;;  %6135 = vst [vmem:[#allocation12_spill] sm:$0xff] %v4075_v9  ;;  %v3019_v22 = vld [vmem:[%s5976_s1] sm:$0xf]  ;;  %v3486_v23 = vld [vmem:[%s5976_s1 + $0xc] sm:$0xf0]  ;;  %v4114_v26 = vor.u32 %v3489_v15, %v3045_v18  ;;  %v5982_v18 = vmov 0.0|0.0  }
  0x16   :  { %6136 = vst [vmem:[#allocation13_spill] sm:$0xff] %v4097_v19  ;;  %v3484_v24 = vld [vmem:[%s5976_s1 + $0x4] sm:$0xf]  ;;  %v3021_v27 = vld [vmem:[%s5976_s1 + $0x10] sm:$0xf0]  ;;  %v4145_v40 = vor.u32 %v3486_v23, %v3019_v22 }
  0x17   :  { %6137 = vst [vmem:[#allocation14_spill] sm:$0xff] %v4099_v20  ;;  %v3043_v29 = vld [vmem:[%s5976_s1 + $0x28] sm:$0xf]  ;;  %v3491_v30 = vld [vmem:[%s5976_s1 + $0x34] sm:$0xf0]  ;;  %v4157_v48 = vor.u32 %v3484_v24, %v3021_v27 }
  0x18   :  { %308 = vmatpush.bf16.msra.mxu0 %v4061_v1  ;;  %333 = vmatpush.bf16.msra.mxu2 %v4063_v2  ;;  %v3485_v31 = vld [vmem:[%s5976_s1 + $0xc] sm:$0xf]  ;;  %v3029_v35 = vld [vmem:[%s5976_s1 + $0x18] sm:$0xf0]  ;;  %v3262_v36 = vld [vmem:[%s5977_s3 + $0xe0] sm:$0xf]  ;;  %v4147_v43 = vor.u32 %v3491_v30, %v3043_v29 }
  0x19   :  { %321 = vmatpush.bf16.msra.mxu1 %v4073_v6  ;;  %347 = vmatpush.bf16.msra.mxu3 %v4075_v9  ;;  %v3578_v37 = vld [vmem:[%s5977_s3 + $0xec] sm:$0xf0]  ;;  %v3576_v38 = vld [vmem:[%s5977_s3 + $0xe4] sm:$0xf]  ;;  %v3264_v39 = vld [vmem:[%s5977_s3 + $0xf0] sm:$0xf0]  ;;  %v4159_v49 = vor.u32 %v3485_v31, %v3029_v35 }
  0x1a   :  { %v3577_v44 = vld [vmem:[%s5977_s3 + $0xec] sm:$0xf]  ;;  %v3272_v47 = vld [vmem:[%s5977_s3 + $0xf8] sm:$0xf0]  ;;  %v3027_v50 = vld [vmem:[%s5976_s1 + $0x8] sm:$0xf]  ;;  %v4167_v52 = vor.u32 %v3578_v37, %v3262_v36  ;;  %v4169_v55 = vor.u32 %v3576_v38, %v3264_v39 }
  0x1b   :  { %v3487_v51 = vld [vmem:[%s5976_s1 + $0x14] sm:$0xf0]  ;;  %v3270_v56 = vld [vmem:[%s5977_s3 + $0xe8] sm:$0xf]  ;;  %v4177_v60 = vor.u32 %v3577_v44, %v3272_v47  ;;  %v3246_v61 = vld [vmem:[%s5977_s3 + $0xc0] sm:$0xf] }
  0x1c   :  { %309 = vmatpush.bf16.msra.mxu0 %v4097_v19  ;;  %334 = vmatpush.bf16.msra.mxu2 %v4099_v20  ;;  %v3579_v59 = vld [vmem:[%s5977_s3 + $0xf4] sm:$0xf0]  ;;  %v3574_v62 = vld [vmem:[%s5977_s3 + $0xcc] sm:$0xf0]  ;;  %v3572_v63 = vld [vmem:[%s5977_s3 + $0xc4] sm:$0xf]  ;;  %v4201_v10 = vor.u32 %v3487_v51, %v3027_v50 }
  0x1d   :  { %322 = vmatpush.bf16.msra.mxu1 %v4112_v25  ;;  %348 = vmatpush.bf16.msra.mxu3 %v4114_v26  ;;  %v3248_v0 = vld [vmem:[%s5977_s3 + $0xd0] sm:$0xf0]  ;;  %v3573_v4 = vld [vmem:[%s5977_s3 + $0xcc] sm:$0xf]  ;;  %v3256_v5 = vld [vmem:[%s5977_s3 + $0xd8] sm:$0xf0]  ;;  %v4205_v11 = vor.u32 %v3579_v59, %v3270_v56  ;;  %v4207_v13 = vor.u32 %v3574_v62, %v3246_v61 }
  0x1e   :  { %v3254_v14 = vld [vmem:[%s5977_s3 + $0xc8] sm:$0xf]  ;;  %v3575_v15 = vld [vmem:[%s5977_s3 + $0xd4] sm:$0xf0]  ;;  %v4217_v22 = vor.u32 %v3572_v63, %v3248_v0  ;;  %v4219_v23 = vor.u32 %v3573_v4, %v3256_v5  ;;  %v3230_v24 = vld [vmem:[%s5977_s3 + $0xa0] sm:$0xf] }
  0x1f   :  { %v3570_v27 = vld [vmem:[%s5977_s3 + $0xac] sm:$0xf0]  ;;  %v3568_v29 = vld [vmem:[%s5977_s3 + $0xa4] sm:$0xf]  ;;  %v3232_v30 = vld [vmem:[%s5977_s3 + $0xb0] sm:$0xf0]  ;;  %v4244_v36 = vor.u32 %v3575_v15, %v3254_v14 }
  0x20   :  { %310 = vmatpush.bf16.msra.mxu0 %v4145_v40  ;;  %335 = vmatpush.bf16.msra.mxu2 %v4147_v43  ;;  %6138 = vst [vmem:[#allocation15_spill] sm:$0xff] %v4217_v22  ;;  %v3569_v31 = vld [vmem:[%s5977_s3 + $0xac] sm:$0xf]  ;;  %v3240_v35 = vld [vmem:[%s5977_s3 + $0xb8] sm:$0xf0]  ;;  %v4246_v37 = vor.u32 %v3570_v27, %v3230_v24  ;;  %v4256_v44 = vor.u32 %v3568_v29, %v3232_v30 }
  0x21   :  { %323 = vmatpush.bf16.msra.mxu1 %v4157_v48  ;;  %349 = vmatpush.bf16.msra.mxu3 %v4159_v49  ;;  %6139 = vst [vmem:[#allocation16_spill] sm:$0xff] %v4219_v23  ;;  %v3238_v38 = vld [vmem:[%s5977_s3 + $0xa8] sm:$0xf]  ;;  %v3571_v39 = vld [vmem:[%s5977_s3 + $0xb4] sm:$0xf0]  ;;  %v4258_v47 = vor.u32 %v3569_v31, %v3240_v35 }
  0x22   :  { %6140 = vst [vmem:[#allocation17_spill] sm:$0xff] %v4244_v36  ;;  %v3214_v50 = vld [vmem:[%s5977_s3 + $0x80] sm:$0xf]  ;;  %v3566_v51 = vld [vmem:[%s5977_s3 + $0x8c] sm:$0xf0]  ;;  %v4281_v63 = vor.u32 %v3571_v39, %v3238_v38 }
  0x23   :  { %311 = vmatmul.bf16.vlgmr.msra.gmra.mxu0 %v5982_v18  ;;  %6141 = vst [vmem:[#allocation18_spill] sm:$0xff] %v4246_v37  ;;  %v3564_v56 = vld [vmem:[%s5977_s3 + $0x84] sm:$0xf]  ;;  %v3216_v59 = vld [vmem:[%s5977_s3 + $0x90] sm:$0xf0]  ;;  %v4283_v0 = vor.u32 %v3566_v51, %v3214_v50 }
  0x24   :  { %584 = vmatpush.bf16.msrb.mxu0 %v4167_v52  ;;  %324 = vmatmul.bf16.vlgmr.msra.gmra.mxu1 %v5982_v18  ;;  %6142 = vst [vmem:[#allocation19_spill] sm:$0xff] %v4256_v44  ;;  %v3565_v61 = vld [vmem:[%s5977_s3 + $0x8c] sm:$0xf]  ;;  %v3224_v62 = vld [vmem:[%s5977_s3 + $0x98] sm:$0xf0]  ;;  %v4293_v14 = vor.u32 %v3564_v56, %v3216_v59 }
  0x25   :  { %597 = vmatpush.bf16.msrb.mxu1 %v4169_v55  ;;  %623 = vmatpush.bf16.msrb.mxu3 %v4177_v60  ;;  %6143 = vst [vmem:[#allocation20_spill] sm:$0xff] %v4258_v47  ;;  %v3222_v4 = vld [vmem:[%s5977_s3 + $0x88] sm:$0xf]  ;;  %v3567_v5 = vld [vmem:[%s5977_s3 + $0x94] sm:$0xf0]  ;;  %v4295_v15 = vor.u32 %v3565_v61, %v3224_v62 }
  0x26   :  { %350 = vmatmul.bf16.vlgmr.msra.gmra.mxu3 %v5982_v18  ;;  %336 = vmatpush.bf16.msra.mxu2 %v4201_v10  ;;  %6144 = vst [vmem:[#allocation21_spill] sm:$0xff] %v4281_v63  ;;  %v3198_v24 = vld [vmem:[%s5977_s3 + $0x60] sm:$0xf]  ;;  %v3562_v27 = vld [vmem:[%s5977_s3 + $0x6c] sm:$0xf0]  ;;  %v4317_v38 = vor.u32 %v3567_v5, %v3222_v4 }
  0x27   :  { %6145 = vst [vmem:[#allocation22_spill] sm:$0xff] %v4283_v0  ;;  %v3560_v29 = vld [vmem:[%s5977_s3 + $0x64] sm:$0xf]  ;;  %v3200_v30 = vld [vmem:[%s5977_s3 + $0x70] sm:$0xf0]  ;;  %v4319_v39 = vor.u32 %v3562_v27, %v3198_v24 }
  0x28   :  { %585 = vmatpush.bf16.msrb.mxu0 %v4207_v13  ;;  %6146 = vst [vmem:[#allocation23_spill] sm:$0xff] %v4293_v14  ;;  %v3561_v31 = vld [vmem:[%s5977_s3 + $0x6c] sm:$0xf]  ;;  %v3208_v35 = vld [vmem:[%s5977_s3 + $0x78] sm:$0xf0]  ;;  %v4329_v56 = vor.u32 %v3560_v29, %v3200_v30 }
  0x29   :  { %598 = vmatpush.bf16.msrb.mxu1 %v4217_v22  ;;  %624 = vmatpush.bf16.msrb.mxu3 %v4219_v23  ;;  %6147 = vst [vmem:[#allocation24_spill] sm:$0xff] %v4295_v15  ;;  %v3206_v50 = vld [vmem:[%s5977_s3 + $0x68] sm:$0xf]  ;;  %v3563_v51 = vld [vmem:[%s5977_s3 + $0x74] sm:$0xf0]  ;;  %v4331_v59 = vor.u32 %v3561_v31, %v3208_v35 }
  0x2a   :  { %610 = vmatpush.bf16.msrb.mxu2 %v4205_v11  ;;  %6148 = vst [vmem:[#allocation25_spill] sm:$0xff] %v4317_v38  ;;  %v3182_v61 = vld [vmem:[%s5977_s3 + $0x40] sm:$0xf]  ;;  %v3558_v62 = vld [vmem:[%s5977_s3 + $0x4c] sm:$0xf0]  ;;  %v4353_v29 = vor.u32 %v3563_v51, %v3206_v50 }
  0x2b   :  { %337 = vmatmul.bf16.vlgmr.msra.gmra.mxu2 %v5982_v18  ;;  %6149 = vst [vmem:[#allocation26_spill] sm:$0xff] %v4319_v39  ;;  %v3556_v4 = vld [vmem:[%s5977_s3 + $0x44] sm:$0xf]  ;;  %v3184_v5 = vld [vmem:[%s5977_s3 + $0x50] sm:$0xf0]  ;;  %v4355_v30 = vor.u32 %v3558_v62, %v3182_v61 }
  0x2c   :  { %586 = vmatpush.bf16.msrb.mxu0 %v4246_v37  ;;  %6150 = vst [vmem:[#allocation27_spill] sm:$0xff] %v4329_v56  ;;  %v3557_v24 = vld [vmem:[%s5977_s3 + $0x4c] sm:$0xf]  ;;  %v3192_v27 = vld [vmem:[%s5977_s3 + $0x58] sm:$0xf0]  ;;  %v4365_v18 = vor.u32 %v3556_v4, %v3184_v5 }
  0x2d   :  { %599 = vmatpush.bf16.msrb.mxu1 %v4256_v44  ;;  %625 = vmatpush.bf16.msrb.mxu3 %v4258_v47  ;;  %6151 = vst [vmem:[#allocation28_spill] sm:$0xff] %v4331_v59  ;;  %v3190_v31 = vld [vmem:[%s5977_s3 + $0x48] sm:$0xf]  ;;  %v3559_v35 = vld [vmem:[%s5977_s3 + $0x54] sm:$0xf0] }
  0x2e   :  { %611 = vmatpush.bf16.msrb.mxu2 %v4244_v36  ;;  %6152 = vst [vmem:[#allocation29_spill] sm:$0xff] %v4353_v29  ;;  %v3166_v50 = vld [vmem:[%s5977_s3 + $0x20] sm:$0xf]  ;;  %v3554_v51 = vld [vmem:[%s5977_s3 + $0x2c] sm:$0xf0] }
  0x2f   :  { %6153 = vst [vmem:[#allocation30_spill] sm:$0xff] %v4355_v30  ;;  %v3552_v61 = vld [vmem:[%s5977_s3 + $0x24] sm:$0xf]  ;;  %v3168_v62 = vld [vmem:[%s5977_s3 + $0x30] sm:$0xf0] }
  0x30   :  { %587 = vmatpush.bf16.msrb.mxu0 %v4283_v0  ;;  %6154 = vst [vmem:[#allocation31_spill] sm:$0xff] %v4365_v18  ;;  %v3553_v4 = vld [vmem:[%s5977_s3 + $0x2c] sm:$0xf]  ;;  %v3176_v5 = vld [vmem:[%s5977_s3 + $0x38] sm:$0xf0] }
  0x31   :  { %600 = vmatpush.bf16.msrb.mxu1 %v4293_v14  ;;  %626 = vmatpush.bf16.msrb.mxu3 %v4295_v15  ;;  %v4367_v15 = vor.u32 %v3557_v24, %v3192_v27  ;;  %v4389_v24 = vor.u32 %v3559_v35, %v3190_v31  ;;  %v4391_v27 = vor.u32 %v3554_v51, %v3166_v50  ;;  %v3150_v35 = vld [vmem:[%s5977_s3] sm:$0xf]  ;;  %v3550_v50 = vld [vmem:[%s5977_s3 + $0xc] sm:$0xf0]  ;;  %v3548_v51 = vld [vmem:[%s5977_s3 + $0x4] sm:$0xf] }
  0x32   :  { %612 = vmatpush.bf16.msrb.mxu2 %v4281_v63 }
  0x33   :  { %6155 = vst [vmem:[#allocation32_spill] sm:$0xff] %v4367_v15 }
  0x34   :  { %588 = vmatpush.bf16.msrb.mxu0 %v4319_v39  ;;  %6156 = vst [vmem:[#allocation33_spill] sm:$0xff] %v4389_v24  ;;  %v4403_v39 = vor.u32 %v3553_v4, %v3176_v5 }
  0x35   :  { %601 = vmatpush.bf16.msrb.mxu1 %v4329_v56  ;;  %627 = vmatpush.bf16.msrb.mxu3 %v4331_v59  ;;  %6157 = vst [vmem:[#allocation34_spill] sm:$0xff] %v4391_v27  ;;  %v4395_v59 = vor.u32 %v3552_v61, %v3168_v62  ;;  %v3174_v56 = vld [vmem:[%s5977_s3 + $0x28] sm:$0xf]  ;;  %v3551_v62 = vld [vmem:[%s5977_s3 + $0x14] sm:$0xf0] }
  0x36   :  { %613 = vmatpush.bf16.msrb.mxu2 %v4317_v38  ;;  %6159 = vst [vmem:[#allocation36_spill] sm:$0xff] %v4403_v39  ;;  %v3158_v61 = vld [vmem:[%s5977_s3 + $0x8] sm:$0xf] }
  0x37   :  { %6158 = vst [vmem:[#allocation35_spill] sm:$0xff] %v4395_v59  ;;  %v4434_v5 = vor.u32 %v3551_v62, %v3158_v61  ;;  %v3392_v62 = vld [vmem:[%s5978_s2 + $0xf0] sm:$0xf0] }
  0x38   :  { %589 = vmatpush.bf16.msrb.mxu0 %v4355_v30 }
  0x39   :  { %602 = vmatpush.bf16.msrb.mxu1 %v4365_v18  ;;  %628 = vmatpush.bf16.msrb.mxu3 %v4367_v15  ;;  %6163 = vst [vmem:[#allocation40_spill] sm:$0xff] %v4434_v5 }
  0x3a   :  { %614 = vmatpush.bf16.msrb.mxu2 %v4353_v29  ;;  %v3555_v29 = vld [vmem:[%s5977_s3 + $0x34] sm:$0xf0] }
  0x3b   :  { %v4407_v31 = vor.u32 %v3555_v29, %v3174_v56  ;;  %v4421_v56 = vor.u32 %v3550_v50, %v3150_v35  ;;  %v3152_v29 = vld [vmem:[%s5977_s3 + $0x10] sm:$0xf0]  ;;  %v3549_v35 = vld [vmem:[%s5977_s3 + $0xc] sm:$0xf]  ;;  %v3160_v50 = vld [vmem:[%s5977_s3 + $0x18] sm:$0xf0] }
  0x3c   :  { %590 = vmatpush.bf16.msrb.mxu0 %v4391_v27  ;;  %v4432_v4 = vor.u32 %v3548_v51, %v3152_v29  ;;  %v3546_v51 = vld [vmem:[%s5978_s2 + $0xec] sm:$0xf0]  ;;  %v3544_v29 = vld [vmem:[%s5978_s2 + $0xe4] sm:$0xf]  ;;  %v3368_v27 = vld [vmem:[%s5978_s2 + $0xb8] sm:$0xf0] }
  0x3d   :  { %6160 = vst [vmem:[#allocation37_spill] sm:$0xff] %v4407_v31  ;;  %603 = vmatpush.bf16.msrb.mxu1 %v4395_v59  ;;  %629 = vmatpush.bf16.msrb.mxu3 %v4403_v39  ;;  %v4443_v39 = vor.u32 %v3549_v35, %v3160_v50  ;;  %v3398_v35 = vld [vmem:[%s5978_s2 + $0xe8] sm:$0xf]  ;;  %v3547_v50 = vld [vmem:[%s5978_s2 + $0xf4] sm:$0xf0] }
  0x3e   :  { %615 = vmatpush.bf16.msrb.mxu2 %v4389_v24  ;;  %6161 = vst [vmem:[#allocation38_spill] sm:$0xff] %v4421_v56 }
  0x3f   :  { %6162 = vst [vmem:[#allocation39_spill] sm:$0xff] %v4432_v4 }
  0x40   :  { %591 = vmatpush.bf16.msrb.mxu0 %v4421_v56  ;;  %6164 = vst [vmem:[#allocation41_spill] sm:$0xff] %v4443_v39  ;;  %v4468_v56 = vor.u32 %v3544_v29, %v3392_v62  ;;  %v3542_v29 = vld [vmem:[%s5978_s2 + $0xcc] sm:$0xf0]  ;;  %v3540_v62 = vld [vmem:[%s5978_s2 + $0xc4] sm:$0xf] }
  0x41   :  { %604 = vmatpush.bf16.msrb.mxu1 %v4432_v4  ;;  %630 = vmatpush.bf16.msrb.mxu3 %v4443_v39  ;;  %v4470_v4 = vor.u32 %v3547_v50, %v3398_v35  ;;  %v3376_v35 = vld [vmem:[%s5978_s2 + $0xd0] sm:$0xf0]  ;;  %v3541_v39 = vld [vmem:[%s5978_s2 + $0xcc] sm:$0xf] }
  0x42   :  { %616 = vmatpush.bf16.msrb.mxu2 %v4407_v31  ;;  %v3390_v31 = vld [vmem:[%s5978_s2 + $0xe0] sm:$0xf]  ;;  %6166 = vst [vmem:[#allocation43_spill] sm:$0xff] %v4468_v56 }
  0x43   :  { %v4456_v61 = vor.u32 %v3546_v51, %v3390_v31  ;;  %6167 = vst [vmem:[#allocation44_spill] sm:$0xff] %v4470_v4  ;;  %v3545_v31 = vld [vmem:[%s5978_s2 + $0xec] sm:$0xf]  ;;  %v3400_v51 = vld [vmem:[%s5978_s2 + $0xf8] sm:$0xf0] }
  0x44   :  { %v4482_v59 = vor.u32 %v3545_v31, %v3400_v51  ;;  %v4497_v31 = vor.u32 %v3540_v62, %v3376_v35  ;;  %v3382_v51 = vld [vmem:[%s5978_s2 + $0xc8] sm:$0xf]  ;;  %v3358_v35 = vld [vmem:[%s5978_s2 + $0xa0] sm:$0xf] }
  0x45   :  { %6165 = vst [vmem:[#allocation42_spill] sm:$0xff] %v4456_v61  ;;  %796 = vmatpush.bf16.msra.mxu0 %v4456_v61  ;;  %809 = vmatpush.bf16.msra.mxu1 %v4468_v56  ;;  %v3543_v61 = vld [vmem:[%s5978_s2 + $0xd4] sm:$0xf0] }
  0x46   :  { %617 = vmatpush.bf16.msrb.mxu2 %v4434_v5  ;;  %v3374_v5 = vld [vmem:[%s5978_s2 + $0xc0] sm:$0xf]  ;;  %6168 = vst [vmem:[#allocation45_spill] sm:$0xff] %v4482_v59  ;;  %835 = vmatpush.bf16.msra.mxu3 %v4482_v59  ;;  %v4509_v56 = vor.u32 %v3543_v61, %v3382_v51  ;;  %v3536_v61 = vld [vmem:[%s5978_s2 + $0xa4] sm:$0xf] }
  0x47   :  { %v4495_v50 = vor.u32 %v3542_v29, %v3374_v5  ;;  %6170 = vst [vmem:[#allocation47_spill] sm:$0xff] %v4497_v31  ;;  %v3384_v5 = vld [vmem:[%s5978_s2 + $0xd8] sm:$0xf0]  ;;  %v6172_v29 = vmov 0.0|0.0   ;;  %v3360_v51 = vld [vmem:[%s5978_s2 + $0xb0] sm:$0xf0] }
  0x48   :  { %6171 = vst [vmem:[#allocation48_spill] sm:$0xff] %v4509_v56  ;;  %592 = vmatmul.bf16.vlgmr.msrb.gmra.mxu0 %v6172_v29  ;;  %v4515_v62 = vor.u32 %v3541_v39, %v3384_v5  ;;  %605 = vmatmul.bf16.vlgmr.msrb.gmra.mxu1 %v6172_v29  ;;  %v3366_v5 = vld [vmem:[%s5978_s2 + $0xa8] sm:$0xf]  ;;  %v3539_v59 = vld [vmem:[%s5978_s2 + $0xb4] sm:$0xf0] }
  0x49   :  { %6169 = vst [vmem:[#allocation46_spill] sm:$0xff] %v4495_v50  ;;  %631 = vmatmul.bf16.vlgmr.msrb.gmra.mxu3 %v6172_v29  ;;  %797 = vmatpush.bf16.msra.mxu0 %v4495_v50  ;;  %v3537_v50 = vld [vmem:[%s5978_s2 + $0xac] sm:$0xf] }
  0x4a   :  { %822 = vmatpush.bf16.msra.mxu2 %v4470_v4  ;;  %6173 = vst [vmem:[#allocation49_spill] sm:$0xff] %v4515_v62  ;;  %v3538_v4 = vld [vmem:[%s5978_s2 + $0xac] sm:$0xf0]  ;;  %810 = vmatpush.bf16.msra.mxu1 %v4497_v31  ;;  %v4554_v15 = vor.u32 %v3537_v50, %v3368_v27  ;;  %v3344_v50 = vld [vmem:[%s5978_s2 + $0x90] sm:$0xf0] }
  0x4b   :  { %v4529_v39 = vor.u32 %v3538_v4, %v3358_v35  ;;  %618 = vmatmul.bf16.vlgmr.msrb.gmra.mxu2 %v6172_v29  ;;  %v4543_v4 = vor.u32 %v3536_v61, %v3360_v51  ;;  %v4545_v35 = vor.u32 %v3539_v59, %v3366_v5  ;;  %836 = vmatpush.bf16.msra.mxu3 %v4515_v62  ;;  %v3342_v29 = vld [vmem:[%s5978_s2 + $0x80] sm:$0xf]  ;;  %v3534_v59 = vld [vmem:[%s5978_s2 + $0x8c] sm:$0xf0]  ;;  %v3532_v61 = vld [vmem:[%s5978_s2 + $0x84] sm:$0xf] }
  0x4c   :  { %6177 = vst [vmem:[#allocation53_spill] sm:$0xff] %v4554_v15  ;;  %v4568_v27 = vor.u32 %v3534_v59, %v3342_v29  ;;  %v3350_v51 = vld [vmem:[%s5978_s2 + $0x88] sm:$0xf]  ;;  %v3535_v5 = vld [vmem:[%s5978_s2 + $0x94] sm:$0xf0] }
  0x4d   :  { %6174 = vst [vmem:[#allocation50_spill] sm:$0xff] %v4529_v39  ;;  %798 = vmatpush.bf16.msra.mxu0 %v4529_v39  ;;  %v4580_v39 = vor.u32 %v3532_v61, %v3344_v50  ;;  %v3533_v29 = vld [vmem:[%s5978_s2 + $0x8c] sm:$0xf]  ;;  %v3352_v59 = vld [vmem:[%s5978_s2 + $0x98] sm:$0xf0] }
  0x4e   :  { %823 = vmatpush.bf16.msra.mxu2 %v4509_v56  ;;  %6175 = vst [vmem:[#allocation51_spill] sm:$0xff] %v4543_v4  ;;  %811 = vmatpush.bf16.msra.mxu1 %v4543_v4  ;;  %v4582_v4 = vor.u32 %v3535_v5, %v3350_v51  ;;  %v3530_v61 = vld [vmem:[%s5978_s2 + $0x6c] sm:$0xf0]  ;;  %v3528_v50 = vld [vmem:[%s5978_s2 + $0x64] sm:$0xf] }
  0x4f   :  { %6176 = vst [vmem:[#allocation52_spill] sm:$0xff] %v4545_v35  ;;  %837 = vmatpush.bf16.msra.mxu3 %v4554_v15  ;;  %v3326_v15 = vld [vmem:[%s5978_s2 + $0x60] sm:$0xf]  ;;  %v3328_v5 = vld [vmem:[%s5978_s2 + $0x70] sm:$0xf0] }
  0x50   :  { %6178 = vst [vmem:[#allocation54_spill] sm:$0xff] %v4568_v27  ;;  %v4604_v51 = vor.u32 %v3530_v61, %v3326_v15  ;;  %v3529_v15 = vld [vmem:[%s5978_s2 + $0x6c] sm:$0xf]  ;;  %v3336_v61 = vld [vmem:[%s5978_s2 + $0x78] sm:$0xf0] }
  0x51   :  { %6179 = vst [vmem:[#allocation55_spill] sm:$0xff] %v4580_v39  ;;  %799 = vmatpush.bf16.msra.mxu0 %v4568_v27  ;;  %v4616_v27 = vor.u32 %v3528_v50, %v3328_v5  ;;  %v3526_v50 = vld [vmem:[%s5978_s2 + $0x4c] sm:$0xf0]  ;;  %v3524_v5 = vld [vmem:[%s5978_s2 + $0x44] sm:$0xf] }
  0x52   :  { %824 = vmatpush.bf16.msra.mxu2 %v4545_v35  ;;  %6180 = vst [vmem:[#allocation56_spill] sm:$0xff] %v4582_v4  ;;  %v4590_v35 = vor.u32 %v3533_v29, %v3352_v59  ;;  %812 = vmatpush.bf16.msra.mxu1 %v4580_v39  ;;  %v3334_v29 = vld [vmem:[%s5978_s2 + $0x68] sm:$0xf]  ;;  %v3531_v59 = vld [vmem:[%s5978_s2 + $0x74] sm:$0xf0] }
  0x53   :  { %6182 = vst [vmem:[#allocation58_spill] sm:$0xff] %v4604_v51  ;;  %v4618_v39 = vor.u32 %v3531_v59, %v3334_v29  ;;  %v3312_v59 = vld [vmem:[%s5978_s2 + $0x50] sm:$0xf0] }
  0x54   :  { %6181 = vst [vmem:[#allocation57_spill] sm:$0xff] %v4590_v35  ;;  %838 = vmatpush.bf16.msra.mxu3 %v4590_v35  ;;  %v3310_v35 = vld [vmem:[%s5978_s2 + $0x40] sm:$0xf] }
  0x55   :  { %6183 = vst [vmem:[#allocation59_spill] sm:$0xff] %v4616_v27  ;;  %800 = vmatpush.bf16.msra.mxu0 %v4604_v51  ;;  %v4640_v29 = vor.u32 %v3526_v50, %v3310_v35  ;;  %v3525_v35 = vld [vmem:[%s5978_s2 + $0x4c] sm:$0xf]  ;;  %v3320_v50 = vld [vmem:[%s5978_s2 + $0x58] sm:$0xf0] }
  0x56   :  { %825 = vmatpush.bf16.msra.mxu2 %v4582_v4  ;;  %6184 = vst [vmem:[#allocation60_spill] sm:$0xff] %v4618_v39  ;;  %v4626_v4 = vor.u32 %v3529_v15, %v3336_v61  ;;  %813 = vmatpush.bf16.msra.mxu1 %v4616_v27  ;;  %v3318_v15 = vld [vmem:[%s5978_s2 + $0x48] sm:$0xf]  ;;  %v4649_v61 = vor.u32 %v3524_v5, %v3312_v59  ;;  %v3527_v27 = vld [vmem:[%s5978_s2 + $0x54] sm:$0xf0] }
  0x57   :  { %6186 = vst [vmem:[#allocation62_spill] sm:$0xff] %v4640_v29  ;;  %v4662_v51 = vor.u32 %v3525_v35, %v3320_v50  ;;  %v3294_v5 = vld [vmem:[%s5978_s2 + $0x20] sm:$0xf]  ;;  %v3522_v59 = vld [vmem:[%s5978_s2 + $0x2c] sm:$0xf0] }
  0x58   :  { %6185 = vst [vmem:[#allocation61_spill] sm:$0xff] %v4626_v4  ;;  %839 = vmatpush.bf16.msra.mxu3 %v4626_v4  ;;  %v3520_v4 = vld [vmem:[%s5978_s2 + $0x24] sm:$0xf]  ;;  %v3302_v35 = vld [vmem:[%s5978_s2 + $0x28] sm:$0xf] }
  0x59   :  { %6187 = vst [vmem:[#allocation63_spill] sm:$0xff] %v4649_v61  ;;  %801 = vmatpush.bf16.msra.mxu0 %v4640_v29  ;;  %v3523_v50 = vld [vmem:[%s5978_s2 + $0x34] sm:$0xf0] }
  0x5a   :  { %826 = vmatpush.bf16.msra.mxu2 %v4618_v39  ;;  %v4660_v39 = vor.u32 %v3527_v27, %v3318_v15  ;;  %6189 = vst [vmem:[#allocation65_spill] sm:$0xff] %v4662_v51  ;;  %814 = vmatpush.bf16.msra.mxu1 %v4649_v61  ;;  %v4676_v27 = vor.u32 %v3522_v59, %v3294_v5  ;;  %v3296_v15 = vld [vmem:[%s5978_s2 + $0x30] sm:$0xf0]  ;;  %v3521_v5 = vld [vmem:[%s5978_s2 + $0x2c] sm:$0xf] }
  0x5b   :  { %v4688_v29 = vor.u32 %v3520_v4, %v3296_v15  ;;  %v4690_v61 = vor.u32 %v3523_v50, %v3302_v35  ;;  %v3304_v59 = vld [vmem:[%s5978_s2 + $0x38] sm:$0xf0]  ;;  %v3278_v4 = vld [vmem:[%s5978_s2] sm:$0xf]  ;;  %v3518_v15 = vld [vmem:[%s5978_s2 + $0xc] sm:$0xf0] }
  0x5c   :  { %6188 = vst [vmem:[#allocation64_spill] sm:$0xff] %v4660_v39  ;;  %840 = vmatpush.bf16.msra.mxu3 %v4662_v51  ;;  %v4701_v62 = vor.u32 %v3521_v5, %v3304_v59  ;;  %v3516_v35 = vld [vmem:[%s5978_s2 + $0x4] sm:$0xf]  ;;  %v4715_v50 = vor.u32 %v3518_v15, %v3278_v4  ;;  %v3280_v5 = vld [vmem:[%s5978_s2 + $0x10] sm:$0xf0] }
  0x5d   :  { %6190 = vst [vmem:[#allocation66_spill] sm:$0xff] %v4676_v27  ;;  %802 = vmatpush.bf16.msra.mxu0 %v4676_v27  ;;  %v3286_v59 = vld [vmem:[%s5978_s2 + $0x8] sm:$0xf]  ;;  %v3519_v27 = vld [vmem:[%s5978_s2 + $0x14] sm:$0xf0]  ;;  %v4730_v4 = vor.u32 %v3516_v35, %v3280_v5 }
  0x5e   :  { %827 = vmatpush.bf16.msra.mxu2 %v4660_v39  ;;  %6191 = vst [vmem:[#allocation67_spill] sm:$0xff] %v4688_v29  ;;  %v138_v39 = vld [vmem:[%s5979_s0] sm:$0xff]  ;;  %815 = vmatpush.bf16.msra.mxu1 %v4688_v29  ;;  %v139_v29 = vld [vmem:[%s5979_s0 + $0x8] sm:$0xff]  ;;  %v4732_v15 = vor.u32 %v3519_v27, %v3286_v59  ;;  %v3288_v51 = vld [vmem:[%s5978_s2 + $0x18] sm:$0xf0] }
  0x5f   :  { %6192 = vst [vmem:[#allocation68_spill] sm:$0xff] %v4690_v61 }
  0x60   :  { %6193 = vst [vmem:[#allocation69_spill] sm:$0xff] %v4701_v62  ;;  %841 = vmatpush.bf16.msra.mxu3 %v4701_v62 }
  0x61   :  { %6194 = vst [vmem:[#allocation70_spill] sm:$0xff] %v4715_v50  ;;  %803 = vmatpush.bf16.msra.mxu0 %v4715_v50 }
  0x62   :  { %828 = vmatpush.bf16.msra.mxu2 %v4690_v61  ;;  %6195 = vst [vmem:[#allocation71_spill] sm:$0xff] %v4730_v4  ;;  %v3517_v61 = vld [vmem:[%s5978_s2 + $0xc] sm:$0xf]  ;;  %816 = vmatpush.bf16.msra.mxu1 %v4730_v4 }
  0x63   :  { %6196 = vst [vmem:[#allocation72_spill] sm:$0xff] %v4732_v15  ;;  %v4740_v31 = vor.u32 %v3517_v61, %v3288_v51 }
  0x65   :  { %6197 = vst [vmem:[#allocation73_spill] sm:$0xff] %v4740_v31  ;;  %842 = vmatpush.bf16.msra.mxu3 %v4740_v31  ;;  %921 = vmatpush.bf16.msrb.mxu0 %v3877_v3 }
  0x66   :  { %829 = vmatpush.bf16.msra.mxu2 %v4732_v15  ;;  %934 = vmatpush.bf16.msrb.mxu1 %v3888_v7 }
  0x69   :  { %960 = vmatpush.bf16.msrb.mxu3 %v3890_v8  ;;  %922 = vmatpush.bf16.msrb.mxu0 %v3902_v12 }
  0x6a   :  { %947 = vmatpush.bf16.msrb.mxu2 %v3928_v21  ;;  %935 = vmatpush.bf16.msrb.mxu1 %v3915_v16 }
  0x6d   :  { %961 = vmatpush.bf16.msrb.mxu3 %v3917_v17  ;;  %923 = vmatpush.bf16.msrb.mxu0 %v3950_v28 }
  0x6e   :  { %948 = vmatpush.bf16.msrb.mxu2 %v3967_v34  ;;  %936 = vmatpush.bf16.msrb.mxu1 %v3963_v32 }
  0x71   :  { %962 = vmatpush.bf16.msrb.mxu3 %v3965_v33  ;;  %924 = vmatpush.bf16.msrb.mxu0 %v3989_v41 }
  0x72   :  { %949 = vmatpush.bf16.msrb.mxu2 %v3991_v42  ;;  %937 = vmatpush.bf16.msrb.mxu1 %v4001_v45 }
  0x75   :  { %963 = vmatpush.bf16.msrb.mxu3 %v4003_v46  ;;  %925 = vmatpush.bf16.msrb.mxu0 %v4025_v53 }
  0x76   :  { %950 = vmatpush.bf16.msrb.mxu2 %v4027_v54  ;;  %938 = vmatpush.bf16.msrb.mxu1 %v4037_v57 }
  0x79   :  { %964 = vmatpush.bf16.msrb.mxu3 %v4039_v58  ;;  %926 = vmatpush.bf16.msrb.mxu0 %v4061_v1 }
  0x7a   :  { %951 = vmatpush.bf16.msrb.mxu2 %v4063_v2  ;;  %939 = vmatpush.bf16.msrb.mxu1 %v4073_v6 }
  0x7d   :  { %965 = vmatpush.bf16.msrb.mxu3 %v4075_v9  ;;  %927 = vmatpush.bf16.msrb.mxu0 %v4097_v19 }
  0x7e   :  { %952 = vmatpush.bf16.msrb.mxu2 %v4099_v20  ;;  %940 = vmatpush.bf16.msrb.mxu1 %v4112_v25 }
  0x81   :  { %966 = vmatpush.bf16.msrb.mxu3 %v4114_v26  ;;  %928 = vmatpush.bf16.msrb.mxu0 %v4145_v40 }
  0x82   :  { %953 = vmatpush.bf16.msrb.mxu2 %v4147_v43  ;;  %941 = vmatpush.bf16.msrb.mxu1 %v4157_v48 }
  0x85   :  { %967 = vmatpush.bf16.msrb.mxu3 %v4159_v49 }
  0x86   :  { %954 = vmatpush.bf16.msrb.mxu2 %v4201_v10 }
  0xa0   :  { %v312_v56 = vpop.f32.mrf.mxu0 }
  0xa1   :  { %v355_v24 = vadd.f32 %v312_v56, %v138_v39  ;;  %v325_v18 = vpop.f32.mrf.mxu1  ;;  %v141_v56 = vld [vmem:[%s5979_s0 + $0x18] sm:$0xff] }
  0xa2   :  { %v356_v62 = vadd.f32 %v325_v18, %v139_v29 }
  0xa3   :  { %v3145_v27 = vmul.f32 -1.442695, %v355_v24 }
  0xa4   :  { %v3146_v35 = vmul.f32 -1.442695, %v356_v62 }
  0xa5   :  { %3581 = vpow2.f32 %v3145_v27 }
  0xa6   :  { %3583 = vpow2.f32 %v3146_v35  ;;  %v140_v35 = vld [vmem:[%s5979_s0 + $0x10] sm:$0xff] }
  0xa8   :  { %v314_v39 = vpop.f32.mrf.mxu0 }
  0xa9   :  { %v351_v18 = vpop.f32.mrf.mxu3  ;;  %v327_v62 = vpop.f32.mrf.mxu1 }
  0xaa   :  { %v358_v24 = vadd.f32 %v351_v18, %v141_v56 }
  0xab   :  { %v3582_v29 = vpop.eup %3581 }
  0xac   :  { %v3147_v51 = vmul.f32 -1.442695, %v358_v24  ;;  %v3584_v5 = vpop.eup %3583  ;;  %v362_v59 = vadd.f32 1.0, %v3582_v29 }
  0xad   :  { %v381_v27 = vadd.f32 1.0, %v3584_v5 }
  0xae   :  { %v338_v61 = vpop.f32.mrf.mxu2  ;;  %3585 = vpow2.f32 %v3147_v51  ;;  %v372_v2 = vand.u32 2147483647, %v362_v59  ;;  %vm368_vm2 = vweird.f32 %v362_v59 }
  0xaf   :  { %3587 = vrcp.f32 %v362_v59  ;;  %v357_v24 = vadd.f32 %v338_v61, %v140_v35  ;;  %v374_v35 = vand.u32 2147483648, %v362_v59  ;;  %v391_v58 = vand.u32 2147483647, %v381_v27 }
  0xb0   :  { %3589 = vrcp.f32 %v381_v27  ;;  %vm387_vm3 = vweird.f32 %v381_v27  ;;  %vm373_vm5 = vcmp.eq.f32.partialorder %v372_v2, 8.507059e+37 }
  0xb1   :  { %v353_v56 = vpop.f32.mrf.mxu3  ;;  %v375_v20 = vor.u32 1.1754944e-38, %v374_v35  ;;  %vm392_vm7 = vcmp.eq.f32.partialorder %v391_v58, 8.507059e+37 }
  0xb4   :  { %v3586_v18 = vpop.eup %3585 }
  0xb5   :  { %v4768_v39 = vadd.f32 1.0, %v3586_v18  ;;  %v3588_v51 = vpop.eup %3587  ;;  %v393_v18 = vand.u32 2147483648, %v381_v27 }
  0xb6   :  { %v340_v62 = vpop.f32.mrf.mxu2  ;;  %v3590_v29 = vpop.eup %3589  ;;  %v364_v5 = vmul.f32 %v3588_v51, %v362_v59  ;;  %vm369_vm0 = vweird.f32 %v3588_v51 }
  0xb7   :  { %3591 = vrcp.f32 %v4768_v39  ;;  %v383_v56 = vmul.f32 %v3590_v29, %v381_v27  ;;  %vm388_vm1 = vweird.f32 %v3590_v29  ;;  %vm370_vm4 = vmor %vm368_vm2, %vm369_vm0  ;;  %vm407_vm9 = vweird.f32 %v4768_v39 }
  0xb8   :  { %3593 = vtanh.f32 %v357_v24  ;;  %v365_v46 = vsub.f32 1.0, %v364_v5  ;;  %vm389_vm6 = vmor %vm387_vm3, %vm388_vm1  ;;  %v411_v58 = vand.u32 2147483647, %v4768_v39 }
  0xb9   :  { %v384_v61 = vsub.f32 1.0, %v383_v56 }
  0xba   :  { %v366_v62 = vmul.f32 %v3588_v51, %v365_v46  ;;  %v394_v46 = vor.u32 1.1754944e-38, %v393_v18  ;;  %vm412_vm11 = vcmp.eq.f32.partialorder %v411_v58, 8.507059e+37  ;;  %v6211_v58 = vld [vmem:[#allocation39_spill] sm:$0xff] }
  0xbb   :  { %v385_v57 = vmul.f32 %v3590_v29, %v384_v61 }
  0xbc   :  { %v367_v24 = vadd.f32 %v3588_v51, %v366_v62 }
  0xbd   :  { %v3592_v53 = vpop.eup %3591  ;;  %v386_v6 = vadd.f32 %v3590_v29, %v385_v57 }
  0xbe   :  { %v3594_v5 = vpop.eup %3593  ;;  %v403_v56 = vmul.f32 %v3592_v53, %v4768_v39  ;;  %v371_v61 = vsel %vm370_vm4, %v3588_v51, %v367_v24  ;;  %vm408_vm8 = vweird.f32 %v3592_v53 }
  0xbf   :  { %v376_v62 = vsel %vm373_vm5, %v375_v20, %v371_v61  ;;  %v390_v19 = vsel %vm389_vm6, %v3590_v29, %v386_v6  ;;  %v413_v20 = vand.u32 2147483648, %v4768_v39  ;;  %vm409_vm10 = vmor %vm407_vm9, %vm408_vm8  ;;  %v6200_v39 = vld [vmem:[#allocation27_spill] sm:$0xff] }
  0xc0   :  { %v404_v59 = vsub.f32 1.0, %v403_v56  ;;  %v395_v27 = vsel %vm392_vm7, %v394_v46, %v390_v19  ;;  %v418_v9 = vmul.f32 %v3594_v5, %v376_v62  ;;  %v6201_v56 = vld [vmem:[#allocation29_spill] sm:$0xff]  ;;  %v6202_v46 = vld [vmem:[#allocation28_spill] sm:$0xff]  ;;  %v6203_v61 = vld [vmem:[#allocation31_spill] sm:$0xff] }
  0xc1   :  { %v417_v35 = vmul.f32 0.0, %v395_v27  ;;  %v414_v19 = vor.u32 1.1754944e-38, %v413_v20  ;;  %v6205_v62 = vld [vmem:[#allocation32_spill] sm:$0xff]  ;;  %v6206_v27 = vld [vmem:[#allocation34_spill] sm:$0xff] }
  0xc2   :  { %v405_v57 = vmul.f32 %v3592_v53, %v404_v59  ;;  %v6204_v59 = vld [vmem:[#allocation33_spill] sm:$0xff]  ;;  %v6210_v20 = vld [vmem:[#allocation38_spill] sm:$0xff] }
  0xc3   :  { %v4789_v2 = vadd.f32 %v418_v9, %v417_v35  ;;  %v6199_v9 = vld [vmem:[#allocation26_spill] sm:$0xff]  ;;  %v6208_v35 = vld [vmem:[#allocation37_spill] sm:$0xff] }
  0xc4   :  { %v406_v51 = vadd.f32 %v3592_v53, %v405_v57  ;;  %v6207_v57 = vld [vmem:[#allocation35_spill] sm:$0xff] }
  0xc5   :  { %3595 = vtanh.f32 %v4789_v2 }
  0xc6   :  { %v410_v6 = vsel %vm409_vm10, %v3592_v53, %v406_v51  ;;  %v6198_v53 = vld [vmem:[#allocation24_spill] sm:$0xff] }
  0xc7   :  { %v415_v18 = vsel %vm412_vm11, %v414_v19, %v410_v6  ;;  %v6209_v51 = vld [vmem:[#allocation36_spill] sm:$0xff]  ;;  %v6213_v19 = vld [vmem:[#allocation41_spill] sm:$0xff] }
  0xc8   :  { %v6212_v6 = vld [vmem:[#allocation40_spill] sm:$0xff] }
  0xcb   :  { %v3596_v29 = vpop.eup %3595 }
  0xcc   :  { %v421_v24 = vmul.f32 %v3596_v29, %v415_v18  ;;  %v6214_v29 = vld [vmem:[#allocation42_spill] sm:$0xff]  ;;  %v6215_v18 = vld [vmem:[#allocation43_spill] sm:$0xff] }
  0xce   :  { %v422_v5 = vpack.c.bf16 %v421_v24, %v421_v24  ;;  %v6216_v24 = vld [vmem:[#allocation44_spill] sm:$0xff] }
  0xd0   :  { %804 = vmatmul.bf16.vlgmr.msra.gmra.mxu0 %v422_v5  ;;  %817 = vmatmul.bf16.vlgmr.msra.gmra.mxu1 %v422_v5 }
  0xd1   :  { %830 = vmatmul.bf16.vlgmr.msra.gmra.mxu2 %v422_v5  ;;  %843 = vmatmul.bf16.vlgmr.msra.gmra.mxu3 %v422_v5 }
  0xd2   :  { %1042 = vmatpush.bf16.msra.mxu0 %v4167_v52  ;;  %1055 = vmatpush.bf16.msra.mxu1 %v4169_v55 }
  0xd3   :  { %1068 = vmatpush.bf16.msra.mxu2 %v4205_v11  ;;  %1081 = vmatpush.bf16.msra.mxu3 %v4177_v60 }
  0xd6   :  { %1043 = vmatpush.bf16.msra.mxu0 %v4207_v13  ;;  %1056 = vmatpush.bf16.msra.mxu1 %v4217_v22 }
  0xd7   :  { %1069 = vmatpush.bf16.msra.mxu2 %v4244_v36  ;;  %1082 = vmatpush.bf16.msra.mxu3 %v4219_v23 }
  0xda   :  { %1044 = vmatpush.bf16.msra.mxu0 %v4246_v37  ;;  %1057 = vmatpush.bf16.msra.mxu1 %v4256_v44 }
  0xdb   :  { %1070 = vmatpush.bf16.msra.mxu2 %v4281_v63  ;;  %1083 = vmatpush.bf16.msra.mxu3 %v4258_v47 }
  0xde   :  { %1045 = vmatpush.bf16.msra.mxu0 %v4283_v0  ;;  %1058 = vmatpush.bf16.msra.mxu1 %v4293_v14 }
  0xdf   :  { %1071 = vmatpush.bf16.msra.mxu2 %v4317_v38  ;;  %1084 = vmatpush.bf16.msra.mxu3 %v6198_v53 }
  0xe0   :  { %929 = vmatmul.bf16.vlgmr.msrb.gmra.mxu0 %v422_v5  ;;  %942 = vmatmul.bf16.vlgmr.msrb.gmra.mxu1 %v422_v5 }
  0xe1   :  { %955 = vmatmul.bf16.vlgmr.msrb.gmra.mxu2 %v422_v5  ;;  %968 = vmatmul.bf16.vlgmr.msrb.gmra.mxu3 %v422_v5  ;;  %v6217_v5 = vld [vmem:[#allocation45_spill] sm:$0xff] }
  0xe2   :  { %1046 = vmatpush.bf16.msra.mxu0 %v6199_v9  ;;  %1059 = vmatpush.bf16.msra.mxu1 %v6200_v39 }
  0xe3   :  { %1072 = vmatpush.bf16.msra.mxu2 %v6201_v56  ;;  %1085 = vmatpush.bf16.msra.mxu3 %v6202_v46 }
  0xe6   :  { %1047 = vmatpush.bf16.msra.mxu0 %v4355_v30  ;;  %1060 = vmatpush.bf16.msra.mxu1 %v6203_v61 }
  0xe7   :  { %1073 = vmatpush.bf16.msra.mxu2 %v6204_v59  ;;  %1086 = vmatpush.bf16.msra.mxu3 %v6205_v62 }
  0xea   :  { %1048 = vmatpush.bf16.msra.mxu0 %v6206_v27  ;;  %1061 = vmatpush.bf16.msra.mxu1 %v6207_v57  ;;  %v6218_v57 = vld [vmem:[#allocation46_spill] sm:$0xff] }
  0xeb   :  { %1074 = vmatpush.bf16.msra.mxu2 %v6208_v35  ;;  %1087 = vmatpush.bf16.msra.mxu3 %v6209_v51  ;;  %v6219_v35 = vld [vmem:[#allocation47_spill] sm:$0xff]  ;;  %v6220_v51 = vld [vmem:[#allocation48_spill] sm:$0xff]  ;;  %v6238_v27 = vld [vmem:[#allocation66_spill] sm:$0xff] }
  0xee   :  { %1049 = vmatpush.bf16.msra.mxu0 %v6210_v20  ;;  %1062 = vmatpush.bf16.msra.mxu1 %v6211_v58  ;;  %v6221_v20 = vld [vmem:[#allocation49_spill] sm:$0xff]  ;;  %v6222_v58 = vld [vmem:[#allocation50_spill] sm:$0xff] }
  0xef   :  { %1075 = vmatpush.bf16.msra.mxu2 %v6212_v6  ;;  %1088 = vmatpush.bf16.msra.mxu3 %v6213_v19  ;;  %v6223_v6 = vld [vmem:[#allocation51_spill] sm:$0xff]  ;;  %v6224_v19 = vld [vmem:[#allocation52_spill] sm:$0xff] }
  0xf2   :  { %1094 = vmatpush.bf16.msrb.mxu0 %v6214_v29  ;;  %1107 = vmatpush.bf16.msrb.mxu1 %v6215_v18  ;;  %v6225_v29 = vld [vmem:[#allocation53_spill] sm:$0xff]  ;;  %v6226_v18 = vld [vmem:[#allocation54_spill] sm:$0xff] }
  0xf3   :  { %1120 = vmatpush.bf16.msrb.mxu2 %v6216_v24  ;;  %1133 = vmatpush.bf16.msrb.mxu3 %v6217_v5  ;;  %v6227_v24 = vld [vmem:[#allocation55_spill] sm:$0xff]  ;;  %v6228_v5 = vld [vmem:[#allocation56_spill] sm:$0xff] }
  0xf6   :  { %1095 = vmatpush.bf16.msrb.mxu0 %v6218_v57  ;;  %1108 = vmatpush.bf16.msrb.mxu1 %v6219_v35  ;;  %v6229_v57 = vld [vmem:[#allocation57_spill] sm:$0xff]  ;;  %v6230_v35 = vld [vmem:[#allocation58_spill] sm:$0xff] }
  0xf7   :  { %1121 = vmatpush.bf16.msrb.mxu2 %v6220_v51  ;;  %1134 = vmatpush.bf16.msrb.mxu3 %v6221_v20  ;;  %v6231_v51 = vld [vmem:[#allocation59_spill] sm:$0xff]  ;;  %v6232_v20 = vld [vmem:[#allocation60_spill] sm:$0xff] }
  0xfa   :  { %1096 = vmatpush.bf16.msrb.mxu0 %v6222_v58  ;;  %1109 = vmatpush.bf16.msrb.mxu1 %v6223_v6  ;;  %v6233_v58 = vld [vmem:[#allocation61_spill] sm:$0xff]  ;;  %v6234_v6 = vld [vmem:[#allocation62_spill] sm:$0xff] }
  0xfb   :  { %1122 = vmatpush.bf16.msrb.mxu2 %v6224_v19  ;;  %1135 = vmatpush.bf16.msrb.mxu3 %v6225_v29  ;;  %v6235_v19 = vld [vmem:[#allocation63_spill] sm:$0xff]  ;;  %v593_v29 = vpop.f32.mrf.mxu0 }
  0xfe   :  { %1097 = vmatpush.bf16.msrb.mxu0 %v6226_v18  ;;  %1110 = vmatpush.bf16.msrb.mxu1 %v6227_v24  ;;  %v6236_v18 = vld [vmem:[#allocation64_spill] sm:$0xff]  ;;  %v6237_v24 = vld [vmem:[#allocation65_spill] sm:$0xff] }
  0xff   :  { %1123 = vmatpush.bf16.msrb.mxu2 %v6228_v5  ;;  %1136 = vmatpush.bf16.msrb.mxu3 %v6229_v57  ;;  %v606_v5 = vpop.f32.mrf.mxu1  ;;  %v6239_v57 = vld [vmem:[#allocation67_spill] sm:$0xff] }
 0x102   :  { %1098 = vmatpush.bf16.msrb.mxu0 %v6230_v35  ;;  %1111 = vmatpush.bf16.msrb.mxu1 %v6231_v51  ;;  %v6240_v35 = vld [vmem:[#allocation68_spill] sm:$0xff]  ;;  %v6241_v51 = vld [vmem:[#allocation69_spill] sm:$0xff] }
 0x103   :  { %1124 = vmatpush.bf16.msrb.mxu2 %v6232_v20  ;;  %1137 = vmatpush.bf16.msrb.mxu3 %v6233_v58  ;;  %v632_v20 = vpop.f32.mrf.mxu3 }
 0x106   :  { %1099 = vmatpush.bf16.msrb.mxu0 %v6234_v6  ;;  %1112 = vmatpush.bf16.msrb.mxu1 %v6235_v19  ;;  %v595_v19 = vpop.f32.mrf.mxu0  ;;  %v619_v6 = vpop.f32.mrf.mxu2 }
 0x107   :  { %1125 = vmatpush.bf16.msrb.mxu2 %v6236_v18  ;;  %1138 = vmatpush.bf16.msrb.mxu3 %v6237_v24  ;;  %v608_v24 = vpop.f32.mrf.mxu1 }
 0x10a   :  { %1100 = vmatpush.bf16.msrb.mxu0 %v6238_v27  ;;  %1113 = vmatpush.bf16.msrb.mxu1 %v6239_v57 }
 0x10b   :  { %1126 = vmatpush.bf16.msrb.mxu2 %v6240_v35  ;;  %1139 = vmatpush.bf16.msrb.mxu3 %v6241_v51  ;;  %v634_v18 = vpop.f32.mrf.mxu3  ;;  %v124_v35 = vld [vmem:[%s5980_s4] sm:$0xf] }
 0x10c   :  { %v4862_v57 = vperm.slane %v124_v35, 0  ;;  %v4864_v51 = vperm.slane %v124_v35, 1  ;;  %v4868_v18 = vperm.slane %v124_v35, 3 }
 0x10e   :  { %1101 = vmatpush.bf16.msrb.mxu0 %v4715_v50  ;;  %1114 = vmatpush.bf16.msrb.mxu1 %v4730_v4  ;;  %v621_v27 = vpop.f32.mrf.mxu2  ;;  %6242 = vst [vmem:[#allocation74_spill] sm:$0xff] %v4862_v57 }
 0x10f   :  { %1127 = vmatpush.bf16.msrb.mxu2 %v4732_v15  ;;  %1140 = vmatpush.bf16.msrb.mxu3 %v4740_v31  ;;  %6243 = vst [vmem:[#allocation75_spill] sm:$0xff] %v4864_v51 }
 0x110   :  { %6244 = vst [vmem:[#allocation76_spill] sm:$0xff] %v4868_v18 }
 0x14d   :  { %v805_v50 = vpop.f32.mrf.mxu0  ;;  %v818_v58 = vpop.f32.mrf.mxu1 }
 0x14e   :  { %v806_v4 = vadd.f32 %v805_v50, %v593_v29  ;;  %v819_v19 = vadd.f32 %v818_v58, %v606_v5 }
 0x150   :  { %v848_v62 = vadd.f32 %v806_v4, %v4862_v57  ;;  %v849_v15 = vadd.f32 %v819_v19, %v4864_v51 }
 0x152   :  { %v3404_v31 = vmul.f32 -1.442695, %v848_v62  ;;  %v3405_v24 = vmul.f32 -1.442695, %v849_v15 }
 0x154   :  { %3597 = vpow2.f32 %v3404_v31  ;;  %v831_v27 = vpop.f32.mrf.mxu2  ;;  %v844_v59 = vpop.f32.mrf.mxu3  ;;  %v3407_v31 = vld [vmem:[%s5979_s0 + $0x20] sm:$0xff] }
 0x155   :  { %3599 = vpow2.f32 %v3405_v24  ;;  %v845_v61 = vadd.f32 %v844_v59, %v632_v20  ;;  %v807_v30 = vpop.f32.mrf.mxu0  ;;  %v820_v46 = vpop.f32.mrf.mxu1 }
 0x156   :  { %v3408_v30 = vld [vmem:[%s5979_s0 + $0x28] sm:$0xff] }
 0x157   :  { %v851_v56 = vadd.f32 %v845_v61, %v4868_v18 }
 0x159   :  { %v3406_v39 = vmul.f32 -1.442695, %v851_v56  ;;  %v4880_v56 = vperm.slane %v124_v35, 2 }
 0x15a   :  { %v3598_v50 = vpop.eup %3597 }
 0x15b   :  { %v3600_v58 = vpop.eup %3599  ;;  %v855_v29 = vadd.f32 1.0, %v3598_v50  ;;  %3601 = vpow2.f32 %v3406_v39  ;;  %6245 = vst [vmem:[#allocation77_spill] sm:$0xff] %v4880_v56  ;;  %v832_v39 = vadd.f32 %v831_v27, %v619_v6 }
 0x15c   :  { %v4871_v4 = vadd.f32 1.0, %v3600_v58  ;;  %v833_v62 = vpop.f32.mrf.mxu2  ;;  %v846_v15 = vpop.f32.mrf.mxu3 }
 0x15d   :  { %3603 = vrcp.f32 %v855_v29  ;;  %v930_v46 = vpop.f32.mrf.mxu0  ;;  %v943_v61 = vpop.f32.mrf.mxu1  ;;  %v850_v62 = vadd.f32 %v832_v39, %v4880_v56  ;;  %v3410_v15 = vld [vmem:[%s5979_s0 + $0x38] sm:$0xff]  ;;  %v865_v39 = vand.u32 2147483647, %v855_v29  ;;  %vm861_vm13 = vweird.f32 %v855_v29 }
 0x15e   :  { %3605 = vrcp.f32 %v4871_v4  ;;  %v973_v59 = vadd.f32 %v3407_v31, %v930_v46  ;;  %v974_v20 = vadd.f32 %v3408_v30, %v943_v61  ;;  %v884_v53 = vand.u32 2147483647, %v4871_v4 }
 0x15f   :  { %vm880_vm15 = vweird.f32 %v4871_v4  ;;  %vm866_vm1 = vcmp.eq.f32.partialorder %v865_v39, 8.507059e+37 }
 0x160   :  { %v3411_v19 = vmul.f32 -1.442695, %v973_v59  ;;  %v3412_v24 = vmul.f32 -1.442695, %v974_v20  ;;  %v867_v20 = vand.u32 2147483648, %v855_v29  ;;  %vm885_vm3 = vcmp.eq.f32.partialorder %v884_v53, 8.507059e+37 }
 0x161   :  { %v3602_v5 = vpop.eup %3601 }
 0x162   :  { %v4882_v50 = vadd.f32 1.0, %v3602_v5  ;;  %3607 = vpow2.f32 %v3411_v19  ;;  %v886_v5 = vand.u32 2147483648, %v4871_v4 }
 0x163   :  { %v3604_v58 = vpop.eup %3603 }
 0x164   :  { %v3606_v18 = vpop.eup %3605  ;;  %v857_v51 = vmul.f32 %v3604_v58, %v855_v29  ;;  %3609 = vrcp.f32 %v4882_v50  ;;  %v956_v35 = vpop.f32.mrf.mxu2  ;;  %vm862_vm12 = vweird.f32 %v3604_v58  ;;  %v887_v29 = vor.u32 1.1754944e-38, %v886_v5 }
 0x165   :  { %v969_v6 = vpop.f32.mrf.mxu3  ;;  %v876_v27 = vmul.f32 %v3606_v18, %v4871_v4  ;;  %3611 = vpow2.f32 %v3412_v24  ;;  %v932_v31 = vpop.f32.mrf.mxu0  ;;  %vm881_vm14 = vweird.f32 %v3606_v18  ;;  %vm863_vm0 = vmor %vm861_vm13, %vm862_vm12  ;;  %vm900_vm5 = vweird.f32 %v4882_v50 }
 0x166   :  { %v945_v30 = vpop.f32.mrf.mxu1  ;;  %v858_v46 = vsub.f32 1.0, %v857_v51  ;;  %v976_v61 = vadd.f32 %v3410_v15, %v969_v6  ;;  %3613 = vtanh.f32 %v850_v62  ;;  %v868_v6 = vor.u32 1.1754944e-38, %v867_v20  ;;  %vm882_vm2 = vmor %vm880_vm15, %vm881_vm14 }
 0x167   :  { %v877_v59 = vsub.f32 1.0, %v876_v27 }
 0x168   :  { %v859_v19 = vmul.f32 %v3604_v58, %v858_v46  ;;  %v3413_v56 = vmul.f32 -1.442695, %v976_v61  ;;  %v3608_v57 = vpop.eup %3607 }
 0x169   :  { %v878_v9 = vmul.f32 %v3606_v18, %v877_v59  ;;  %v4895_v15 = vadd.f32 1.0, %v3608_v57 }
 0x16a   :  { %v4892_v24 = vpop.eup %3609  ;;  %v860_v51 = vadd.f32 %v3604_v58, %v859_v19  ;;  %3615 = vpow2.f32 %v3413_v56 }
 0x16b   :  { %v3612_v62 = vpop.eup %3611  ;;  %v879_v27 = vadd.f32 %v3606_v18, %v878_v9  ;;  %v896_v31 = vmul.f32 %v4892_v24, %v4882_v50  ;;  %3617 = vrcp.f32 %v4895_v15  ;;  %vm901_vm4 = vweird.f32 %v4892_v24 }
 0x16c   :  { %v864_v30 = vsel %vm863_vm0, %v3604_v58, %v860_v51  ;;  %v4901_v46 = vadd.f32 1.0, %v3612_v62  ;;  %v958_v4 = vpop.f32.mrf.mxu2  ;;  %v3614_v61 = vpop.eup %3613  ;;  %v3409_v58 = vld [vmem:[%s5979_s0 + $0x30] sm:$0xff]  ;;  %vm4921_vm6 = vmor %vm900_vm5, %vm901_vm4  ;;  %vm986_vm8 = vweird.f32 %v4895_v15 }
 0x16d   :  { %v971_v57 = vpop.f32.mrf.mxu3  ;;  %v869_v56 = vsel %vm866_vm1, %v868_v6, %v864_v30  ;;  %v883_v59 = vsel %vm882_vm2, %v3606_v18, %v879_v27  ;;  %v897_v39 = vsub.f32 1.0, %v896_v31  ;;  %v975_v18 = vadd.f32 %v3409_v58, %v956_v35 }
 0x16e   :  { %v888_v20 = vsel %vm885_vm3, %v887_v29, %v883_v59  ;;  %v911_v9 = vmul.f32 %v3614_v61, %v869_v56  ;;  %3619 = vrcp.f32 %v4901_v46  ;;  %v906_v27 = vand.u32 2147483648, %v4882_v50 }
 0x16f   :  { %v910_v19 = vmul.f32 0.0, %v888_v20  ;;  %v898_v51 = vmul.f32 %v4892_v24, %v897_v39  ;;  %v904_v30 = vand.u32 2147483647, %v4882_v50  ;;  %v992_v56 = vand.u32 2147483648, %v4895_v15 }
 0x170   :  { %v3616_v5 = vpop.eup %3615  ;;  %v907_v39 = vor.u32 1.1754944e-38, %v906_v27  ;;  %v990_v50 = vand.u32 2147483647, %v4895_v15  ;;  %v1009_v58 = vand.u32 2147483647, %v4901_v46  ;;  %vm1005_vm11 = vweird.f32 %v4901_v46 }
 0x171   :  { %v4908_v62 = vadd.f32 %v911_v9, %v910_v19  ;;  %v4910_v4 = vadd.f32 1.0, %v3616_v5  ;;  %v3618_v6 = vpop.eup %3617  ;;  %v899_v53 = vadd.f32 %v4892_v24, %v898_v51  ;;  %v1011_v19 = vand.u32 2147483648, %v4901_v46 }
 0x172   :  { %v982_v31 = vmul.f32 %v3618_v6, %v4895_v15  ;;  %vm987_vm7 = vweird.f32 %v3618_v6  ;;  %vm905_vm9 = vcmp.eq.f32.partialorder %v904_v30, 8.507059e+37  ;;  %vm991_vm13 = vcmp.eq.f32.partialorder %v990_v50, 8.507059e+37 }
 0x173   :  { %6246 = vst [vmem:[#allocation78_spill] sm:$0xff] %v4908_v62  ;;  %3621 = vtanh.f32 %v4908_v62  ;;  %v903_v59 = vsel %vm4921_vm6, %v4892_v24, %v899_v53  ;;  %vm988_vm12 = vmor %vm986_vm8, %vm987_vm7  ;;  %v993_v24 = vor.u32 1.1754944e-38, %v992_v56  ;;  %v1012_v62 = vor.u32 1.1754944e-38, %v1011_v19 }
 0x174   :  { %v3620_v29 = vpop.eup %3619  ;;  %3623 = vrcp.f32 %v4910_v4  ;;  %v983_v57 = vsub.f32 1.0, %v982_v31  ;;  %v908_v31 = vsel %vm905_vm9, %v907_v39, %v903_v59  ;;  %vm1010_vm15 = vcmp.eq.f32.partialorder %v1009_v58, 8.507059e+37 }
 0x175   :  { %v1001_v35 = vmul.f32 %v3620_v29, %v4901_v46  ;;  %3625 = vtanh.f32 %v975_v18  ;;  %vm1006_vm10 = vweird.f32 %v3620_v29  ;;  %vm1025_vm1 = vweird.f32 %v4910_v4 }
 0x176   :  { %v984_v9 = vmul.f32 %v3618_v6, %v983_v57  ;;  %vm1007_vm14 = vmor %vm1005_vm11, %vm1006_vm10 }
 0x177   :  { %v1002_v20 = vsub.f32 1.0, %v1001_v35 }
 0x178   :  { %v985_v18 = vadd.f32 %v3618_v6, %v984_v9 }
 0x179   :  { %v3622_v5 = vpop.eup %3621  ;;  %v1003_v51 = vmul.f32 %v3620_v29, %v1002_v20 }
 0x17a   :  { %v3624_v61 = vpop.eup %3623  ;;  %v914_v53 = vmul.f32 %v3622_v5, %v908_v31  ;;  %v989_v27 = vsel %vm988_vm12, %v3618_v6, %v985_v18  ;;  %v6249_v31 = vld [vmem:[#allocation6_spill] sm:$0xff] }
 0x17b   :  { %v1004_v57 = vadd.f32 %v3620_v29, %v1003_v51  ;;  %v1021_v35 = vmul.f32 %v3624_v61, %v4910_v4  ;;  %v3626_v15 = vpop.eup %3625  ;;  %v994_v30 = vsel %vm991_vm13, %v993_v24, %v989_v27  ;;  %vm1026_vm0 = vweird.f32 %v3624_v61  ;;  %v6251_v24 = vld [vmem:[#allocation8_spill] sm:$0xff]  ;;  %v6253_v27 = vld [vmem:[#allocation9_spill] sm:$0xff] }
 0x17c   :  { %915 = vst [vmem:[%s5981_s5] sm:$0xff] %v914_v53  ;;  %v1041_v59 = vpack.c.bf16 %v914_v53, %v914_v53  ;;  %v1036_v46 = vmul.f32 %v3626_v15, %v994_v30  ;;  %vm1027_vm2 = vmor %vm1025_vm1, %vm1026_vm0  ;;  %v6252_v53 = vld [vmem:[#allocation10_spill] sm:$0xff]  ;;  %v6256_v15 = vld [vmem:[#allocation12_spill] sm:$0xff] }
 0x17d   :  { %v1008_v39 = vsel %vm1007_vm14, %v3620_v29, %v1004_v57  ;;  %v1022_v20 = vsub.f32 1.0, %v1021_v35  ;;  %v6254_v57 = vld [vmem:[#allocation11_spill] sm:$0xff]  ;;  %v6255_v35 = vld [vmem:[#allocation14_spill] sm:$0xff]  ;;  %v6257_v30 = vld [vmem:[#allocation13_spill] sm:$0xff] }
 0x17e   :  { %v1013_v56 = vsel %vm1010_vm15, %v1012_v62, %v1008_v39  ;;  %1050 = vmatmul.bf16.vlgmr.msra.gmra.mxu0 %v1041_v59  ;;  %1063 = vmatmul.bf16.vlgmr.msra.gmra.mxu1 %v1041_v59  ;;  %v1031_v62 = vand.u32 2147483648, %v4910_v4  ;;  %v6259_v39 = vld [vmem:[#allocation26_spill] sm:$0xff] }
 0x17f   :  { %v1035_v6 = vmul.f32 %v1013_v56, %v4789_v2  ;;  %v1023_v9 = vmul.f32 %v3624_v61, %v1022_v20  ;;  %1076 = vmatmul.bf16.vlgmr.msra.gmra.mxu2 %v1041_v59  ;;  %1089 = vmatmul.bf16.vlgmr.msra.gmra.mxu3 %v1041_v59  ;;  %v1029_v2 = vand.u32 2147483647, %v4910_v4  ;;  %v6258_v59 = vld [vmem:[#allocation24_spill] sm:$0xff]  ;;  %v6261_v20 = vld [vmem:[#allocation29_spill] sm:$0xff] }
 0x180   :  { %1220 = vmatpush.bf16.msra.mxu0 %v3877_v3  ;;  %1233 = vmatpush.bf16.msra.mxu1 %v3888_v7  ;;  %v1032_v58 = vor.u32 1.1754944e-38, %v1031_v62  ;;  %v6262_v56 = vld [vmem:[#allocation28_spill] sm:$0xff] }
 0x181   :  { %v4941_v50 = vadd.f32 %v1036_v46, %v1035_v6  ;;  %1246 = vmatpush.bf16.msra.mxu2 %v3928_v21  ;;  %1259 = vmatpush.bf16.msra.mxu3 %v3890_v8  ;;  %v1024_v29 = vadd.f32 %v3624_v61, %v1023_v9  ;;  %vm1030_vm3 = vcmp.eq.f32.partialorder %v1029_v2, 8.507059e+37  ;;  %v6260_v46 = vld [vmem:[#allocation27_spill] sm:$0xff]  ;;  %v6263_v6 = vld [vmem:[#allocation30_spill] sm:$0xff]  ;;  %v6266_v62 = vld [vmem:[#allocation32_spill] sm:$0xff] }
 0x182   :  { %v6264_v9 = vld [vmem:[#allocation31_spill] sm:$0xff]  ;;  %v6267_v2 = vld [vmem:[#allocation34_spill] sm:$0xff] }
 0x183   :  { %3627 = vtanh.f32 %v4941_v50  ;;  %v1028_v19 = vsel %vm1027_vm2, %v3624_v61, %v1024_v29  ;;  %v6250_v61 = vld [vmem:[#allocation7_spill] sm:$0xff]  ;;  %v6265_v29 = vld [vmem:[#allocation33_spill] sm:$0xff] }
 0x184   :  { %1221 = vmatpush.bf16.msra.mxu0 %v3902_v12  ;;  %1234 = vmatpush.bf16.msra.mxu1 %v3915_v16  ;;  %v1033_v51 = vsel %vm1030_vm3, %v1032_v58, %v1028_v19  ;;  %v6268_v19 = vld [vmem:[#allocation35_spill] sm:$0xff]  ;;  %v6269_v58 = vld [vmem:[#allocation37_spill] sm:$0xff] }
 0x185   :  { %1247 = vmatpush.bf16.msra.mxu2 %v3967_v34  ;;  %1260 = vmatpush.bf16.msra.mxu3 %v3917_v17 }
 0x188   :  { %1222 = vmatpush.bf16.msra.mxu0 %v3950_v28  ;;  %1235 = vmatpush.bf16.msra.mxu1 %v3963_v32 }
 0x189   :  { %v3628_v5 = vpop.eup %3627  ;;  %1248 = vmatpush.bf16.msra.mxu2 %v3991_v42  ;;  %1261 = vmatpush.bf16.msra.mxu3 %v3965_v33 }
 0x18a   :  { %v1039_v4 = vmul.f32 %v3628_v5, %v1033_v51  ;;  %v6270_v5 = vld [vmem:[#allocation36_spill] sm:$0xff]  ;;  %v6271_v51 = vld [vmem:[#allocation38_spill] sm:$0xff] }
 0x18c   :  { %v1040_v18 = vpack.c.bf16 %v1039_v4, %v1039_v4  ;;  %1223 = vmatpush.bf16.msra.mxu0 %v3989_v41  ;;  %1236 = vmatpush.bf16.msra.mxu1 %v4001_v45  ;;  %v6272_v4 = vld [vmem:[#allocation39_spill] sm:$0xff] }
 0x18d   :  { %1249 = vmatpush.bf16.msra.mxu2 %v4027_v54  ;;  %1262 = vmatpush.bf16.msra.mxu3 %v6249_v31 }
 0x18e   :  { %1102 = vmatmul.bf16.vlgmr.msrb.gmra.mxu0 %v1040_v18  ;;  %1115 = vmatmul.bf16.vlgmr.msrb.gmra.mxu1 %v1040_v18 }
 0x18f   :  { %1128 = vmatmul.bf16.vlgmr.msrb.gmra.mxu2 %v1040_v18  ;;  %1141 = vmatmul.bf16.vlgmr.msrb.gmra.mxu3 %v1040_v18 }
 0x190   :  { %1224 = vmatpush.bf16.msra.mxu0 %v6250_v61  ;;  %1237 = vmatpush.bf16.msra.mxu1 %v6251_v24 }
 0x191   :  { %1250 = vmatpush.bf16.msra.mxu2 %v6252_v53  ;;  %1263 = vmatpush.bf16.msra.mxu3 %v6253_v27 }
 0x194   :  { %1225 = vmatpush.bf16.msra.mxu0 %v4061_v1  ;;  %1238 = vmatpush.bf16.msra.mxu1 %v6254_v57 }
 0x195   :  { %1251 = vmatpush.bf16.msra.mxu2 %v6255_v35  ;;  %1264 = vmatpush.bf16.msra.mxu3 %v6256_v15 }
 0x198   :  { %1226 = vmatpush.bf16.msra.mxu0 %v6257_v30  ;;  %1239 = vmatpush.bf16.msra.mxu1 %v4112_v25 }
 0x199   :  { %1252 = vmatpush.bf16.msra.mxu2 %v4147_v43  ;;  %1265 = vmatpush.bf16.msra.mxu3 %v4114_v26 }
 0x19c   :  { %1227 = vmatpush.bf16.msra.mxu0 %v4145_v40  ;;  %1240 = vmatpush.bf16.msra.mxu1 %v4157_v48 }
 0x19d   :  { %1253 = vmatpush.bf16.msra.mxu2 %v4201_v10  ;;  %1266 = vmatpush.bf16.msra.mxu3 %v4159_v49 }
 0x19f   :  { %1228 = vmatmul.bf16.vlgmr.msra.gmra.mxu0 %v1040_v18  ;;  %1241 = vmatmul.bf16.vlgmr.msra.gmra.mxu1 %v1040_v18 }
 0x1a0   :  { %1341 = vmatpush.bf16.msrb.mxu0 %v4167_v52  ;;  %1354 = vmatpush.bf16.msrb.mxu1 %v4169_v55 }
 0x1a1   :  { %1254 = vmatmul.bf16.vlgmr.msra.gmra.mxu2 %v1040_v18  ;;  %1267 = vmatmul.bf16.vlgmr.msra.gmra.mxu3 %v1040_v18  ;;  %v6273_v18 = vld [vmem:[#allocation42_spill] sm:$0xff] }
 0x1a2   :  { %1367 = vmatpush.bf16.msrb.mxu2 %v4205_v11  ;;  %1380 = vmatpush.bf16.msrb.mxu3 %v4177_v60 }
 0x1a4   :  { %1342 = vmatpush.bf16.msrb.mxu0 %v4207_v13  ;;  %1355 = vmatpush.bf16.msrb.mxu1 %v4217_v22 }
 0x1a6   :  { %1368 = vmatpush.bf16.msrb.mxu2 %v4244_v36  ;;  %1381 = vmatpush.bf16.msrb.mxu3 %v4219_v23 }
 0x1a8   :  { %1343 = vmatpush.bf16.msrb.mxu0 %v4246_v37  ;;  %1356 = vmatpush.bf16.msrb.mxu1 %v4256_v44 }
 0x1aa   :  { %1369 = vmatpush.bf16.msrb.mxu2 %v4281_v63  ;;  %1382 = vmatpush.bf16.msrb.mxu3 %v4258_v47 }
 0x1ac   :  { %1344 = vmatpush.bf16.msrb.mxu0 %v4283_v0  ;;  %1357 = vmatpush.bf16.msrb.mxu1 %v4293_v14  ;;  %v6308_v14 = vld [vmem:[#allocation75_spill] sm:$0xff] }
 0x1ae   :  { %1370 = vmatpush.bf16.msrb.mxu2 %v4317_v38  ;;  %1383 = vmatpush.bf16.msrb.mxu3 %v6258_v59  ;;  %v6307_v38 = vld [vmem:[#allocation74_spill] sm:$0xff] }
 0x1b0   :  { %1345 = vmatpush.bf16.msrb.mxu0 %v6259_v39  ;;  %1358 = vmatpush.bf16.msrb.mxu1 %v6260_v46 }
 0x1b2   :  { %1371 = vmatpush.bf16.msrb.mxu2 %v6261_v20  ;;  %1384 = vmatpush.bf16.msrb.mxu3 %v6262_v56 }
 0x1b4   :  { %1346 = vmatpush.bf16.msrb.mxu0 %v6263_v6  ;;  %1359 = vmatpush.bf16.msrb.mxu1 %v6264_v9  ;;  %v6274_v6 = vld [vmem:[#allocation43_spill] sm:$0xff]  ;;  %v6275_v9 = vld [vmem:[#allocation40_spill] sm:$0xff] }
 0x1b6   :  { %1372 = vmatpush.bf16.msrb.mxu2 %v6265_v29  ;;  %1385 = vmatpush.bf16.msrb.mxu3 %v6266_v62  ;;  %v6276_v29 = vld [vmem:[#allocation41_spill] sm:$0xff]  ;;  %v6277_v62 = vld [vmem:[#allocation44_spill] sm:$0xff] }
 0x1b8   :  { %1347 = vmatpush.bf16.msrb.mxu0 %v6267_v2  ;;  %1360 = vmatpush.bf16.msrb.mxu1 %v6268_v19  ;;  %v6278_v2 = vld [vmem:[#allocation45_spill] sm:$0xff]  ;;  %v6279_v19 = vld [vmem:[#allocation46_spill] sm:$0xff] }
 0x1ba   :  { %1373 = vmatpush.bf16.msrb.mxu2 %v6269_v58  ;;  %1386 = vmatpush.bf16.msrb.mxu3 %v6270_v5  ;;  %v6280_v58 = vld [vmem:[#allocation47_spill] sm:$0xff]  ;;  %v6281_v5 = vld [vmem:[#allocation48_spill] sm:$0xff] }
 0x1bc   :  { %1348 = vmatpush.bf16.msrb.mxu0 %v6271_v51  ;;  %1361 = vmatpush.bf16.msrb.mxu1 %v6272_v4  ;;  %v6282_v51 = vld [vmem:[#allocation49_spill] sm:$0xff]  ;;  %v6283_v4 = vld [vmem:[#allocation50_spill] sm:$0xff] }
 0x1be   :  { %1374 = vmatpush.bf16.msrb.mxu2 %v6275_v9  ;;  %1387 = vmatpush.bf16.msrb.mxu3 %v6276_v29  ;;  %v6286_v9 = vld [vmem:[#allocation53_spill] sm:$0xff]  ;;  %v6287_v29 = vld [vmem:[#allocation54_spill] sm:$0xff] }
 0x1c0   :  { %1393 = vmatpush.bf16.msra.mxu0 %v6273_v18  ;;  %1406 = vmatpush.bf16.msra.mxu1 %v6274_v6  ;;  %v6284_v18 = vld [vmem:[#allocation51_spill] sm:$0xff]  ;;  %v6285_v6 = vld [vmem:[#allocation52_spill] sm:$0xff] }
 0x1c2   :  { %1419 = vmatpush.bf16.msra.mxu2 %v6277_v62  ;;  %1432 = vmatpush.bf16.msra.mxu3 %v6278_v2  ;;  %v6288_v62 = vld [vmem:[#allocation55_spill] sm:$0xff]  ;;  %v6289_v2 = vld [vmem:[#allocation56_spill] sm:$0xff] }
 0x1c4   :  { %1394 = vmatpush.bf16.msra.mxu0 %v6279_v19  ;;  %1407 = vmatpush.bf16.msra.mxu1 %v6280_v58  ;;  %v6290_v19 = vld [vmem:[#allocation57_spill] sm:$0xff]  ;;  %v6291_v58 = vld [vmem:[#allocation58_spill] sm:$0xff] }
 0x1c6   :  { %1420 = vmatpush.bf16.msra.mxu2 %v6281_v5  ;;  %1433 = vmatpush.bf16.msra.mxu3 %v6282_v51  ;;  %v6292_v5 = vld [vmem:[#allocation59_spill] sm:$0xff]  ;;  %v6293_v51 = vld [vmem:[#allocation60_spill] sm:$0xff] }
 0x1c8   :  { %1395 = vmatpush.bf16.msra.mxu0 %v6283_v4  ;;  %1408 = vmatpush.bf16.msra.mxu1 %v6284_v18  ;;  %v6294_v4 = vld [vmem:[#allocation61_spill] sm:$0xff]  ;;  %v6295_v18 = vld [vmem:[#allocation62_spill] sm:$0xff] }
 0x1ca   :  { %1421 = vmatpush.bf16.msra.mxu2 %v6285_v6  ;;  %1434 = vmatpush.bf16.msra.mxu3 %v6286_v9  ;;  %v6296_v6 = vld [vmem:[#allocation63_spill] sm:$0xff]  ;;  %v6297_v9 = vld [vmem:[#allocation64_spill] sm:$0xff] }
 0x1cc   :  { %1396 = vmatpush.bf16.msra.mxu0 %v6287_v29  ;;  %1409 = vmatpush.bf16.msra.mxu1 %v6288_v62  ;;  %v6298_v29 = vld [vmem:[#allocation65_spill] sm:$0xff]  ;;  %v6299_v62 = vld [vmem:[#allocation66_spill] sm:$0xff] }
 0x1ce   :  { %1422 = vmatpush.bf16.msra.mxu2 %v6289_v2  ;;  %1435 = vmatpush.bf16.msra.mxu3 %v6290_v19  ;;  %v6300_v2 = vld [vmem:[#allocation67_spill] sm:$0xff]  ;;  %v6301_v19 = vld [vmem:[#allocation68_spill] sm:$0xff] }
 0x1d0   :  { %1397 = vmatpush.bf16.msra.mxu0 %v6291_v58  ;;  %1410 = vmatpush.bf16.msra.mxu1 %v6292_v5  ;;  %v6302_v58 = vld [vmem:[#allocation69_spill] sm:$0xff]  ;;  %v6303_v5 = vld [vmem:[#allocation70_spill] sm:$0xff] }
 0x1d2   :  { %1423 = vmatpush.bf16.msra.mxu2 %v6293_v51  ;;  %1436 = vmatpush.bf16.msra.mxu3 %v6294_v4  ;;  %v6304_v51 = vld [vmem:[#allocation71_spill] sm:$0xff]  ;;  %v6305_v4 = vld [vmem:[#allocation72_spill] sm:$0xff] }
 0x1d4   :  { %1398 = vmatpush.bf16.msra.mxu0 %v6295_v18  ;;  %1411 = vmatpush.bf16.msra.mxu1 %v6296_v6  ;;  %v6306_v18 = vld [vmem:[#allocation73_spill] sm:$0xff] }
 0x1d6   :  { %1424 = vmatpush.bf16.msra.mxu2 %v6297_v9  ;;  %1437 = vmatpush.bf16.msra.mxu3 %v6298_v29 }
 0x1d8   :  { %1399 = vmatpush.bf16.msra.mxu0 %v6299_v62  ;;  %1412 = vmatpush.bf16.msra.mxu1 %v6300_v2 }
 0x1da   :  { %1425 = vmatpush.bf16.msra.mxu2 %v6301_v19  ;;  %1438 = vmatpush.bf16.msra.mxu3 %v6302_v58 }
 0x1dc   :  { %1400 = vmatpush.bf16.msra.mxu0 %v6303_v5  ;;  %1413 = vmatpush.bf16.msra.mxu1 %v6304_v51 }
 0x1de   :  { %1426 = vmatpush.bf16.msra.mxu2 %v6305_v4  ;;  %1439 = vmatpush.bf16.msra.mxu3 %v6306_v18 }
 0x1fb   :  { %v1051_v6 = vpop.f32.mrf.mxu0  ;;  %v1064_v9 = vpop.f32.mrf.mxu1 }
 0x202   :  { %v1077_v56 = vpop.f32.mrf.mxu2  ;;  %v1090_v29 = vpop.f32.mrf.mxu3 }
 0x203   :  { %v1053_v20 = vpop.f32.mrf.mxu0  ;;  %v1066_v62 = vpop.f32.mrf.mxu1 }
 0x204   :  { %v6309_v62 = vld [vmem:[#allocation76_spill] sm:$0xff] }
 0x20a   :  { %v1079_v46 = vpop.f32.mrf.mxu2  ;;  %v1092_v2 = vpop.f32.mrf.mxu3 }
 0x20b   :  { %v1103_v39 = vpop.f32.mrf.mxu0  ;;  %v1116_v19 = vpop.f32.mrf.mxu1 }
 0x20c   :  { %v1104_v59 = vadd.f32 %v1103_v39, %v1051_v6  ;;  %v1117_v58 = vadd.f32 %v1116_v19, %v1064_v9 }
 0x20e   :  { %v1146_v5 = vadd.f32 %v1104_v59, %v6307_v38  ;;  %v1147_v51 = vadd.f32 %v1117_v58, %v6308_v14 }
 0x210   :  { %v3414_v0 = vmul.f32 -1.442695, %v1146_v5  ;;  %v3415_v4 = vmul.f32 -1.442695, %v1147_v51 }
 0x212   :  { %3629 = vpow2.f32 %v3414_v0  ;;  %v1129_v18 = vpop.f32.mrf.mxu2  ;;  %v1142_v47 = vpop.f32.mrf.mxu3  ;;  %v3418_v0 = vld [vmem:[%s5979_s0 + $0x40] sm:$0xff] }
 0x213   :  { %3631 = vpow2.f32 %v3415_v4  ;;  %v1143_v63 = vadd.f32 %v1142_v47, %v1090_v29  ;;  %v1105_v44 = vpop.f32.mrf.mxu0  ;;  %v1118_v20 = vpop.f32.mrf.mxu1  ;;  %v1130_v29 = vadd.f32 %v1129_v18, %v1077_v56 }
 0x214   :  { %v3419_v44 = vld [vmem:[%s5979_s0 + $0x48] sm:$0xff]  ;;  %v6310_v20 = vld [vmem:[#allocation77_spill] sm:$0xff] }
 0x215   :  { %v1149_v46 = vadd.f32 %v1143_v63, %v6309_v62 }
 0x217   :  { %v3416_v2 = vmul.f32 -1.442695, %v1149_v46  ;;  %v1148_v46 = vadd.f32 %v1130_v29, %v6310_v20 }
 0x218   :  { %v3630_v37 = vpop.eup %3629 }
 0x219   :  { %v3632_v23 = vpop.eup %3631  ;;  %v1153_v39 = vadd.f32 1.0, %v3630_v37  ;;  %3633 = vpow2.f32 %v3416_v2  ;;  %v3421_v2 = vld [vmem:[%s5979_s0 + $0x58] sm:$0xff] }
 0x21a   :  { %v5044_v6 = vadd.f32 1.0, %v3632_v23  ;;  %v1131_v59 = vpop.f32.mrf.mxu2  ;;  %v1144_v9 = vpop.f32.mrf.mxu3 }
 0x21b   :  { %3635 = vrcp.f32 %v1153_v39  ;;  %v1163_v29 = vand.u32 2147483647, %v1153_v39  ;;  %vm1159_vm6 = vweird.f32 %v1153_v39 }
 0x21c   :  { %3637 = vrcp.f32 %v5044_v6  ;;  %v1229_v47 = vpop.f32.mrf.mxu0  ;;  %v1242_v63 = vpop.f32.mrf.mxu1  ;;  %vm1178_vm7 = vweird.f32 %v5044_v6 }
 0x21d   :  { %v1272_v37 = vadd.f32 %v3418_v0, %v1229_v47  ;;  %v1273_v19 = vadd.f32 %v3419_v44, %v1242_v63  ;;  %vm1164_vm9 = vcmp.eq.f32.partialorder %v1163_v29, 8.507059e+37 }
 0x21f   :  { %v3634_v23 = vpop.eup %3633  ;;  %v3422_v58 = vmul.f32 -1.442695, %v1272_v37  ;;  %v3423_v5 = vmul.f32 -1.442695, %v1273_v19 }
 0x220   :  { %v5053_v51 = vadd.f32 1.0, %v3634_v23  ;;  %v1165_v23 = vand.u32 2147483648, %v1153_v39 }
 0x221   :  { %v3636_v4 = vpop.eup %3635  ;;  %3639 = vpow2.f32 %v3422_v58  ;;  %v1184_v58 = vand.u32 2147483648, %v5044_v6 }
 0x222   :  { %v3638_v59 = vpop.eup %3637  ;;  %v1155_v9 = vmul.f32 %v3636_v4, %v1153_v39  ;;  %3641 = vrcp.f32 %v5053_v51  ;;  %vm1160_vm4 = vweird.f32 %v3636_v4  ;;  %vm1198_vm13 = vweird.f32 %v5053_v51 }
 0x223   :  { %v1174_v56 = vmul.f32 %v3638_v59, %v5044_v6  ;;  %3643 = vpow2.f32 %v3423_v5  ;;  %vm1179_vm5 = vweird.f32 %v3638_v59  ;;  %v1182_v5 = vand.u32 2147483647, %v5044_v6  ;;  %vm1161_vm8 = vmor %vm1159_vm6, %vm1160_vm4 }
 0x224   :  { %v1255_v18 = vpop.f32.mrf.mxu2  ;;  %v1268_v0 = vpop.f32.mrf.mxu3  ;;  %v1156_v44 = vsub.f32 1.0, %v1155_v9  ;;  %3645 = vtanh.f32 %v1148_v46  ;;  %vm1180_vm10 = vmor %vm1178_vm7, %vm1179_vm5  ;;  %v1185_v39 = vor.u32 1.1754944e-38, %v1184_v58 }
 0x225   :  { %v1275_v47 = vadd.f32 %v3421_v2, %v1268_v0  ;;  %v1231_v63 = vpop.f32.mrf.mxu0  ;;  %v1244_v37 = vpop.f32.mrf.mxu1  ;;  %v1175_v19 = vsub.f32 1.0, %v1174_v56  ;;  %v1166_v56 = vor.u32 1.1754944e-38, %v1165_v23  ;;  %vm1183_vm11 = vcmp.eq.f32.partialorder %v1182_v5, 8.507059e+37 }
 0x226   :  { %v1157_v20 = vmul.f32 %v3636_v4, %v1156_v44 }
 0x227   :  { %v3424_v62 = vmul.f32 -1.442695, %v1275_v47  ;;  %v3640_v14 = vpop.eup %3639  ;;  %v1176_v38 = vmul.f32 %v3638_v59, %v1175_v19 }
 0x228   :  { %v5063_v36 = vpop.eup %3641  ;;  %v1158_v2 = vadd.f32 %v3636_v4, %v1157_v20  ;;  %v5066_v9 = vadd.f32 1.0, %v3640_v14 }
 0x229   :  { %3647 = vpow2.f32 %v3424_v62  ;;  %v3644_v46 = vpop.eup %3643  ;;  %v1177_v0 = vadd.f32 %v3638_v59, %v1176_v38  ;;  %v1194_v44 = vmul.f32 %v5063_v36, %v5053_v51  ;;  %v6311_v38 = vld [vmem:[#allocation78_spill] sm:$0xff]  ;;  %vm1199_vm12 = vweird.f32 %v5063_v36 }
 0x22a   :  { %v1162_v47 = vsel %vm1161_vm8, %v3636_v4, %v1158_v2  ;;  %3649 = vrcp.f32 %v5066_v9  ;;  %v5071_v63 = vadd.f32 1.0, %v3644_v46  ;;  %v3646_v6 = vpop.eup %3645  ;;  %v3420_v4 = vld [vmem:[%s5979_s0 + $0x50] sm:$0xff]  ;;  %vm5092_vm14 = vmor %vm1198_vm13, %vm1199_vm12  ;;  %vm1285_vm0 = vweird.f32 %v5066_v9 }
 0x22b   :  { %v1167_v20 = vsel %vm1164_vm9, %v1166_v56, %v1162_v47  ;;  %v1181_v14 = vsel %vm1180_vm10, %v3638_v59, %v1177_v0  ;;  %v1195_v62 = vsub.f32 1.0, %v1194_v44  ;;  %v1274_v56 = vadd.f32 %v3420_v4, %v1255_v18 }
 0x22c   :  { %v1257_v37 = vpop.f32.mrf.mxu2  ;;  %v1270_v19 = vpop.f32.mrf.mxu3  ;;  %v1186_v29 = vsel %vm1183_vm11, %v1185_v39, %v1181_v14  ;;  %v1209_v23 = vmul.f32 %v3646_v6, %v1167_v20  ;;  %3651 = vrcp.f32 %v5071_v63  ;;  %v1204_v44 = vand.u32 2147483648, %v5053_v51 }
 0x22d   :  { %v1208_v22 = vmul.f32 %v1186_v29, %v6311_v38  ;;  %v1196_v2 = vmul.f32 %v5063_v36, %v1195_v62  ;;  %v1291_v14 = vand.u32 2147483648, %v5066_v9  ;;  %v1308_v38 = vand.u32 2147483647, %v5071_v63 }
 0x22e   :  { %v1205_v37 = vor.u32 1.1754944e-38, %v1204_v44  ;;  %vm1304_vm3 = vweird.f32 %v5071_v63 }
 0x22f   :  { %v3648_v58 = vpop.eup %3647  ;;  %v5079_v46 = vadd.f32 %v1209_v23, %v1208_v22  ;;  %v1197_v0 = vadd.f32 %v5063_v36, %v1196_v2  ;;  %v1202_v22 = vand.u32 2147483647, %v5053_v51  ;;  %v1289_v51 = vand.u32 2147483647, %v5066_v9 }
 0x230   :  { %v5081_v59 = vadd.f32 1.0, %v3648_v58  ;;  %v3650_v5 = vpop.eup %3649  ;;  %v1310_v23 = vand.u32 2147483648, %v5071_v63  ;;  %vm1309_vm7 = vcmp.eq.f32.partialorder %v1308_v38, 8.507059e+37 }
 0x231   :  { %3653 = vtanh.f32 %v5079_v46  ;;  %v1281_v39 = vmul.f32 %v3650_v5, %v5066_v9  ;;  %v1201_v62 = vsel %vm5092_vm14, %v5063_v36, %v1197_v0  ;;  %vm1286_vm15 = vweird.f32 %v3650_v5 }
 0x232   :  { %v3652_v47 = vpop.eup %3651  ;;  %3655 = vrcp.f32 %v5081_v59  ;;  %vm1203_vm1 = vcmp.eq.f32.partialorder %v1202_v22, 8.507059e+37  ;;  %vm1287_vm4 = vmor %vm1285_vm0, %vm1286_vm15  ;;  %v1292_v36 = vor.u32 1.1754944e-38, %v1291_v14  ;;  %vm1290_vm5 = vcmp.eq.f32.partialorder %v1289_v51, 8.507059e+37 }
 0x233   :  { %v1282_v6 = vsub.f32 1.0, %v1281_v39  ;;  %v1300_v18 = vmul.f32 %v3652_v47, %v5071_v63  ;;  %3657 = vtanh.f32 %v1274_v56  ;;  %vm1305_vm2 = vweird.f32 %v3652_v47 }
 0x234   :  { %v1206_v56 = vsel %vm1203_vm1, %v1205_v37, %v1201_v62  ;;  %vm1306_vm6 = vmor %vm1304_vm3, %vm1305_vm2  ;;  %v1311_v20 = vor.u32 1.1754944e-38, %v1310_v23  ;;  %v1330_v23 = vand.u32 2147483648, %v5081_v59  ;;  %vm1324_vm9 = vweird.f32 %v5081_v59 }
 0x235   :  { %v1301_v19 = vsub.f32 1.0, %v1300_v18  ;;  %v1283_v29 = vmul.f32 %v3650_v5, %v1282_v6 }
 0x237   :  { %v3654_v4 = vpop.eup %3653  ;;  %v1302_v58 = vmul.f32 %v3652_v47, %v1301_v19  ;;  %v1284_v2 = vadd.f32 %v3650_v5, %v1283_v29 }
 0x238   :  { %v3656_v39 = vpop.eup %3655  ;;  %v1212_v0 = vmul.f32 %v3654_v4, %v1206_v56  ;;  %v1331_v4 = vor.u32 1.1754944e-38, %v1330_v23  ;;  %v6331_v23 = vld [vmem:[#allocation33_spill] sm:$0xff] }
 0x239   :  { %v1288_v44 = vsel %vm1287_vm4, %v3650_v5, %v1284_v2  ;;  %v1303_v6 = vadd.f32 %v3652_v47, %v1302_v58  ;;  %v1320_v18 = vmul.f32 %v3656_v39, %v5081_v59  ;;  %v3658_v9 = vpop.eup %3657  ;;  %vm1325_vm8 = vweird.f32 %v3656_v39 }
 0x23a   :  { %v1293_v22 = vsel %vm1290_vm5, %v1292_v36, %v1288_v44  ;;  %3417 = vst [vmem:[%s5981_s5 + $0x8] sm:$0xff] %v1212_v0  ;;  %v1340_v62 = vpack.c.bf16 %v1212_v0, %v1212_v0  ;;  %vm1326_vm10 = vmor %vm1324_vm9, %vm1325_vm8  ;;  %v6315_v36 = vld [vmem:[#allocation17_spill] sm:$0xff]  ;;  %v6316_v0 = vld [vmem:[#allocation16_spill] sm:$0xff] }
 0x23b   :  { %v1307_v37 = vsel %vm1306_vm6, %v3652_v47, %v1303_v6  ;;  %v1335_v63 = vmul.f32 %v3658_v9, %v1293_v22  ;;  %v1321_v19 = vsub.f32 1.0, %v1320_v18  ;;  %v6317_v44 = vld [vmem:[#allocation18_spill] sm:$0xff]  ;;  %v6318_v6 = vld [vmem:[#allocation19_spill] sm:$0xff]  ;;  %v6319_v18 = vld [vmem:[#allocation21_spill] sm:$0xff] }
 0x23c   :  { %v1312_v14 = vsel %vm1309_vm7, %v1311_v20, %v1307_v37  ;;  %1349 = vmatmul.bf16.vlgmr.msrb.gmra.mxu0 %v1340_v62  ;;  %1362 = vmatmul.bf16.vlgmr.msrb.gmra.mxu1 %v1340_v62  ;;  %v6320_v9 = vld [vmem:[#allocation20_spill] sm:$0xff]  ;;  %v6321_v20 = vld [vmem:[#allocation22_spill] sm:$0xff]  ;;  %v6322_v22 = vld [vmem:[#allocation23_spill] sm:$0xff] }
 0x23d   :  { %v1334_v5 = vmul.f32 %v1312_v14, %v4941_v50  ;;  %v1322_v29 = vmul.f32 %v3656_v39, %v1321_v19  ;;  %1375 = vmatmul.bf16.vlgmr.msrb.gmra.mxu2 %v1340_v62  ;;  %1388 = vmatmul.bf16.vlgmr.msrb.gmra.mxu3 %v1340_v62  ;;  %v1328_v50 = vand.u32 2147483647, %v5081_v59  ;;  %v6323_v62 = vld [vmem:[#allocation25_spill] sm:$0xff]  ;;  %v6324_v37 = vld [vmem:[#allocation24_spill] sm:$0xff]  ;;  %v6326_v19 = vld [vmem:[#allocation27_spill] sm:$0xff] }
 0x23e   :  { %1519 = vmatpush.bf16.msrb.mxu0 %v3877_v3  ;;  %1532 = vmatpush.bf16.msrb.mxu1 %v3888_v7  ;;  %v6327_v14 = vld [vmem:[#allocation29_spill] sm:$0xff] }
 0x23f   :  { %v5112_v51 = vadd.f32 %v1335_v63, %v1334_v5  ;;  %1545 = vmatpush.bf16.msrb.mxu2 %v3928_v21  ;;  %1558 = vmatpush.bf16.msrb.mxu3 %v3890_v8  ;;  %v1323_v47 = vadd.f32 %v3656_v39, %v1322_v29  ;;  %vm1329_vm11 = vcmp.eq.f32.partialorder %v1328_v50, 8.507059e+37  ;;  %v6325_v63 = vld [vmem:[#allocation26_spill] sm:$0xff]  ;;  %v6328_v5 = vld [vmem:[#allocation28_spill] sm:$0xff] }
 0x240   :  { %v6329_v29 = vld [vmem:[#allocation30_spill] sm:$0xff]  ;;  %v6332_v50 = vld [vmem:[#allocation32_spill] sm:$0xff] }
 0x241   :  { %3659 = vtanh.f32 %v5112_v51  ;;  %v1327_v38 = vsel %vm1326_vm10, %v3656_v39, %v1323_v47  ;;  %v6314_v39 = vld [vmem:[#allocation15_spill] sm:$0xff] }
 0x242   :  { %1520 = vmatpush.bf16.msrb.mxu0 %v3902_v12  ;;  %1533 = vmatpush.bf16.msrb.mxu1 %v3915_v16  ;;  %v1332_v2 = vsel %vm1329_vm11, %v1331_v4, %v1327_v38  ;;  %v6330_v47 = vld [vmem:[#allocation31_spill] sm:$0xff]  ;;  %v6333_v38 = vld [vmem:[#allocation34_spill] sm:$0xff] }
 0x243   :  { %1546 = vmatpush.bf16.msrb.mxu2 %v3967_v34  ;;  %1559 = vmatpush.bf16.msrb.mxu3 %v3917_v17  ;;  %v6334_v4 = vld [vmem:[#allocation35_spill] sm:$0xff] }
 0x246   :  { %1521 = vmatpush.bf16.msrb.mxu0 %v3950_v28  ;;  %1534 = vmatpush.bf16.msrb.mxu1 %v3963_v32 }
 0x247   :  { %v3660_v58 = vpop.eup %3659  ;;  %1547 = vmatpush.bf16.msrb.mxu2 %v3991_v42  ;;  %1560 = vmatpush.bf16.msrb.mxu3 %v3965_v33 }
 0x248   :  { %v1338_v59 = vmul.f32 %v3660_v58, %v1332_v2  ;;  %v6335_v58 = vld [vmem:[#allocation37_spill] sm:$0xff]  ;;  %v6336_v2 = vld [vmem:[#allocation36_spill] sm:$0xff] }
 0x24a   :  { %v1339_v56 = vpack.c.bf16 %v1338_v59, %v1338_v59  ;;  %1522 = vmatpush.bf16.msrb.mxu0 %v3989_v41  ;;  %1535 = vmatpush.bf16.msrb.mxu1 %v4001_v45  ;;  %v6337_v59 = vld [vmem:[#allocation38_spill] sm:$0xff] }
 0x24b   :  { %1548 = vmatpush.bf16.msrb.mxu2 %v4027_v54  ;;  %1561 = vmatpush.bf16.msrb.mxu3 %v6249_v31 }
 0x24c   :  { %1401 = vmatmul.bf16.vlgmr.msra.gmra.mxu0 %v1339_v56  ;;  %1414 = vmatmul.bf16.vlgmr.msra.gmra.mxu1 %v1339_v56 }
 0x24d   :  { %1427 = vmatmul.bf16.vlgmr.msra.gmra.mxu2 %v1339_v56  ;;  %1440 = vmatmul.bf16.vlgmr.msra.gmra.mxu3 %v1339_v56 }
 0x24e   :  { %1523 = vmatpush.bf16.msrb.mxu0 %v6250_v61  ;;  %1536 = vmatpush.bf16.msrb.mxu1 %v6251_v24 }
 0x24f   :  { %1549 = vmatpush.bf16.msrb.mxu2 %v6252_v53  ;;  %1562 = vmatpush.bf16.msrb.mxu3 %v6253_v27 }
 0x252   :  { %1524 = vmatpush.bf16.msrb.mxu0 %v4061_v1  ;;  %1537 = vmatpush.bf16.msrb.mxu1 %v6254_v57 }
 0x253   :  { %1550 = vmatpush.bf16.msrb.mxu2 %v6255_v35  ;;  %1563 = vmatpush.bf16.msrb.mxu3 %v6256_v15 }
 0x256   :  { %1525 = vmatpush.bf16.msrb.mxu0 %v6257_v30  ;;  %1538 = vmatpush.bf16.msrb.mxu1 %v4112_v25 }
 0x257   :  { %1551 = vmatpush.bf16.msrb.mxu2 %v4147_v43  ;;  %1564 = vmatpush.bf16.msrb.mxu3 %v4114_v26 }
 0x25a   :  { %1526 = vmatpush.bf16.msrb.mxu0 %v4145_v40  ;;  %1539 = vmatpush.bf16.msrb.mxu1 %v4157_v48 }
 0x25b   :  { %1552 = vmatpush.bf16.msrb.mxu2 %v4201_v10  ;;  %1565 = vmatpush.bf16.msrb.mxu3 %v4159_v49 }
 0x25d   :  { %1527 = vmatmul.bf16.vlgmr.msrb.gmra.mxu0 %v1339_v56  ;;  %1540 = vmatmul.bf16.vlgmr.msrb.gmra.mxu1 %v1339_v56 }
 0x25e   :  { %1640 = vmatpush.bf16.msra.mxu0 %v4167_v52  ;;  %1653 = vmatpush.bf16.msra.mxu1 %v4169_v55 }
 0x25f   :  { %1553 = vmatmul.bf16.vlgmr.msrb.gmra.mxu2 %v1339_v56  ;;  %1566 = vmatmul.bf16.vlgmr.msrb.gmra.mxu3 %v1339_v56  ;;  %v6338_v56 = vld [vmem:[#allocation39_spill] sm:$0xff] }
 0x260   :  { %1666 = vmatpush.bf16.msra.mxu2 %v4205_v11  ;;  %1679 = vmatpush.bf16.msra.mxu3 %v4177_v60 }
 0x262   :  { %1641 = vmatpush.bf16.msra.mxu0 %v4207_v13  ;;  %1654 = vmatpush.bf16.msra.mxu1 %v6314_v39 }
 0x264   :  { %1667 = vmatpush.bf16.msra.mxu2 %v6315_v36  ;;  %1680 = vmatpush.bf16.msra.mxu3 %v6316_v0 }
 0x266   :  { %1642 = vmatpush.bf16.msra.mxu0 %v6317_v44  ;;  %1655 = vmatpush.bf16.msra.mxu1 %v6318_v6 }
 0x268   :  { %1668 = vmatpush.bf16.msra.mxu2 %v6319_v18  ;;  %1681 = vmatpush.bf16.msra.mxu3 %v6320_v9 }
 0x26a   :  { %1643 = vmatpush.bf16.msra.mxu0 %v6321_v20  ;;  %1656 = vmatpush.bf16.msra.mxu1 %v6322_v22  ;;  %v6373_v22 = vld [vmem:[#allocation74_spill] sm:$0xff]  ;;  %v6374_v20 = vld [vmem:[#allocation75_spill] sm:$0xff] }
 0x26c   :  { %1669 = vmatpush.bf16.msra.mxu2 %v6323_v62  ;;  %1682 = vmatpush.bf16.msra.mxu3 %v6324_v37 }
 0x26e   :  { %1644 = vmatpush.bf16.msra.mxu0 %v6325_v63  ;;  %1657 = vmatpush.bf16.msra.mxu1 %v6326_v19 }
 0x270   :  { %1670 = vmatpush.bf16.msra.mxu2 %v6327_v14  ;;  %1683 = vmatpush.bf16.msra.mxu3 %v6328_v5  ;;  %v6339_v5 = vld [vmem:[#allocation42_spill] sm:$0xff] }
 0x272   :  { %1645 = vmatpush.bf16.msra.mxu0 %v6329_v29  ;;  %1658 = vmatpush.bf16.msra.mxu1 %v6330_v47  ;;  %v6340_v29 = vld [vmem:[#allocation43_spill] sm:$0xff]  ;;  %v6341_v47 = vld [vmem:[#allocation40_spill] sm:$0xff] }
 0x274   :  { %1671 = vmatpush.bf16.msra.mxu2 %v6331_v23  ;;  %1684 = vmatpush.bf16.msra.mxu3 %v6332_v50  ;;  %v6342_v23 = vld [vmem:[#allocation41_spill] sm:$0xff]  ;;  %v6343_v50 = vld [vmem:[#allocation44_spill] sm:$0xff] }
 0x276   :  { %1646 = vmatpush.bf16.msra.mxu0 %v6333_v38  ;;  %1659 = vmatpush.bf16.msra.mxu1 %v6334_v4  ;;  %v6344_v38 = vld [vmem:[#allocation45_spill] sm:$0xff]  ;;  %v6345_v4 = vld [vmem:[#allocation46_spill] sm:$0xff] }
 0x278   :  { %1672 = vmatpush.bf16.msra.mxu2 %v6335_v58  ;;  %1685 = vmatpush.bf16.msra.mxu3 %v6336_v2  ;;  %v6346_v58 = vld [vmem:[#allocation47_spill] sm:$0xff]  ;;  %v6347_v2 = vld [vmem:[#allocation48_spill] sm:$0xff] }
 0x27a   :  { %1647 = vmatpush.bf16.msra.mxu0 %v6337_v59  ;;  %1660 = vmatpush.bf16.msra.mxu1 %v6338_v56  ;;  %v6348_v59 = vld [vmem:[#allocation49_spill] sm:$0xff]  ;;  %v6349_v56 = vld [vmem:[#allocation50_spill] sm:$0xff] }
 0x27c   :  { %1673 = vmatpush.bf16.msra.mxu2 %v6341_v47  ;;  %1686 = vmatpush.bf16.msra.mxu3 %v6342_v23  ;;  %v6352_v47 = vld [vmem:[#allocation53_spill] sm:$0xff]  ;;  %v6353_v23 = vld [vmem:[#allocation54_spill] sm:$0xff] }
 0x27e   :  { %1692 = vmatpush.bf16.msrb.mxu0 %v6339_v5  ;;  %1705 = vmatpush.bf16.msrb.mxu1 %v6340_v29  ;;  %v6350_v5 = vld [vmem:[#allocation51_spill] sm:$0xff]  ;;  %v6351_v29 = vld [vmem:[#allocation52_spill] sm:$0xff] }
 0x280   :  { %1718 = vmatpush.bf16.msrb.mxu2 %v6343_v50  ;;  %1731 = vmatpush.bf16.msrb.mxu3 %v6344_v38  ;;  %v6354_v50 = vld [vmem:[#allocation55_spill] sm:$0xff]  ;;  %v6355_v38 = vld [vmem:[#allocation56_spill] sm:$0xff] }
 0x282   :  { %1693 = vmatpush.bf16.msrb.mxu0 %v6345_v4  ;;  %1706 = vmatpush.bf16.msrb.mxu1 %v6346_v58  ;;  %v6356_v4 = vld [vmem:[#allocation57_spill] sm:$0xff]  ;;  %v6357_v58 = vld [vmem:[#allocation58_spill] sm:$0xff] }
 0x284   :  { %1719 = vmatpush.bf16.msrb.mxu2 %v6347_v2  ;;  %1732 = vmatpush.bf16.msrb.mxu3 %v6348_v59  ;;  %v6358_v2 = vld [vmem:[#allocation59_spill] sm:$0xff]  ;;  %v6359_v59 = vld [vmem:[#allocation60_spill] sm:$0xff] }
 0x286   :  { %1694 = vmatpush.bf16.msrb.mxu0 %v6349_v56  ;;  %1707 = vmatpush.bf16.msrb.mxu1 %v6350_v5  ;;  %v6360_v56 = vld [vmem:[#allocation61_spill] sm:$0xff]  ;;  %v6361_v5 = vld [vmem:[#allocation62_spill] sm:$0xff] }
 0x288   :  { %1720 = vmatpush.bf16.msrb.mxu2 %v6351_v29  ;;  %1733 = vmatpush.bf16.msrb.mxu3 %v6352_v47  ;;  %v6362_v29 = vld [vmem:[#allocation63_spill] sm:$0xff]  ;;  %v6363_v47 = vld [vmem:[#allocation64_spill] sm:$0xff] }
 0x28a   :  { %1695 = vmatpush.bf16.msrb.mxu0 %v6353_v23  ;;  %1708 = vmatpush.bf16.msrb.mxu1 %v6354_v50  ;;  %v6364_v23 = vld [vmem:[#allocation65_spill] sm:$0xff]  ;;  %v6365_v50 = vld [vmem:[#allocation66_spill] sm:$0xff] }
 0x28c   :  { %1721 = vmatpush.bf16.msrb.mxu2 %v6355_v38  ;;  %1734 = vmatpush.bf16.msrb.mxu3 %v6356_v4  ;;  %v6366_v38 = vld [vmem:[#allocation67_spill] sm:$0xff]  ;;  %v6367_v4 = vld [vmem:[#allocation68_spill] sm:$0xff] }
 0x28e   :  { %1696 = vmatpush.bf16.msrb.mxu0 %v6357_v58  ;;  %1709 = vmatpush.bf16.msrb.mxu1 %v6358_v2  ;;  %v6368_v58 = vld [vmem:[#allocation69_spill] sm:$0xff]  ;;  %v6369_v2 = vld [vmem:[#allocation70_spill] sm:$0xff] }
 0x290   :  { %1722 = vmatpush.bf16.msrb.mxu2 %v6359_v59  ;;  %1735 = vmatpush.bf16.msrb.mxu3 %v6360_v56  ;;  %v6370_v59 = vld [vmem:[#allocation71_spill] sm:$0xff]  ;;  %v6371_v56 = vld [vmem:[#allocation72_spill] sm:$0xff] }
 0x292   :  { %1697 = vmatpush.bf16.msrb.mxu0 %v6361_v5  ;;  %1710 = vmatpush.bf16.msrb.mxu1 %v6362_v29  ;;  %v6372_v5 = vld [vmem:[#allocation73_spill] sm:$0xff] }
 0x294   :  { %1723 = vmatpush.bf16.msrb.mxu2 %v6363_v47  ;;  %1736 = vmatpush.bf16.msrb.mxu3 %v6364_v23 }
 0x296   :  { %1698 = vmatpush.bf16.msrb.mxu0 %v6365_v50  ;;  %1711 = vmatpush.bf16.msrb.mxu1 %v6366_v38 }
 0x298   :  { %1724 = vmatpush.bf16.msrb.mxu2 %v6367_v4  ;;  %1737 = vmatpush.bf16.msrb.mxu3 %v6368_v58 }
 0x29a   :  { %1699 = vmatpush.bf16.msrb.mxu0 %v6369_v2  ;;  %1712 = vmatpush.bf16.msrb.mxu1 %v6370_v59 }
 0x29c   :  { %1725 = vmatpush.bf16.msrb.mxu2 %v6371_v56  ;;  %1738 = vmatpush.bf16.msrb.mxu3 %v6372_v5 }
 0x2b9   :  { %v1350_v29 = vpop.f32.mrf.mxu0  ;;  %v1363_v47 = vpop.f32.mrf.mxu1 }
 0x2c0   :  { %v1376_v14 = vpop.f32.mrf.mxu2  ;;  %v1389_v23 = vpop.f32.mrf.mxu3 }
 0x2c1   :  { %v1352_v19 = vpop.f32.mrf.mxu0  ;;  %v1365_v50 = vpop.f32.mrf.mxu1 }
 0x2c2   :  { %v6375_v50 = vld [vmem:[#allocation76_spill] sm:$0xff] }
 0x2c8   :  { %v1378_v63 = vpop.f32.mrf.mxu2  ;;  %v1391_v38 = vpop.f32.mrf.mxu3 }
 0x2c9   :  { %v1402_v37 = vpop.f32.mrf.mxu0  ;;  %v1415_v4 = vpop.f32.mrf.mxu1 }
 0x2ca   :  { %v1403_v62 = vadd.f32 %v1402_v37, %v1350_v29  ;;  %v1416_v58 = vadd.f32 %v1415_v4, %v1363_v47 }
 0x2cc   :  { %v1445_v2 = vadd.f32 %v1403_v62, %v6373_v22  ;;  %v1446_v59 = vadd.f32 %v1416_v58, %v6374_v20 }
 0x2ce   :  { %v3425_v9 = vmul.f32 -1.442695, %v1445_v2  ;;  %v3426_v56 = vmul.f32 -1.442695, %v1446_v59 }
 0x2d0   :  { %3661 = vpow2.f32 %v3425_v9  ;;  %v1428_v5 = vpop.f32.mrf.mxu2  ;;  %v1441_v18 = vpop.f32.mrf.mxu3  ;;  %v3429_v9 = vld [vmem:[%s5979_s0 + $0x60] sm:$0xff] }
 0x2d1   :  { %3663 = vpow2.f32 %v3426_v56  ;;  %v1442_v6 = vadd.f32 %v1441_v18, %v1389_v23  ;;  %v1404_v44 = vpop.f32.mrf.mxu0  ;;  %v1417_v19 = vpop.f32.mrf.mxu1  ;;  %v1429_v23 = vadd.f32 %v1428_v5, %v1376_v14 }
 0x2d2   :  { %v3430_v44 = vld [vmem:[%s5979_s0 + $0x68] sm:$0xff]  ;;  %v6376_v19 = vld [vmem:[#allocation77_spill] sm:$0xff] }
 0x2d3   :  { %v1448_v63 = vadd.f32 %v1442_v6, %v6375_v50 }
 0x2d5   :  { %v3427_v38 = vmul.f32 -1.442695, %v1448_v63  ;;  %v1447_v63 = vadd.f32 %v1429_v23, %v6376_v19 }
 0x2d6   :  { %v3662_v0 = vpop.eup %3661 }
 0x2d7   :  { %v3664_v36 = vpop.eup %3663  ;;  %v1452_v37 = vadd.f32 1.0, %v3662_v0  ;;  %3665 = vpow2.f32 %v3427_v38  ;;  %v3432_v38 = vld [vmem:[%s5979_s0 + $0x78] sm:$0xff] }
 0x2d8   :  { %v5215_v29 = vadd.f32 1.0, %v3664_v36  ;;  %v1430_v62 = vpop.f32.mrf.mxu2  ;;  %v1443_v47 = vpop.f32.mrf.mxu3 }
 0x2d9   :  { %3667 = vrcp.f32 %v1452_v37  ;;  %v1462_v23 = vand.u32 2147483647, %v1452_v37  ;;  %vm1458_vm14 = vweird.f32 %v1452_v37 }
 0x2da   :  { %3669 = vrcp.f32 %v5215_v29  ;;  %v1528_v6 = vpop.f32.mrf.mxu0  ;;  %v1541_v18 = vpop.f32.mrf.mxu1  ;;  %vm1477_vm15 = vweird.f32 %v5215_v29 }
 0x2db   :  { %v1571_v0 = vadd.f32 %v3429_v9, %v1528_v6  ;;  %v1572_v4 = vadd.f32 %v3430_v44, %v1541_v18  ;;  %vm1463_vm1 = vcmp.eq.f32.partialorder %v1462_v23, 8.507059e+37 }
 0x2dd   :  { %v3666_v36 = vpop.eup %3665  ;;  %v3433_v58 = vmul.f32 -1.442695, %v1571_v0  ;;  %v3434_v2 = vmul.f32 -1.442695, %v1572_v4 }
 0x2de   :  { %v5224_v59 = vadd.f32 1.0, %v3666_v36  ;;  %v1464_v36 = vand.u32 2147483648, %v1452_v37 }
 0x2df   :  { %v3668_v56 = vpop.eup %3667  ;;  %3671 = vpow2.f32 %v3433_v58  ;;  %v1483_v58 = vand.u32 2147483648, %v5215_v29 }
 0x2e0   :  { %v3670_v62 = vpop.eup %3669  ;;  %v1454_v47 = vmul.f32 %v3668_v56, %v1452_v37  ;;  %3673 = vrcp.f32 %v5224_v59  ;;  %vm1459_vm12 = vweird.f32 %v3668_v56  ;;  %vm1497_vm5 = vweird.f32 %v5224_v59 }
 0x2e1   :  { %v1473_v14 = vmul.f32 %v3670_v62, %v5215_v29  ;;  %3675 = vpow2.f32 %v3434_v2  ;;  %vm1478_vm13 = vweird.f32 %v3670_v62  ;;  %v1481_v2 = vand.u32 2147483647, %v5215_v29  ;;  %vm1460_vm0 = vmor %vm1458_vm14, %vm1459_vm12 }
 0x2e2   :  { %v1554_v5 = vpop.f32.mrf.mxu2  ;;  %v1567_v9 = vpop.f32.mrf.mxu3  ;;  %v1455_v44 = vsub.f32 1.0, %v1454_v47  ;;  %3677 = vtanh.f32 %v1447_v63  ;;  %vm1479_vm2 = vmor %vm1477_vm15, %vm1478_vm13  ;;  %v1484_v37 = vor.u32 1.1754944e-38, %v1483_v58 }
 0x2e3   :  { %v1574_v6 = vadd.f32 %v3432_v38, %v1567_v9  ;;  %v1530_v18 = vpop.f32.mrf.mxu0  ;;  %v1543_v0 = vpop.f32.mrf.mxu1  ;;  %v1474_v4 = vsub.f32 1.0, %v1473_v14  ;;  %v1465_v14 = vor.u32 1.1754944e-38, %v1464_v36  ;;  %vm1482_vm3 = vcmp.eq.f32.partialorder %v1481_v2, 8.507059e+37 }
 0x2e4   :  { %v1456_v19 = vmul.f32 %v3668_v56, %v1455_v44 }
 0x2e5   :  { %v3435_v50 = vmul.f32 -1.442695, %v1574_v6  ;;  %v3672_v20 = vpop.eup %3671  ;;  %v1475_v22 = vmul.f32 %v3670_v62, %v1474_v4 }
 0x2e6   :  { %v5234_v39 = vpop.eup %3673  ;;  %v1457_v38 = vadd.f32 %v3668_v56, %v1456_v19  ;;  %v5237_v47 = vadd.f32 1.0, %v3672_v20 }
 0x2e7   :  { %3679 = vpow2.f32 %v3435_v50  ;;  %v3676_v63 = vpop.eup %3675  ;;  %v1476_v9 = vadd.f32 %v3670_v62, %v1475_v22  ;;  %v1493_v44 = vmul.f32 %v5234_v39, %v5224_v59  ;;  %vm1498_vm4 = vweird.f32 %v5234_v39 }
 0x2e8   :  { %v1461_v6 = vsel %vm1460_vm0, %v3668_v56, %v1457_v38  ;;  %3681 = vrcp.f32 %v5237_v47  ;;  %v5242_v18 = vadd.f32 1.0, %v3676_v63  ;;  %v3678_v29 = vpop.eup %3677  ;;  %v3431_v56 = vld [vmem:[%s5979_s0 + $0x70] sm:$0xff]  ;;  %vm5263_vm6 = vmor %vm1497_vm5, %vm1498_vm4  ;;  %vm1584_vm8 = vweird.f32 %v5237_v47 }
 0x2e9   :  { %v1466_v19 = vsel %vm1463_vm1, %v1465_v14, %v1461_v6  ;;  %v1480_v20 = vsel %vm1479_vm2, %v3670_v62, %v1476_v9  ;;  %v1494_v50 = vsub.f32 1.0, %v1493_v44  ;;  %v1573_v14 = vadd.f32 %v3431_v56, %v1554_v5 }
 0x2ea   :  { %v1556_v0 = vpop.f32.mrf.mxu2  ;;  %v1569_v4 = vpop.f32.mrf.mxu3  ;;  %v1485_v23 = vsel %vm1482_vm3, %v1484_v37, %v1480_v20  ;;  %v1508_v36 = vmul.f32 %v3678_v29, %v1466_v19  ;;  %3683 = vrcp.f32 %v5242_v18  ;;  %v1503_v44 = vand.u32 2147483648, %v5224_v59 }
 0x2eb   :  { %v1507_v22 = vmul.f32 %v1485_v23, %v5079_v46  ;;  %v1495_v38 = vmul.f32 %v5234_v39, %v1494_v50  ;;  %v1501_v6 = vand.u32 2147483647, %v5224_v59  ;;  %v1590_v20 = vand.u32 2147483648, %v5237_v47 }
 0x2ec   :  { %v1504_v0 = vor.u32 1.1754944e-38, %v1503_v44  ;;  %v1588_v59 = vand.u32 2147483647, %v5237_v47  ;;  %vm1603_vm11 = vweird.f32 %v5242_v18 }
 0x2ed   :  { %v3680_v58 = vpop.eup %3679  ;;  %v5250_v63 = vadd.f32 %v1508_v36, %v1507_v22  ;;  %v1496_v9 = vadd.f32 %v5234_v39, %v1495_v38  ;;  %v1609_v36 = vand.u32 2147483648, %v5242_v18  ;;  %v1607_v22 = vand.u32 2147483647, %v5242_v18 }
 0x2ee   :  { %v5252_v62 = vadd.f32 1.0, %v3680_v58  ;;  %v3682_v2 = vpop.eup %3681  ;;  %vm1502_vm9 = vcmp.eq.f32.partialorder %v1501_v6, 8.507059e+37  ;;  %vm1589_vm13 = vcmp.eq.f32.partialorder %v1588_v59, 8.507059e+37 }
 0x2ef   :  { %3685 = vtanh.f32 %v5250_v63  ;;  %v1580_v46 = vmul.f32 %v3682_v2, %v5237_v47  ;;  %v1500_v50 = vsel %vm5263_vm6, %v5234_v39, %v1496_v9  ;;  %vm1585_vm7 = vweird.f32 %v3682_v2 }
 0x2f0   :  { %v3684_v37 = vpop.eup %3683  ;;  %3687 = vrcp.f32 %v5252_v62  ;;  %vm1586_vm12 = vmor %vm1584_vm8, %vm1585_vm7  ;;  %v1591_v39 = vor.u32 1.1754944e-38, %v1590_v20  ;;  %v1610_v19 = vor.u32 1.1754944e-38, %v1609_v36  ;;  %vm1608_vm15 = vcmp.eq.f32.partialorder %v1607_v22, 8.507059e+37 }
 0x2f1   :  { %v1581_v29 = vsub.f32 1.0, %v1580_v46  ;;  %v1599_v5 = vmul.f32 %v3684_v37, %v5242_v18  ;;  %3689 = vtanh.f32 %v1573_v14  ;;  %vm1604_vm10 = vweird.f32 %v3684_v37 }
 0x2f2   :  { %v1505_v14 = vsel %vm1502_vm9, %v1504_v0, %v1500_v50  ;;  %vm1605_vm14 = vmor %vm1603_vm11, %vm1604_vm10  ;;  %v1629_v36 = vand.u32 2147483648, %v5252_v62  ;;  %vm1623_vm1 = vweird.f32 %v5252_v62 }
 0x2f3   :  { %v1600_v4 = vsub.f32 1.0, %v1599_v5  ;;  %v1582_v23 = vmul.f32 %v3682_v2, %v1581_v29 }
 0x2f5   :  { %v3686_v56 = vpop.eup %3685  ;;  %v1601_v58 = vmul.f32 %v3684_v37, %v1600_v4  ;;  %v1583_v38 = vadd.f32 %v3682_v2, %v1582_v23 }
 0x2f6   :  { %v3688_v46 = vpop.eup %3687  ;;  %v1511_v9 = vmul.f32 %v3686_v56, %v1505_v14  ;;  %v1630_v56 = vor.u32 1.1754944e-38, %v1629_v36  ;;  %v6396_v36 = vld [vmem:[#allocation33_spill] sm:$0xff] }
 0x2f7   :  { %v1587_v44 = vsel %vm1586_vm12, %v3682_v2, %v1583_v38  ;;  %v1602_v29 = vadd.f32 %v3684_v37, %v1601_v58  ;;  %v1619_v5 = vmul.f32 %v3688_v46, %v5252_v62  ;;  %v3690_v47 = vpop.eup %3689  ;;  %vm1624_vm0 = vweird.f32 %v3688_v46 }
 0x2f8   :  { %v1592_v6 = vsel %vm1589_vm13, %v1591_v39, %v1587_v44  ;;  %3428 = vst [vmem:[%s5981_s5 + $0x10] sm:$0xff] %v1511_v9  ;;  %v1639_v50 = vpack.c.bf16 %v1511_v9, %v1511_v9  ;;  %vm1625_vm2 = vmor %vm1623_vm1, %vm1624_vm0  ;;  %v6380_v39 = vld [vmem:[#allocation17_spill] sm:$0xff]  ;;  %v6381_v9 = vld [vmem:[#allocation16_spill] sm:$0xff] }
 0x2f9   :  { %v1606_v0 = vsel %vm1605_vm14, %v3684_v37, %v1602_v29  ;;  %v1634_v18 = vmul.f32 %v3690_v47, %v1592_v6  ;;  %v1620_v4 = vsub.f32 1.0, %v1619_v5  ;;  %v6382_v44 = vld [vmem:[#allocation18_spill] sm:$0xff]  ;;  %v6383_v29 = vld [vmem:[#allocation19_spill] sm:$0xff]  ;;  %v6384_v5 = vld [vmem:[#allocation21_spill] sm:$0xff] }
 0x2fa   :  { %v1611_v20 = vsel %vm1608_vm15, %v1610_v19, %v1606_v0  ;;  %1648 = vmatmul.bf16.vlgmr.msra.gmra.mxu0 %v1639_v50  ;;  %1661 = vmatmul.bf16.vlgmr.msra.gmra.mxu1 %v1639_v50  ;;  %v6385_v47 = vld [vmem:[#allocation20_spill] sm:$0xff]  ;;  %v6386_v19 = vld [vmem:[#allocation22_spill] sm:$0xff]  ;;  %v6387_v6 = vld [vmem:[#allocation23_spill] sm:$0xff] }
 0x2fb   :  { %v1633_v2 = vmul.f32 %v1611_v20, %v5112_v51  ;;  %v1621_v23 = vmul.f32 %v3688_v46, %v1620_v4  ;;  %1674 = vmatmul.bf16.vlgmr.msra.gmra.mxu2 %v1639_v50  ;;  %1687 = vmatmul.bf16.vlgmr.msra.gmra.mxu3 %v1639_v50  ;;  %v1627_v51 = vand.u32 2147483647, %v5252_v62  ;;  %v6388_v50 = vld [vmem:[#allocation25_spill] sm:$0xff]  ;;  %v6389_v0 = vld [vmem:[#allocation24_spill] sm:$0xff]  ;;  %v6391_v4 = vld [vmem:[#allocation27_spill] sm:$0xff] }
 0x2fc   :  { %1818 = vmatpush.bf16.msra.mxu0 %v3877_v3  ;;  %1831 = vmatpush.bf16.msra.mxu1 %v3888_v7  ;;  %v6392_v20 = vld [vmem:[#allocation29_spill] sm:$0xff] }
 0x2fd   :  { %v5283_v59 = vadd.f32 %v1634_v18, %v1633_v2  ;;  %1844 = vmatpush.bf16.msra.mxu2 %v3928_v21  ;;  %1857 = vmatpush.bf16.msra.mxu3 %v3890_v8  ;;  %v1622_v37 = vadd.f32 %v3688_v46, %v1621_v23  ;;  %vm1628_vm3 = vcmp.eq.f32.partialorder %v1627_v51, 8.507059e+37  ;;  %v6390_v18 = vld [vmem:[#allocation26_spill] sm:$0xff]  ;;  %v6393_v2 = vld [vmem:[#allocation28_spill] sm:$0xff] }
 0x2fe   :  { %v6394_v23 = vld [vmem:[#allocation30_spill] sm:$0xff]  ;;  %v6397_v51 = vld [vmem:[#allocation32_spill] sm:$0xff] }
 0x2ff   :  { %3691 = vtanh.f32 %v5283_v59  ;;  %v1626_v22 = vsel %vm1625_vm2, %v3688_v46, %v1622_v37  ;;  %v6379_v46 = vld [vmem:[#allocation15_spill] sm:$0xff] }
 0x300   :  { %1819 = vmatpush.bf16.msra.mxu0 %v3902_v12  ;;  %1832 = vmatpush.bf16.msra.mxu1 %v3915_v16  ;;  %v1631_v38 = vsel %vm1628_vm3, %v1630_v56, %v1626_v22  ;;  %v6395_v37 = vld [vmem:[#allocation31_spill] sm:$0xff]  ;;  %v6398_v22 = vld [vmem:[#allocation34_spill] sm:$0xff] }
 0x301   :  { %1845 = vmatpush.bf16.msra.mxu2 %v3967_v34  ;;  %1858 = vmatpush.bf16.msra.mxu3 %v3917_v17  ;;  %v6399_v56 = vld [vmem:[#allocation35_spill] sm:$0xff] }
 0x304   :  { %1820 = vmatpush.bf16.msra.mxu0 %v3950_v28  ;;  %1833 = vmatpush.bf16.msra.mxu1 %v3963_v32 }
 0x305   :  { %v3692_v58 = vpop.eup %3691  ;;  %1846 = vmatpush.bf16.msra.mxu2 %v3991_v42  ;;  %1859 = vmatpush.bf16.msra.mxu3 %v3965_v33 }
 0x306   :  { %v1637_v62 = vmul.f32 %v3692_v58, %v1631_v38  ;;  %v6400_v58 = vld [vmem:[#allocation37_spill] sm:$0xff]  ;;  %v6401_v38 = vld [vmem:[#allocation36_spill] sm:$0xff] }
 0x308   :  { %v1638_v14 = vpack.c.bf16 %v1637_v62, %v1637_v62  ;;  %1821 = vmatpush.bf16.msra.mxu0 %v3989_v41  ;;  %1834 = vmatpush.bf16.msra.mxu1 %v4001_v45  ;;  %v6402_v62 = vld [vmem:[#allocation38_spill] sm:$0xff] }
 0x309   :  { %1847 = vmatpush.bf16.msra.mxu2 %v4027_v54  ;;  %1860 = vmatpush.bf16.msra.mxu3 %v6249_v31 }
 0x30a   :  { %1700 = vmatmul.bf16.vlgmr.msrb.gmra.mxu0 %v1638_v14  ;;  %1713 = vmatmul.bf16.vlgmr.msrb.gmra.mxu1 %v1638_v14 }
 0x30b   :  { %1726 = vmatmul.bf16.vlgmr.msrb.gmra.mxu2 %v1638_v14  ;;  %1739 = vmatmul.bf16.vlgmr.msrb.gmra.mxu3 %v1638_v14 }
 0x30c   :  { %1822 = vmatpush.bf16.msra.mxu0 %v6250_v61  ;;  %1835 = vmatpush.bf16.msra.mxu1 %v6251_v24 }
 0x30d   :  { %1848 = vmatpush.bf16.msra.mxu2 %v6252_v53  ;;  %1861 = vmatpush.bf16.msra.mxu3 %v6253_v27 }
 0x310   :  { %1823 = vmatpush.bf16.msra.mxu0 %v4061_v1  ;;  %1836 = vmatpush.bf16.msra.mxu1 %v6254_v57 }
 0x311   :  { %1849 = vmatpush.bf16.msra.mxu2 %v6255_v35  ;;  %1862 = vmatpush.bf16.msra.mxu3 %v6256_v15 }
 0x314   :  { %1824 = vmatpush.bf16.msra.mxu0 %v6257_v30  ;;  %1837 = vmatpush.bf16.msra.mxu1 %v4112_v25 }
 0x315   :  { %1850 = vmatpush.bf16.msra.mxu2 %v4147_v43  ;;  %1863 = vmatpush.bf16.msra.mxu3 %v4114_v26 }
 0x318   :  { %1825 = vmatpush.bf16.msra.mxu0 %v4145_v40  ;;  %1838 = vmatpush.bf16.msra.mxu1 %v4157_v48 }
 0x319   :  { %1851 = vmatpush.bf16.msra.mxu2 %v4201_v10  ;;  %1864 = vmatpush.bf16.msra.mxu3 %v4159_v49 }
 0x31b   :  { %1826 = vmatmul.bf16.vlgmr.msra.gmra.mxu0 %v1638_v14  ;;  %1839 = vmatmul.bf16.vlgmr.msra.gmra.mxu1 %v1638_v14 }
 0x31c   :  { %1939 = vmatpush.bf16.msrb.mxu0 %v4167_v52  ;;  %1952 = vmatpush.bf16.msrb.mxu1 %v4169_v55 }
 0x31d   :  { %1852 = vmatmul.bf16.vlgmr.msra.gmra.mxu2 %v1638_v14  ;;  %1865 = vmatmul.bf16.vlgmr.msra.gmra.mxu3 %v1638_v14  ;;  %v6403_v14 = vld [vmem:[#allocation39_spill] sm:$0xff] }
 0x31e   :  { %1965 = vmatpush.bf16.msrb.mxu2 %v4205_v11  ;;  %1978 = vmatpush.bf16.msrb.mxu3 %v4177_v60 }
 0x320   :  { %1940 = vmatpush.bf16.msrb.mxu0 %v4207_v13  ;;  %1953 = vmatpush.bf16.msrb.mxu1 %v6379_v46 }
 0x322   :  { %1966 = vmatpush.bf16.msrb.mxu2 %v6380_v39  ;;  %1979 = vmatpush.bf16.msrb.mxu3 %v6381_v9 }
 0x324   :  { %1941 = vmatpush.bf16.msrb.mxu0 %v6382_v44  ;;  %1954 = vmatpush.bf16.msrb.mxu1 %v6383_v29 }
 0x326   :  { %1967 = vmatpush.bf16.msrb.mxu2 %v6384_v5  ;;  %1980 = vmatpush.bf16.msrb.mxu3 %v6385_v47 }
 0x328   :  { %1942 = vmatpush.bf16.msrb.mxu0 %v6386_v19  ;;  %1955 = vmatpush.bf16.msrb.mxu1 %v6387_v6  ;;  %v6438_v6 = vld [vmem:[#allocation74_spill] sm:$0xff]  ;;  %v6439_v19 = vld [vmem:[#allocation75_spill] sm:$0xff] }
 0x32a   :  { %1968 = vmatpush.bf16.msrb.mxu2 %v6388_v50  ;;  %1981 = vmatpush.bf16.msrb.mxu3 %v6389_v0 }
 0x32c   :  { %1943 = vmatpush.bf16.msrb.mxu0 %v6390_v18  ;;  %1956 = vmatpush.bf16.msrb.mxu1 %v6391_v4 }
 0x32e   :  { %1969 = vmatpush.bf16.msrb.mxu2 %v6392_v20  ;;  %1982 = vmatpush.bf16.msrb.mxu3 %v6393_v2  ;;  %v6404_v2 = vld [vmem:[#allocation42_spill] sm:$0xff] }
 0x330   :  { %1944 = vmatpush.bf16.msrb.mxu0 %v6394_v23  ;;  %1957 = vmatpush.bf16.msrb.mxu1 %v6395_v37  ;;  %v6405_v23 = vld [vmem:[#allocation43_spill] sm:$0xff]  ;;  %v6406_v37 = vld [vmem:[#allocation40_spill] sm:$0xff] }
 0x332   :  { %1970 = vmatpush.bf16.msrb.mxu2 %v6396_v36  ;;  %1983 = vmatpush.bf16.msrb.mxu3 %v6397_v51  ;;  %v6407_v36 = vld [vmem:[#allocation41_spill] sm:$0xff]  ;;  %v6408_v51 = vld [vmem:[#allocation44_spill] sm:$0xff] }
 0x334   :  { %1945 = vmatpush.bf16.msrb.mxu0 %v6398_v22  ;;  %1958 = vmatpush.bf16.msrb.mxu1 %v6399_v56  ;;  %v6409_v22 = vld [vmem:[#allocation45_spill] sm:$0xff]  ;;  %v6410_v56 = vld [vmem:[#allocation46_spill] sm:$0xff] }
 0x336   :  { %1971 = vmatpush.bf16.msrb.mxu2 %v6400_v58  ;;  %1984 = vmatpush.bf16.msrb.mxu3 %v6401_v38  ;;  %v6411_v58 = vld [vmem:[#allocation47_spill] sm:$0xff]  ;;  %v6412_v38 = vld [vmem:[#allocation48_spill] sm:$0xff] }
 0x338   :  { %1946 = vmatpush.bf16.msrb.mxu0 %v6402_v62  ;;  %1959 = vmatpush.bf16.msrb.mxu1 %v6403_v14  ;;  %v6413_v62 = vld [vmem:[#allocation49_spill] sm:$0xff]  ;;  %v6414_v14 = vld [vmem:[#allocation50_spill] sm:$0xff] }
 0x33a   :  { %1972 = vmatpush.bf16.msrb.mxu2 %v6406_v37  ;;  %1985 = vmatpush.bf16.msrb.mxu3 %v6407_v36  ;;  %v6417_v37 = vld [vmem:[#allocation53_spill] sm:$0xff]  ;;  %v6418_v36 = vld [vmem:[#allocation54_spill] sm:$0xff] }
 0x33c   :  { %1991 = vmatpush.bf16.msra.mxu0 %v6404_v2  ;;  %2004 = vmatpush.bf16.msra.mxu1 %v6405_v23  ;;  %v6415_v2 = vld [vmem:[#allocation51_spill] sm:$0xff]  ;;  %v6416_v23 = vld [vmem:[#allocation52_spill] sm:$0xff] }
 0x33e   :  { %2017 = vmatpush.bf16.msra.mxu2 %v6408_v51  ;;  %2030 = vmatpush.bf16.msra.mxu3 %v6409_v22  ;;  %v6419_v51 = vld [vmem:[#allocation55_spill] sm:$0xff]  ;;  %v6420_v22 = vld [vmem:[#allocation56_spill] sm:$0xff] }
 0x340   :  { %1992 = vmatpush.bf16.msra.mxu0 %v6410_v56  ;;  %2005 = vmatpush.bf16.msra.mxu1 %v6411_v58  ;;  %v6421_v56 = vld [vmem:[#allocation57_spill] sm:$0xff]  ;;  %v6422_v58 = vld [vmem:[#allocation58_spill] sm:$0xff] }
 0x342   :  { %2018 = vmatpush.bf16.msra.mxu2 %v6412_v38  ;;  %2031 = vmatpush.bf16.msra.mxu3 %v6413_v62  ;;  %v6423_v38 = vld [vmem:[#allocation59_spill] sm:$0xff]  ;;  %v6424_v62 = vld [vmem:[#allocation60_spill] sm:$0xff] }
 0x344   :  { %1993 = vmatpush.bf16.msra.mxu0 %v6414_v14  ;;  %2006 = vmatpush.bf16.msra.mxu1 %v6415_v2  ;;  %v6425_v14 = vld [vmem:[#allocation61_spill] sm:$0xff]  ;;  %v6426_v2 = vld [vmem:[#allocation62_spill] sm:$0xff] }
 0x346   :  { %2019 = vmatpush.bf16.msra.mxu2 %v6416_v23  ;;  %2032 = vmatpush.bf16.msra.mxu3 %v6417_v37  ;;  %v6427_v23 = vld [vmem:[#allocation63_spill] sm:$0xff]  ;;  %v6428_v37 = vld [vmem:[#allocation64_spill] sm:$0xff] }
 0x348   :  { %1994 = vmatpush.bf16.msra.mxu0 %v6418_v36  ;;  %2007 = vmatpush.bf16.msra.mxu1 %v6419_v51  ;;  %v6429_v36 = vld [vmem:[#allocation65_spill] sm:$0xff]  ;;  %v6430_v51 = vld [vmem:[#allocation66_spill] sm:$0xff] }
 0x34a   :  { %2020 = vmatpush.bf16.msra.mxu2 %v6420_v22  ;;  %2033 = vmatpush.bf16.msra.mxu3 %v6421_v56  ;;  %v6431_v22 = vld [vmem:[#allocation67_spill] sm:$0xff]  ;;  %v6432_v56 = vld [vmem:[#allocation68_spill] sm:$0xff] }
 0x34c   :  { %1995 = vmatpush.bf16.msra.mxu0 %v6422_v58  ;;  %2008 = vmatpush.bf16.msra.mxu1 %v6423_v38  ;;  %v6433_v58 = vld [vmem:[#allocation69_spill] sm:$0xff]  ;;  %v6434_v38 = vld [vmem:[#allocation70_spill] sm:$0xff] }
 0x34e   :  { %2021 = vmatpush.bf16.msra.mxu2 %v6424_v62  ;;  %2034 = vmatpush.bf16.msra.mxu3 %v6425_v14  ;;  %v6435_v62 = vld [vmem:[#allocation71_spill] sm:$0xff]  ;;  %v6436_v14 = vld [vmem:[#allocation72_spill] sm:$0xff] }
 0x350   :  { %1996 = vmatpush.bf16.msra.mxu0 %v6426_v2  ;;  %2009 = vmatpush.bf16.msra.mxu1 %v6427_v23  ;;  %v6437_v2 = vld [vmem:[#allocation73_spill] sm:$0xff] }
 0x352   :  { %2022 = vmatpush.bf16.msra.mxu2 %v6428_v37  ;;  %2035 = vmatpush.bf16.msra.mxu3 %v6429_v36 }
 0x354   :  { %1997 = vmatpush.bf16.msra.mxu0 %v6430_v51  ;;  %2010 = vmatpush.bf16.msra.mxu1 %v6431_v22 }
 0x356   :  { %2023 = vmatpush.bf16.msra.mxu2 %v6432_v56  ;;  %2036 = vmatpush.bf16.msra.mxu3 %v6433_v58 }
 0x358   :  { %1998 = vmatpush.bf16.msra.mxu0 %v6434_v38  ;;  %2011 = vmatpush.bf16.msra.mxu1 %v6435_v62 }
 0x35a   :  { %2024 = vmatpush.bf16.msra.mxu2 %v6436_v14  ;;  %2037 = vmatpush.bf16.msra.mxu3 %v6437_v2 }
 0x377   :  { %v1649_v23 = vpop.f32.mrf.mxu0  ;;  %v1662_v37 = vpop.f32.mrf.mxu1 }
 0x37e   :  { %v1675_v20 = vpop.f32.mrf.mxu2  ;;  %v1688_v36 = vpop.f32.mrf.mxu3 }
 0x37f   :  { %v1651_v4 = vpop.f32.mrf.mxu0  ;;  %v1664_v51 = vpop.f32.mrf.mxu1 }
 0x380   :  { %v6440_v51 = vld [vmem:[#allocation76_spill] sm:$0xff] }
 0x386   :  { %v1677_v18 = vpop.f32.mrf.mxu2  ;;  %v1690_v22 = vpop.f32.mrf.mxu3 }
 0x387   :  { %v1701_v0 = vpop.f32.mrf.mxu0  ;;  %v1714_v56 = vpop.f32.mrf.mxu1 }
 0x388   :  { %v1702_v50 = vadd.f32 %v1701_v0, %v1649_v23  ;;  %v1715_v58 = vadd.f32 %v1714_v56, %v1662_v37 }
 0x38a   :  { %v1744_v38 = vadd.f32 %v1702_v50, %v6438_v6  ;;  %v1745_v62 = vadd.f32 %v1715_v58, %v6439_v19 }
 0x38c   :  { %v3436_v47 = vmul.f32 -1.442695, %v1744_v38  ;;  %v3437_v14 = vmul.f32 -1.442695, %v1745_v62 }
 0x38e   :  { %3693 = vpow2.f32 %v3436_v47  ;;  %v1727_v2 = vpop.f32.mrf.mxu2  ;;  %v1740_v5 = vpop.f32.mrf.mxu3  ;;  %v3440_v47 = vld [vmem:[%s5979_s0 + $0x80] sm:$0xff] }
 0x38f   :  { %3695 = vpow2.f32 %v3437_v14  ;;  %v1741_v29 = vadd.f32 %v1740_v5, %v1688_v36  ;;  %v1703_v44 = vpop.f32.mrf.mxu0  ;;  %v1716_v4 = vpop.f32.mrf.mxu1  ;;  %v1728_v36 = vadd.f32 %v1727_v2, %v1675_v20 }
 0x390   :  { %v3441_v44 = vld [vmem:[%s5979_s0 + $0x88] sm:$0xff]  ;;  %v6441_v4 = vld [vmem:[#allocation77_spill] sm:$0xff] }
 0x391   :  { %v1747_v18 = vadd.f32 %v1741_v29, %v6440_v51 }
 0x393   :  { %v3438_v22 = vmul.f32 -1.442695, %v1747_v18  ;;  %v1746_v18 = vadd.f32 %v1728_v36, %v6441_v4 }
 0x394   :  { %v3694_v9 = vpop.eup %3693 }
 0x395   :  { %v3696_v39 = vpop.eup %3695  ;;  %v1751_v0 = vadd.f32 1.0, %v3694_v9  ;;  %3697 = vpow2.f32 %v3438_v22  ;;  %v3443_v22 = vld [vmem:[%s5979_s0 + $0x98] sm:$0xff] }
 0x396   :  { %v5386_v23 = vadd.f32 1.0, %v3696_v39  ;;  %v1729_v50 = vpop.f32.mrf.mxu2  ;;  %v1742_v37 = vpop.f32.mrf.mxu3 }
 0x397   :  { %3699 = vrcp.f32 %v1751_v0  ;;  %v1761_v36 = vand.u32 2147483647, %v1751_v0  ;;  %vm1757_vm6 = vweird.f32 %v1751_v0 }
 0x398   :  { %3701 = vrcp.f32 %v5386_v23  ;;  %v1827_v29 = vpop.f32.mrf.mxu0  ;;  %v1840_v5 = vpop.f32.mrf.mxu1  ;;  %vm1776_vm7 = vweird.f32 %v5386_v23 }
 0x399   :  { %v1870_v9 = vadd.f32 %v3440_v47, %v1827_v29  ;;  %v1871_v56 = vadd.f32 %v3441_v44, %v1840_v5  ;;  %vm1762_vm9 = vcmp.eq.f32.partialorder %v1761_v36, 8.507059e+37 }
 0x39b   :  { %v3698_v39 = vpop.eup %3697  ;;  %v3444_v58 = vmul.f32 -1.442695, %v1870_v9  ;;  %v3445_v38 = vmul.f32 -1.442695, %v1871_v56 }
 0x39c   :  { %v5395_v62 = vadd.f32 1.0, %v3698_v39  ;;  %v1763_v39 = vand.u32 2147483648, %v1751_v0 }
 0x39d   :  { %v3700_v14 = vpop.eup %3699  ;;  %3703 = vpow2.f32 %v3444_v58  ;;  %v1782_v58 = vand.u32 2147483648, %v5386_v23 }
 0x39e   :  { %v3702_v50 = vpop.eup %3701  ;;  %v1753_v37 = vmul.f32 %v3700_v14, %v1751_v0  ;;  %3705 = vrcp.f32 %v5395_v62  ;;  %vm1758_vm4 = vweird.f32 %v3700_v14  ;;  %vm1796_vm13 = vweird.f32 %v5395_v62 }
 0x39f   :  { %v1772_v20 = vmul.f32 %v3702_v50, %v5386_v23  ;;  %3707 = vpow2.f32 %v3445_v38  ;;  %vm1777_vm5 = vweird.f32 %v3702_v50  ;;  %v1780_v38 = vand.u32 2147483647, %v5386_v23  ;;  %vm1759_vm8 = vmor %vm1757_vm6, %vm1758_vm4 }
 0x3a0   :  { %v1853_v2 = vpop.f32.mrf.mxu2  ;;  %v1866_v47 = vpop.f32.mrf.mxu3  ;;  %v1754_v44 = vsub.f32 1.0, %v1753_v37  ;;  %3709 = vtanh.f32 %v1746_v18  ;;  %vm1778_vm10 = vmor %vm1776_vm7, %vm1777_vm5  ;;  %v1783_v0 = vor.u32 1.1754944e-38, %v1782_v58 }
 0x3a1   :  { %v1873_v29 = vadd.f32 %v3443_v22, %v1866_v47  ;;  %v1829_v5 = vpop.f32.mrf.mxu0  ;;  %v1842_v9 = vpop.f32.mrf.mxu1  ;;  %v1773_v56 = vsub.f32 1.0, %v1772_v20  ;;  %v1764_v20 = vor.u32 1.1754944e-38, %v1763_v39  ;;  %vm1781_vm11 = vcmp.eq.f32.partialorder %v1780_v38, 8.507059e+37 }
 0x3a2   :  { %v1755_v4 = vmul.f32 %v3700_v14, %v1754_v44 }
 0x3a3   :  { %v3446_v51 = vmul.f32 -1.442695, %v1873_v29  ;;  %v3704_v19 = vpop.eup %3703  ;;  %v1774_v6 = vmul.f32 %v3702_v50, %v1773_v56 }
 0x3a4   :  { %v5405_v46 = vpop.eup %3705  ;;  %v1756_v22 = vadd.f32 %v3700_v14, %v1755_v4  ;;  %v5408_v37 = vadd.f32 1.0, %v3704_v19 }
 0x3a5   :  { %3711 = vpow2.f32 %v3446_v51  ;;  %v3708_v18 = vpop.eup %3707  ;;  %v1775_v47 = vadd.f32 %v3702_v50, %v1774_v6  ;;  %v1792_v44 = vmul.f32 %v5405_v46, %v5395_v62  ;;  %vm1797_vm12 = vweird.f32 %v5405_v46 }
 0x3a6   :  { %v1760_v29 = vsel %vm1759_vm8, %v3700_v14, %v1756_v22  ;;  %3713 = vrcp.f32 %v5408_v37  ;;  %v5413_v5 = vadd.f32 1.0, %v3708_v18  ;;  %v3710_v23 = vpop.eup %3709  ;;  %v3442_v14 = vld [vmem:[%s5979_s0 + $0x90] sm:$0xff]  ;;  %vm5433_vm14 = vmor %vm1796_vm13, %vm1797_vm12  ;;  %vm1883_vm0 = vweird.f32 %v5408_v37 }
 0x3a7   :  { %v1765_v4 = vsel %vm1762_vm9, %v1764_v20, %v1760_v29  ;;  %v1779_v19 = vsel %vm1778_vm10, %v3702_v50, %v1775_v47  ;;  %v1793_v51 = vsub.f32 1.0, %v1792_v44  ;;  %v1802_v20 = vand.u32 2147483648, %v5395_v62 }
 0x3a8   :  { %v1855_v9 = vpop.f32.mrf.mxu2  ;;  %v1868_v56 = vpop.f32.mrf.mxu3  ;;  %v1784_v36 = vsel %vm1781_vm11, %v1783_v0, %v1779_v19  ;;  %v1807_v39 = vmul.f32 %v3710_v23, %v1765_v4  ;;  %3715 = vrcp.f32 %v5413_v5  ;;  %v1872_v47 = vadd.f32 %v3442_v14, %v1853_v2 }
 0x3a9   :  { %v1806_v6 = vmul.f32 %v1784_v36, %v5250_v63  ;;  %v1794_v58 = vmul.f32 %v5405_v46, %v1793_v51  ;;  %v1800_v29 = vand.u32 2147483647, %v5395_v62  ;;  %v1803_v19 = vor.u32 1.1754944e-38, %v1802_v20 }
 0x3aa   :  { %v1889_v51 = vand.u32 2147483648, %v5408_v37  ;;  %v1887_v62 = vand.u32 2147483647, %v5408_v37  ;;  %vm1902_vm3 = vweird.f32 %v5413_v5 }
 0x3ab   :  { %v3712_v22 = vpop.eup %3711  ;;  %v5421_v18 = vadd.f32 %v1807_v39, %v1806_v6  ;;  %v1795_v44 = vadd.f32 %v5405_v46, %v1794_v58  ;;  %v1908_v39 = vand.u32 2147483648, %v5413_v5  ;;  %v1906_v6 = vand.u32 2147483647, %v5413_v5 }
 0x3ac   :  { %v5423_v50 = vadd.f32 1.0, %v3712_v22  ;;  %v3714_v38 = vpop.eup %3713  ;;  %vm1801_vm1 = vcmp.eq.f32.partialorder %v1800_v29, 8.507059e+37  ;;  %vm1888_vm5 = vcmp.eq.f32.partialorder %v1887_v62, 8.507059e+37 }
 0x3ad   :  { %3717 = vtanh.f32 %v5421_v18  ;;  %v1879_v63 = vmul.f32 %v3714_v38, %v5408_v37  ;;  %v1799_v9 = vsel %vm5433_vm14, %v5405_v46, %v1795_v44  ;;  %vm1884_vm15 = vweird.f32 %v3714_v38 }
 0x3ae   :  { %v3716_v0 = vpop.eup %3715  ;;  %3719 = vrcp.f32 %v5423_v50  ;;  %v1804_v20 = vsel %vm1801_vm1, %v1803_v19, %v1799_v9  ;;  %vm1885_vm4 = vmor %vm1883_vm0, %vm1884_vm15  ;;  %v1890_v46 = vor.u32 1.1754944e-38, %v1889_v51  ;;  %vm1907_vm7 = vcmp.eq.f32.partialorder %v1906_v6, 8.507059e+37 }
 0x3af   :  { %v1880_v4 = vsub.f32 1.0, %v1879_v63  ;;  %v1898_v2 = vmul.f32 %v3716_v0, %v5413_v5  ;;  %3721 = vtanh.f32 %v1872_v47  ;;  %vm1903_vm2 = vweird.f32 %v3716_v0 }
 0x3b0   :  { %vm1904_vm6 = vmor %vm1902_vm3, %vm1903_vm2  ;;  %vm1922_vm9 = vweird.f32 %v5423_v50 }
 0x3b1   :  { %v1899_v56 = vsub.f32 1.0, %v1898_v2  ;;  %v1881_v36 = vmul.f32 %v3714_v38, %v1880_v4  ;;  %v1909_v2 = vor.u32 1.1754944e-38, %v1908_v39  ;;  %v1928_v39 = vand.u32 2147483648, %v5423_v50 }
 0x3b3   :  { %v3718_v58 = vpop.eup %3717  ;;  %v1900_v14 = vmul.f32 %v3716_v0, %v1899_v56  ;;  %v1882_v22 = vadd.f32 %v3714_v38, %v1881_v36 }
 0x3b4   :  { %v3720_v47 = vpop.eup %3719  ;;  %v1810_v44 = vmul.f32 %v3718_v58, %v1804_v20  ;;  %v1929_v58 = vor.u32 1.1754944e-38, %v1928_v39  ;;  %v6461_v39 = vld [vmem:[#allocation33_spill] sm:$0xff] }
 0x3b5   :  { %v1886_v63 = vsel %vm1885_vm4, %v3714_v38, %v1882_v22  ;;  %v1901_v23 = vadd.f32 %v3716_v0, %v1900_v14  ;;  %v1918_v4 = vmul.f32 %v3720_v47, %v5423_v50  ;;  %v3722_v37 = vpop.eup %3721  ;;  %vm1923_vm8 = vweird.f32 %v3720_v47 }
 0x3b6   :  { %v1891_v29 = vsel %vm1888_vm5, %v1890_v46, %v1886_v63  ;;  %3439 = vst [vmem:[%s5981_s5 + $0x18] sm:$0xff] %v1810_v44  ;;  %v1938_v19 = vpack.c.bf16 %v1810_v44, %v1810_v44  ;;  %vm1924_vm10 = vmor %vm1922_vm9, %vm1923_vm8  ;;  %v6445_v46 = vld [vmem:[#allocation17_spill] sm:$0xff]  ;;  %v6446_v44 = vld [vmem:[#allocation16_spill] sm:$0xff] }
 0x3b7   :  { %v1905_v9 = vsel %vm1904_vm6, %v3716_v0, %v1901_v23  ;;  %v1933_v5 = vmul.f32 %v3722_v37, %v1891_v29  ;;  %v1919_v56 = vsub.f32 1.0, %v1918_v4  ;;  %v6447_v63 = vld [vmem:[#allocation18_spill] sm:$0xff]  ;;  %v6448_v23 = vld [vmem:[#allocation19_spill] sm:$0xff]  ;;  %v6449_v4 = vld [vmem:[#allocation21_spill] sm:$0xff] }
 0x3b8   :  { %v1910_v51 = vsel %vm1907_vm7, %v1909_v2, %v1905_v9  ;;  %1947 = vmatmul.bf16.vlgmr.msrb.gmra.mxu0 %v1938_v19  ;;  %1960 = vmatmul.bf16.vlgmr.msrb.gmra.mxu1 %v1938_v19  ;;  %v6450_v37 = vld [vmem:[#allocation20_spill] sm:$0xff]  ;;  %v6451_v2 = vld [vmem:[#allocation22_spill] sm:$0xff]  ;;  %v6452_v29 = vld [vmem:[#allocation23_spill] sm:$0xff] }
 0x3b9   :  { %v1932_v38 = vmul.f32 %v1910_v51, %v5283_v59  ;;  %v1920_v36 = vmul.f32 %v3720_v47, %v1919_v56  ;;  %1973 = vmatmul.bf16.vlgmr.msrb.gmra.mxu2 %v1938_v19  ;;  %1986 = vmatmul.bf16.vlgmr.msrb.gmra.mxu3 %v1938_v19  ;;  %v1926_v59 = vand.u32 2147483647, %v5423_v50  ;;  %v6453_v19 = vld [vmem:[#allocation25_spill] sm:$0xff]  ;;  %v6454_v9 = vld [vmem:[#allocation24_spill] sm:$0xff]  ;;  %v6456_v56 = vld [vmem:[#allocation27_spill] sm:$0xff] }
 0x3ba   :  { %2117 = vmatpush.bf16.msrb.mxu0 %v3877_v3  ;;  %2130 = vmatpush.bf16.msrb.mxu1 %v3888_v7  ;;  %v6457_v51 = vld [vmem:[#allocation29_spill] sm:$0xff] }
 0x3bb   :  { %v5454_v62 = vadd.f32 %v1933_v5, %v1932_v38  ;;  %2143 = vmatpush.bf16.msrb.mxu2 %v3928_v21  ;;  %2156 = vmatpush.bf16.msrb.mxu3 %v3890_v8  ;;  %v1921_v0 = vadd.f32 %v3720_v47, %v1920_v36  ;;  %vm1927_vm11 = vcmp.eq.f32.partialorder %v1926_v59, 8.507059e+37  ;;  %v6455_v5 = vld [vmem:[#allocation26_spill] sm:$0xff]  ;;  %v6458_v38 = vld [vmem:[#allocation28_spill] sm:$0xff] }
 0x3bc   :  { %v6459_v36 = vld [vmem:[#allocation30_spill] sm:$0xff]  ;;  %v6462_v59 = vld [vmem:[#allocation32_spill] sm:$0xff] }
 0x3bd   :  { %3723 = vtanh.f32 %v5454_v62  ;;  %v1925_v6 = vsel %vm1924_vm10, %v3720_v47, %v1921_v0  ;;  %v6444_v47 = vld [vmem:[#allocation15_spill] sm:$0xff] }
 0x3be   :  { %2118 = vmatpush.bf16.msrb.mxu0 %v3902_v12  ;;  %2131 = vmatpush.bf16.msrb.mxu1 %v3915_v16  ;;  %v1930_v22 = vsel %vm1927_vm11, %v1929_v58, %v1925_v6  ;;  %v6460_v0 = vld [vmem:[#allocation31_spill] sm:$0xff]  ;;  %v6463_v6 = vld [vmem:[#allocation34_spill] sm:$0xff] }
 0x3bf   :  { %2144 = vmatpush.bf16.msrb.mxu2 %v3967_v34  ;;  %2157 = vmatpush.bf16.msrb.mxu3 %v3917_v17  ;;  %v6464_v58 = vld [vmem:[#allocation35_spill] sm:$0xff] }
 0x3c2   :  { %2119 = vmatpush.bf16.msrb.mxu0 %v3950_v28  ;;  %2132 = vmatpush.bf16.msrb.mxu1 %v3963_v32 }
 0x3c3   :  { %v3724_v14 = vpop.eup %3723  ;;  %2145 = vmatpush.bf16.msrb.mxu2 %v3991_v42  ;;  %2158 = vmatpush.bf16.msrb.mxu3 %v3965_v33 }
 0x3c4   :  { %v1936_v50 = vmul.f32 %v3724_v14, %v1930_v22  ;;  %v6465_v14 = vld [vmem:[#allocation37_spill] sm:$0xff]  ;;  %v6466_v22 = vld [vmem:[#allocation36_spill] sm:$0xff] }
 0x3c6   :  { %v1937_v20 = vpack.c.bf16 %v1936_v50, %v1936_v50  ;;  %2120 = vmatpush.bf16.msrb.mxu0 %v3989_v41  ;;  %2133 = vmatpush.bf16.msrb.mxu1 %v4001_v45  ;;  %v6467_v50 = vld [vmem:[#allocation38_spill] sm:$0xff] }
 0x3c7   :  { %2146 = vmatpush.bf16.msrb.mxu2 %v4027_v54  ;;  %2159 = vmatpush.bf16.msrb.mxu3 %v6249_v31 }
 0x3c8   :  { %1999 = vmatmul.bf16.vlgmr.msra.gmra.mxu0 %v1937_v20  ;;  %2012 = vmatmul.bf16.vlgmr.msra.gmra.mxu1 %v1937_v20 }
 0x3c9   :  { %2025 = vmatmul.bf16.vlgmr.msra.gmra.mxu2 %v1937_v20  ;;  %2038 = vmatmul.bf16.vlgmr.msra.gmra.mxu3 %v1937_v20 }
 0x3ca   :  { %2121 = vmatpush.bf16.msrb.mxu0 %v6250_v61  ;;  %2134 = vmatpush.bf16.msrb.mxu1 %v6251_v24 }
 0x3cb   :  { %2147 = vmatpush.bf16.msrb.mxu2 %v6252_v53  ;;  %2160 = vmatpush.bf16.msrb.mxu3 %v6253_v27 }
 0x3ce   :  { %2122 = vmatpush.bf16.msrb.mxu0 %v4061_v1  ;;  %2135 = vmatpush.bf16.msrb.mxu1 %v6254_v57 }
 0x3cf   :  { %2148 = vmatpush.bf16.msrb.mxu2 %v6255_v35  ;;  %2161 = vmatpush.bf16.msrb.mxu3 %v6256_v15 }
 0x3d2   :  { %2123 = vmatpush.bf16.msrb.mxu0 %v6257_v30  ;;  %2136 = vmatpush.bf16.msrb.mxu1 %v4112_v25 }
 0x3d3   :  { %2149 = vmatpush.bf16.msrb.mxu2 %v4147_v43  ;;  %2162 = vmatpush.bf16.msrb.mxu3 %v4114_v26 }
 0x3d6   :  { %2124 = vmatpush.bf16.msrb.mxu0 %v4145_v40  ;;  %2137 = vmatpush.bf16.msrb.mxu1 %v4157_v48 }
 0x3d7   :  { %2150 = vmatpush.bf16.msrb.mxu2 %v4201_v10  ;;  %2163 = vmatpush.bf16.msrb.mxu3 %v4159_v49 }
 0x3d9   :  { %2125 = vmatmul.bf16.vlgmr.msrb.gmra.mxu0 %v1937_v20  ;;  %2138 = vmatmul.bf16.vlgmr.msrb.gmra.mxu1 %v1937_v20 }
 0x3da   :  { %2238 = vmatpush.bf16.msra.mxu0 %v4167_v52  ;;  %2251 = vmatpush.bf16.msra.mxu1 %v4169_v55 }
 0x3db   :  { %2151 = vmatmul.bf16.vlgmr.msrb.gmra.mxu2 %v1937_v20  ;;  %2164 = vmatmul.bf16.vlgmr.msrb.gmra.mxu3 %v1937_v20  ;;  %v6468_v20 = vld [vmem:[#allocation39_spill] sm:$0xff] }
 0x3dc   :  { %2264 = vmatpush.bf16.msra.mxu2 %v4205_v11  ;;  %2277 = vmatpush.bf16.msra.mxu3 %v4177_v60 }
 0x3de   :  { %2239 = vmatpush.bf16.msra.mxu0 %v4207_v13  ;;  %2252 = vmatpush.bf16.msra.mxu1 %v6444_v47 }
 0x3e0   :  { %2265 = vmatpush.bf16.msra.mxu2 %v6445_v46  ;;  %2278 = vmatpush.bf16.msra.mxu3 %v6446_v44 }
 0x3e2   :  { %2240 = vmatpush.bf16.msra.mxu0 %v6447_v63  ;;  %2253 = vmatpush.bf16.msra.mxu1 %v6448_v23 }
 0x3e4   :  { %2266 = vmatpush.bf16.msra.mxu2 %v6449_v4  ;;  %2279 = vmatpush.bf16.msra.mxu3 %v6450_v37 }
 0x3e6   :  { %2241 = vmatpush.bf16.msra.mxu0 %v6451_v2  ;;  %2254 = vmatpush.bf16.msra.mxu1 %v6452_v29  ;;  %v6503_v29 = vld [vmem:[#allocation74_spill] sm:$0xff]  ;;  %v6504_v2 = vld [vmem:[#allocation75_spill] sm:$0xff] }
 0x3e8   :  { %2267 = vmatpush.bf16.msra.mxu2 %v6453_v19  ;;  %2280 = vmatpush.bf16.msra.mxu3 %v6454_v9 }
 0x3ea   :  { %2242 = vmatpush.bf16.msra.mxu0 %v6455_v5  ;;  %2255 = vmatpush.bf16.msra.mxu1 %v6456_v56 }
 0x3ec   :  { %2268 = vmatpush.bf16.msra.mxu2 %v6457_v51  ;;  %2281 = vmatpush.bf16.msra.mxu3 %v6458_v38  ;;  %v6469_v38 = vld [vmem:[#allocation42_spill] sm:$0xff] }
 0x3ee   :  { %2243 = vmatpush.bf16.msra.mxu0 %v6459_v36  ;;  %2256 = vmatpush.bf16.msra.mxu1 %v6460_v0  ;;  %v6470_v36 = vld [vmem:[#allocation43_spill] sm:$0xff]  ;;  %v6471_v0 = vld [vmem:[#allocation40_spill] sm:$0xff] }
 0x3f0   :  { %2269 = vmatpush.bf16.msra.mxu2 %v6461_v39  ;;  %2282 = vmatpush.bf16.msra.mxu3 %v6462_v59  ;;  %v6472_v39 = vld [vmem:[#allocation41_spill] sm:$0xff]  ;;  %v6473_v59 = vld [vmem:[#allocation44_spill] sm:$0xff] }
 0x3f2   :  { %2244 = vmatpush.bf16.msra.mxu0 %v6463_v6  ;;  %2257 = vmatpush.bf16.msra.mxu1 %v6464_v58  ;;  %v6474_v6 = vld [vmem:[#allocation45_spill] sm:$0xff]  ;;  %v6475_v58 = vld [vmem:[#allocation46_spill] sm:$0xff] }
 0x3f4   :  { %2270 = vmatpush.bf16.msra.mxu2 %v6465_v14  ;;  %2283 = vmatpush.bf16.msra.mxu3 %v6466_v22  ;;  %v6476_v14 = vld [vmem:[#allocation47_spill] sm:$0xff]  ;;  %v6477_v22 = vld [vmem:[#allocation48_spill] sm:$0xff] }
 0x3f6   :  { %2245 = vmatpush.bf16.msra.mxu0 %v6467_v50  ;;  %2258 = vmatpush.bf16.msra.mxu1 %v6468_v20  ;;  %v6478_v50 = vld [vmem:[#allocation49_spill] sm:$0xff]  ;;  %v6479_v20 = vld [vmem:[#allocation50_spill] sm:$0xff] }
 0x3f8   :  { %2271 = vmatpush.bf16.msra.mxu2 %v6471_v0  ;;  %2284 = vmatpush.bf16.msra.mxu3 %v6472_v39  ;;  %v6482_v0 = vld [vmem:[#allocation53_spill] sm:$0xff]  ;;  %v6483_v39 = vld [vmem:[#allocation54_spill] sm:$0xff] }
 0x3fa   :  { %2290 = vmatpush.bf16.msrb.mxu0 %v6469_v38  ;;  %2303 = vmatpush.bf16.msrb.mxu1 %v6470_v36  ;;  %v6480_v38 = vld [vmem:[#allocation51_spill] sm:$0xff]  ;;  %v6481_v36 = vld [vmem:[#allocation52_spill] sm:$0xff] }
 0x3fc   :  { %2316 = vmatpush.bf16.msrb.mxu2 %v6473_v59  ;;  %2329 = vmatpush.bf16.msrb.mxu3 %v6474_v6  ;;  %v6484_v59 = vld [vmem:[#allocation55_spill] sm:$0xff]  ;;  %v6485_v6 = vld [vmem:[#allocation56_spill] sm:$0xff] }
 0x3fe   :  { %2291 = vmatpush.bf16.msrb.mxu0 %v6475_v58  ;;  %2304 = vmatpush.bf16.msrb.mxu1 %v6476_v14  ;;  %v6486_v58 = vld [vmem:[#allocation57_spill] sm:$0xff]  ;;  %v6487_v14 = vld [vmem:[#allocation58_spill] sm:$0xff] }
 0x400   :  { %2317 = vmatpush.bf16.msrb.mxu2 %v6477_v22  ;;  %2330 = vmatpush.bf16.msrb.mxu3 %v6478_v50  ;;  %v6488_v22 = vld [vmem:[#allocation59_spill] sm:$0xff]  ;;  %v6489_v50 = vld [vmem:[#allocation60_spill] sm:$0xff] }
 0x402   :  { %2292 = vmatpush.bf16.msrb.mxu0 %v6479_v20  ;;  %2305 = vmatpush.bf16.msrb.mxu1 %v6480_v38  ;;  %v6490_v20 = vld [vmem:[#allocation61_spill] sm:$0xff]  ;;  %v6491_v38 = vld [vmem:[#allocation62_spill] sm:$0xff] }
 0x404   :  { %2318 = vmatpush.bf16.msrb.mxu2 %v6481_v36  ;;  %2331 = vmatpush.bf16.msrb.mxu3 %v6482_v0  ;;  %v6492_v36 = vld [vmem:[#allocation63_spill] sm:$0xff]  ;;  %v6493_v0 = vld [vmem:[#allocation64_spill] sm:$0xff] }
 0x406   :  { %2293 = vmatpush.bf16.msrb.mxu0 %v6483_v39  ;;  %2306 = vmatpush.bf16.msrb.mxu1 %v6484_v59  ;;  %v6494_v39 = vld [vmem:[#allocation65_spill] sm:$0xff]  ;;  %v6495_v59 = vld [vmem:[#allocation66_spill] sm:$0xff] }
 0x408   :  { %2319 = vmatpush.bf16.msrb.mxu2 %v6485_v6  ;;  %2332 = vmatpush.bf16.msrb.mxu3 %v6486_v58  ;;  %v6496_v6 = vld [vmem:[#allocation67_spill] sm:$0xff]  ;;  %v6497_v58 = vld [vmem:[#allocation68_spill] sm:$0xff] }
 0x40a   :  { %2294 = vmatpush.bf16.msrb.mxu0 %v6487_v14  ;;  %2307 = vmatpush.bf16.msrb.mxu1 %v6488_v22  ;;  %v6498_v14 = vld [vmem:[#allocation69_spill] sm:$0xff]  ;;  %v6499_v22 = vld [vmem:[#allocation70_spill] sm:$0xff] }
 0x40c   :  { %2320 = vmatpush.bf16.msrb.mxu2 %v6489_v50  ;;  %2333 = vmatpush.bf16.msrb.mxu3 %v6490_v20  ;;  %v6500_v50 = vld [vmem:[#allocation71_spill] sm:$0xff]  ;;  %v6501_v20 = vld [vmem:[#allocation72_spill] sm:$0xff] }
 0x40e   :  { %2295 = vmatpush.bf16.msrb.mxu0 %v6491_v38  ;;  %2308 = vmatpush.bf16.msrb.mxu1 %v6492_v36  ;;  %v6502_v38 = vld [vmem:[#allocation73_spill] sm:$0xff] }
 0x410   :  { %2321 = vmatpush.bf16.msrb.mxu2 %v6493_v0  ;;  %2334 = vmatpush.bf16.msrb.mxu3 %v6494_v39 }
 0x412   :  { %2296 = vmatpush.bf16.msrb.mxu0 %v6495_v59  ;;  %2309 = vmatpush.bf16.msrb.mxu1 %v6496_v6 }
 0x414   :  { %2322 = vmatpush.bf16.msrb.mxu2 %v6497_v58  ;;  %2335 = vmatpush.bf16.msrb.mxu3 %v6498_v14 }
 0x416   :  { %2297 = vmatpush.bf16.msrb.mxu0 %v6499_v22  ;;  %2310 = vmatpush.bf16.msrb.mxu1 %v6500_v50 }
 0x418   :  { %2323 = vmatpush.bf16.msrb.mxu2 %v6501_v20  ;;  %2336 = vmatpush.bf16.msrb.mxu3 %v6502_v38 }
 0x435   :  { %v1948_v36 = vpop.f32.mrf.mxu0  ;;  %v1961_v0 = vpop.f32.mrf.mxu1 }
 0x43c   :  { %v1974_v51 = vpop.f32.mrf.mxu2  ;;  %v1987_v39 = vpop.f32.mrf.mxu3 }
 0x43d   :  { %v1950_v56 = vpop.f32.mrf.mxu0  ;;  %v1963_v59 = vpop.f32.mrf.mxu1 }
 0x43e   :  { %v6505_v59 = vld [vmem:[#allocation76_spill] sm:$0xff] }
 0x444   :  { %v1976_v5 = vpop.f32.mrf.mxu2  ;;  %v1989_v6 = vpop.f32.mrf.mxu3 }
 0x445   :  { %v2000_v9 = vpop.f32.mrf.mxu0  ;;  %v2013_v58 = vpop.f32.mrf.mxu1 }
 0x446   :  { %v2001_v19 = vadd.f32 %v2000_v9, %v1948_v36  ;;  %v2014_v14 = vadd.f32 %v2013_v58, %v1961_v0 }
 0x448   :  { %v2043_v22 = vadd.f32 %v2001_v19, %v6503_v29  ;;  %v2044_v50 = vadd.f32 %v2014_v14, %v6504_v2 }
 0x44a   :  { %v3447_v37 = vmul.f32 -1.442695, %v2043_v22  ;;  %v3448_v20 = vmul.f32 -1.442695, %v2044_v50 }
 0x44c   :  { %3725 = vpow2.f32 %v3447_v37  ;;  %v2026_v38 = vpop.f32.mrf.mxu2  ;;  %v2039_v4 = vpop.f32.mrf.mxu3  ;;  %v3451_v37 = vld [vmem:[%s5979_s0 + $0xa0] sm:$0xff] }
 0x44d   :  { %3727 = vpow2.f32 %v3448_v20  ;;  %v2040_v23 = vadd.f32 %v2039_v4, %v1987_v39  ;;  %v2002_v63 = vpop.f32.mrf.mxu0  ;;  %v2015_v56 = vpop.f32.mrf.mxu1  ;;  %v2027_v39 = vadd.f32 %v2026_v38, %v1974_v51 }
 0x44e   :  { %v3452_v63 = vld [vmem:[%s5979_s0 + $0xa8] sm:$0xff]  ;;  %v6506_v56 = vld [vmem:[#allocation77_spill] sm:$0xff] }
 0x44f   :  { %v2046_v5 = vadd.f32 %v2040_v23, %v6505_v59 }
 0x451   :  { %v3449_v6 = vmul.f32 -1.442695, %v2046_v5  ;;  %v2045_v5 = vadd.f32 %v2027_v39, %v6506_v56 }
 0x452   :  { %v3726_v44 = vpop.eup %3725 }
 0x453   :  { %v3728_v46 = vpop.eup %3727  ;;  %v2050_v9 = vadd.f32 1.0, %v3726_v44  ;;  %3729 = vpow2.f32 %v3449_v6  ;;  %v3454_v6 = vld [vmem:[%s5979_s0 + $0xb8] sm:$0xff] }
 0x454   :  { %v5557_v36 = vadd.f32 1.0, %v3728_v46  ;;  %v2028_v19 = vpop.f32.mrf.mxu2  ;;  %v2041_v0 = vpop.f32.mrf.mxu3 }
 0x455   :  { %3731 = vrcp.f32 %v2050_v9  ;;  %v2060_v39 = vand.u32 2147483647, %v2050_v9  ;;  %vm2056_vm14 = vweird.f32 %v2050_v9 }
 0x456   :  { %3733 = vrcp.f32 %v5557_v36  ;;  %v2126_v23 = vpop.f32.mrf.mxu0  ;;  %v2139_v4 = vpop.f32.mrf.mxu1  ;;  %vm2075_vm15 = vweird.f32 %v5557_v36 }
 0x457   :  { %v2169_v44 = vadd.f32 %v3451_v37, %v2126_v23  ;;  %v2170_v58 = vadd.f32 %v3452_v63, %v2139_v4  ;;  %vm2061_vm1 = vcmp.eq.f32.partialorder %v2060_v39, 8.507059e+37 }
 0x459   :  { %v3730_v46 = vpop.eup %3729  ;;  %v3455_v14 = vmul.f32 -1.442695, %v2169_v44  ;;  %v3456_v22 = vmul.f32 -1.442695, %v2170_v58 }
 0x45a   :  { %v5566_v50 = vadd.f32 1.0, %v3730_v46  ;;  %v2062_v46 = vand.u32 2147483648, %v2050_v9 }
 0x45b   :  { %v3732_v20 = vpop.eup %3731  ;;  %3735 = vpow2.f32 %v3455_v14  ;;  %v2081_v14 = vand.u32 2147483648, %v5557_v36 }
 0x45c   :  { %v3734_v19 = vpop.eup %3733  ;;  %v2052_v0 = vmul.f32 %v3732_v20, %v2050_v9  ;;  %3737 = vrcp.f32 %v5566_v50  ;;  %vm2057_vm12 = vweird.f32 %v3732_v20  ;;  %vm2095_vm5 = vweird.f32 %v5566_v50 }
 0x45d   :  { %v2071_v51 = vmul.f32 %v3734_v19, %v5557_v36  ;;  %3739 = vpow2.f32 %v3456_v22  ;;  %vm2076_vm13 = vweird.f32 %v3734_v19  ;;  %v2079_v22 = vand.u32 2147483647, %v5557_v36  ;;  %vm2058_vm0 = vmor %vm2056_vm14, %vm2057_vm12 }
 0x45e   :  { %v2152_v38 = vpop.f32.mrf.mxu2  ;;  %v2165_v37 = vpop.f32.mrf.mxu3  ;;  %v2053_v63 = vsub.f32 1.0, %v2052_v0  ;;  %3741 = vtanh.f32 %v2045_v5  ;;  %vm2077_vm2 = vmor %vm2075_vm15, %vm2076_vm13  ;;  %v2082_v9 = vor.u32 1.1754944e-38, %v2081_v14 }
 0x45f   :  { %v2172_v23 = vadd.f32 %v3454_v6, %v2165_v37  ;;  %v2128_v4 = vpop.f32.mrf.mxu0  ;;  %v2141_v44 = vpop.f32.mrf.mxu1  ;;  %v2072_v58 = vsub.f32 1.0, %v2071_v51  ;;  %v2063_v51 = vor.u32 1.1754944e-38, %v2062_v46  ;;  %vm2080_vm3 = vcmp.eq.f32.partialorder %v2079_v22, 8.507059e+37 }
 0x460   :  { %v2054_v56 = vmul.f32 %v3732_v20, %v2053_v63 }
 0x461   :  { %v3457_v59 = vmul.f32 -1.442695, %v2172_v23  ;;  %v3736_v2 = vpop.eup %3735  ;;  %v2073_v29 = vmul.f32 %v3734_v19, %v2072_v58 }
 0x462   :  { %v5576_v47 = vpop.eup %3737  ;;  %v2055_v6 = vadd.f32 %v3732_v20, %v2054_v56  ;;  %v5579_v0 = vadd.f32 1.0, %v3736_v2 }
 0x463   :  { %3743 = vpow2.f32 %v3457_v59  ;;  %v3740_v5 = vpop.eup %3739  ;;  %v2074_v37 = vadd.f32 %v3734_v19, %v2073_v29  ;;  %v2091_v63 = vmul.f32 %v5576_v47, %v5566_v50  ;;  %vm2096_vm4 = vweird.f32 %v5576_v47 }
 0x464   :  { %v2059_v23 = vsel %vm2058_vm0, %v3732_v20, %v2055_v6  ;;  %3745 = vrcp.f32 %v5579_v0  ;;  %v5584_v4 = vadd.f32 1.0, %v3740_v5  ;;  %v3742_v36 = vpop.eup %3741  ;;  %v3453_v20 = vld [vmem:[%s5979_s0 + $0xb0] sm:$0xff]  ;;  %vm5604_vm6 = vmor %vm2095_vm5, %vm2096_vm4  ;;  %vm2182_vm8 = vweird.f32 %v5579_v0 }
 0x465   :  { %v2064_v56 = vsel %vm2061_vm1, %v2063_v51, %v2059_v23  ;;  %v2078_v2 = vsel %vm2077_vm2, %v3734_v19, %v2074_v37  ;;  %v2092_v59 = vsub.f32 1.0, %v2091_v63  ;;  %v2101_v51 = vand.u32 2147483648, %v5566_v50 }
 0x466   :  { %v2154_v44 = vpop.f32.mrf.mxu2  ;;  %v2167_v58 = vpop.f32.mrf.mxu3  ;;  %v2083_v39 = vsel %vm2080_vm3, %v2082_v9, %v2078_v2  ;;  %v2106_v46 = vmul.f32 %v3742_v36, %v2064_v56  ;;  %3747 = vrcp.f32 %v5584_v4  ;;  %v2171_v37 = vadd.f32 %v3453_v20, %v2152_v38 }
 0x467   :  { %v2105_v29 = vmul.f32 %v2083_v39, %v5421_v18  ;;  %v2093_v14 = vmul.f32 %v5576_v47, %v2092_v59  ;;  %v2099_v23 = vand.u32 2147483647, %v5566_v50  ;;  %v2102_v2 = vor.u32 1.1754944e-38, %v2101_v51 }
 0x468   :  { %v2188_v59 = vand.u32 2147483648, %v5579_v0  ;;  %v2186_v50 = vand.u32 2147483647, %v5579_v0  ;;  %vm2201_vm11 = vweird.f32 %v5584_v4 }
 0x469   :  { %v3744_v6 = vpop.eup %3743  ;;  %v5592_v5 = vadd.f32 %v2106_v46, %v2105_v29  ;;  %v2094_v63 = vadd.f32 %v5576_v47, %v2093_v14  ;;  %v2207_v46 = vand.u32 2147483648, %v5584_v4  ;;  %v2205_v29 = vand.u32 2147483647, %v5584_v4 }
 0x46a   :  { %v5594_v19 = vadd.f32 1.0, %v3744_v6  ;;  %v3746_v22 = vpop.eup %3745  ;;  %vm2100_vm9 = vcmp.eq.f32.partialorder %v2099_v23, 8.507059e+37  ;;  %vm2187_vm13 = vcmp.eq.f32.partialorder %v2186_v50, 8.507059e+37 }
 0x46b   :  { %3749 = vtanh.f32 %v5592_v5  ;;  %v2178_v18 = vmul.f32 %v3746_v22, %v5579_v0  ;;  %v2098_v44 = vsel %vm5604_vm6, %v5576_v47, %v2094_v63  ;;  %vm2183_vm7 = vweird.f32 %v3746_v22 }
 0x46c   :  { %v3748_v9 = vpop.eup %3747  ;;  %3751 = vrcp.f32 %v5594_v19  ;;  %v2103_v51 = vsel %vm2100_vm9, %v2102_v2, %v2098_v44  ;;  %vm2184_vm12 = vmor %vm2182_vm8, %vm2183_vm7  ;;  %v2189_v47 = vor.u32 1.1754944e-38, %v2188_v59  ;;  %vm2206_vm15 = vcmp.eq.f32.partialorder %v2205_v29, 8.507059e+37 }
 0x46d   :  { %v2179_v56 = vsub.f32 1.0, %v2178_v18  ;;  %v2197_v38 = vmul.f32 %v3748_v9, %v5584_v4  ;;  %3753 = vtanh.f32 %v2171_v37  ;;  %vm2202_vm10 = vweird.f32 %v3748_v9 }
 0x46e   :  { %vm2203_vm14 = vmor %vm2201_vm11, %vm2202_vm10  ;;  %vm2221_vm1 = vweird.f32 %v5594_v19 }
 0x46f   :  { %v2198_v58 = vsub.f32 1.0, %v2197_v38  ;;  %v2180_v39 = vmul.f32 %v3746_v22, %v2179_v56  ;;  %v2208_v38 = vor.u32 1.1754944e-38, %v2207_v46  ;;  %v2227_v46 = vand.u32 2147483648, %v5594_v19 }
 0x471   :  { %v3750_v14 = vpop.eup %3749  ;;  %v2199_v20 = vmul.f32 %v3748_v9, %v2198_v58  ;;  %v2181_v6 = vadd.f32 %v3746_v22, %v2180_v39 }
 0x472   :  { %v3752_v37 = vpop.eup %3751  ;;  %v2109_v63 = vmul.f32 %v3750_v14, %v2103_v51  ;;  %v2228_v14 = vor.u32 1.1754944e-38, %v2227_v46  ;;  %v6526_v46 = vld [vmem:[#allocation33_spill] sm:$0xff] }
 0x473   :  { %v2185_v18 = vsel %vm2184_vm12, %v3746_v22, %v2181_v6  ;;  %v2200_v36 = vadd.f32 %v3748_v9, %v2199_v20  ;;  %v2217_v56 = vmul.f32 %v3752_v37, %v5594_v19  ;;  %v3754_v0 = vpop.eup %3753  ;;  %vm2222_vm0 = vweird.f32 %v3752_v37 }
 0x474   :  { %v2190_v23 = vsel %vm2187_vm13, %v2189_v47, %v2185_v18  ;;  %3450 = vst [vmem:[%s5981_s5 + $0x20] sm:$0xff] %v2109_v63  ;;  %v2237_v2 = vpack.c.bf16 %v2109_v63, %v2109_v63  ;;  %vm2223_vm2 = vmor %vm2221_vm1, %vm2222_vm0  ;;  %v6510_v47 = vld [vmem:[#allocation17_spill] sm:$0xff]  ;;  %v6511_v63 = vld [vmem:[#allocation16_spill] sm:$0xff] }
 0x475   :  { %v2204_v44 = vsel %vm2203_vm14, %v3748_v9, %v2200_v36  ;;  %v2232_v4 = vmul.f32 %v3754_v0, %v2190_v23  ;;  %v2218_v58 = vsub.f32 1.0, %v2217_v56  ;;  %v6512_v18 = vld [vmem:[#allocation18_spill] sm:$0xff]  ;;  %v6513_v36 = vld [vmem:[#allocation19_spill] sm:$0xff]  ;;  %v6514_v56 = vld [vmem:[#allocation21_spill] sm:$0xff] }
 0x476   :  { %v2209_v59 = vsel %vm2206_vm15, %v2208_v38, %v2204_v44  ;;  %2246 = vmatmul.bf16.vlgmr.msra.gmra.mxu0 %v2237_v2  ;;  %2259 = vmatmul.bf16.vlgmr.msra.gmra.mxu1 %v2237_v2  ;;  %v6515_v0 = vld [vmem:[#allocation20_spill] sm:$0xff]  ;;  %v6516_v38 = vld [vmem:[#allocation22_spill] sm:$0xff]  ;;  %v6517_v23 = vld [vmem:[#allocation23_spill] sm:$0xff] }
 0x477   :  { %v2231_v22 = vmul.f32 %v2209_v59, %v5454_v62  ;;  %v2219_v39 = vmul.f32 %v3752_v37, %v2218_v58  ;;  %2272 = vmatmul.bf16.vlgmr.msra.gmra.mxu2 %v2237_v2  ;;  %2285 = vmatmul.bf16.vlgmr.msra.gmra.mxu3 %v2237_v2  ;;  %v2225_v62 = vand.u32 2147483647, %v5594_v19  ;;  %v6518_v2 = vld [vmem:[#allocation25_spill] sm:$0xff]  ;;  %v6519_v44 = vld [vmem:[#allocation24_spill] sm:$0xff]  ;;  %v6521_v58 = vld [vmem:[#allocation27_spill] sm:$0xff] }
 0x478   :  { %2416 = vmatpush.bf16.msra.mxu0 %v3877_v3  ;;  %2429 = vmatpush.bf16.msra.mxu1 %v3888_v7  ;;  %v6522_v59 = vld [vmem:[#allocation29_spill] sm:$0xff] }
 0x479   :  { %v5625_v50 = vadd.f32 %v2232_v4, %v2231_v22  ;;  %2442 = vmatpush.bf16.msra.mxu2 %v3928_v21  ;;  %2455 = vmatpush.bf16.msra.mxu3 %v3890_v8  ;;  %v2220_v9 = vadd.f32 %v3752_v37, %v2219_v39  ;;  %vm2226_vm3 = vcmp.eq.f32.partialorder %v2225_v62, 8.507059e+37  ;;  %v6520_v4 = vld [vmem:[#allocation26_spill] sm:$0xff]  ;;  %v6523_v22 = vld [vmem:[#allocation28_spill] sm:$0xff] }
 0x47a   :  { %v6524_v39 = vld [vmem:[#allocation30_spill] sm:$0xff]  ;;  %v6527_v62 = vld [vmem:[#allocation32_spill] sm:$0xff] }
 0x47b   :  { %3755 = vtanh.f32 %v5625_v50  ;;  %v2224_v29 = vsel %vm2223_vm2, %v3752_v37, %v2220_v9  ;;  %v6509_v37 = vld [vmem:[#allocation15_spill] sm:$0xff] }
 0x47c   :  { %2417 = vmatpush.bf16.msra.mxu0 %v3902_v12  ;;  %2430 = vmatpush.bf16.msra.mxu1 %v3915_v16  ;;  %v2229_v6 = vsel %vm2226_vm3, %v2228_v14, %v2224_v29  ;;  %v6525_v9 = vld [vmem:[#allocation31_spill] sm:$0xff]  ;;  %v6528_v29 = vld [vmem:[#allocation34_spill] sm:$0xff] }
 0x47d   :  { %2443 = vmatpush.bf16.msra.mxu2 %v3967_v34  ;;  %2456 = vmatpush.bf16.msra.mxu3 %v3917_v17  ;;  %v6529_v14 = vld [vmem:[#allocation35_spill] sm:$0xff] }
 0x480   :  { %2418 = vmatpush.bf16.msra.mxu0 %v3950_v28  ;;  %2431 = vmatpush.bf16.msra.mxu1 %v3963_v32 }
 0x481   :  { %v3756_v20 = vpop.eup %3755  ;;  %2444 = vmatpush.bf16.msra.mxu2 %v3991_v42  ;;  %2457 = vmatpush.bf16.msra.mxu3 %v3965_v33 }
 0x482   :  { %v2235_v19 = vmul.f32 %v3756_v20, %v2229_v6  ;;  %v6530_v20 = vld [vmem:[#allocation37_spill] sm:$0xff]  ;;  %v6531_v6 = vld [vmem:[#allocation36_spill] sm:$0xff] }
 0x484   :  { %v2236_v51 = vpack.c.bf16 %v2235_v19, %v2235_v19  ;;  %2419 = vmatpush.bf16.msra.mxu0 %v3989_v41  ;;  %2432 = vmatpush.bf16.msra.mxu1 %v4001_v45  ;;  %v6532_v19 = vld [vmem:[#allocation38_spill] sm:$0xff] }
 0x485   :  { %2445 = vmatpush.bf16.msra.mxu2 %v4027_v54  ;;  %2458 = vmatpush.bf16.msra.mxu3 %v6249_v31 }
 0x486   :  { %2298 = vmatmul.bf16.vlgmr.msrb.gmra.mxu0 %v2236_v51  ;;  %2311 = vmatmul.bf16.vlgmr.msrb.gmra.mxu1 %v2236_v51 }
 0x487   :  { %2324 = vmatmul.bf16.vlgmr.msrb.gmra.mxu2 %v2236_v51  ;;  %2337 = vmatmul.bf16.vlgmr.msrb.gmra.mxu3 %v2236_v51 }
 0x488   :  { %2420 = vmatpush.bf16.msra.mxu0 %v6250_v61  ;;  %2433 = vmatpush.bf16.msra.mxu1 %v6251_v24 }
 0x489   :  { %2446 = vmatpush.bf16.msra.mxu2 %v6252_v53  ;;  %2459 = vmatpush.bf16.msra.mxu3 %v6253_v27 }
 0x48c   :  { %2421 = vmatpush.bf16.msra.mxu0 %v4061_v1  ;;  %2434 = vmatpush.bf16.msra.mxu1 %v6254_v57 }
 0x48d   :  { %2447 = vmatpush.bf16.msra.mxu2 %v6255_v35  ;;  %2460 = vmatpush.bf16.msra.mxu3 %v6256_v15 }
 0x490   :  { %2422 = vmatpush.bf16.msra.mxu0 %v6257_v30  ;;  %2435 = vmatpush.bf16.msra.mxu1 %v4112_v25 }
 0x491   :  { %2448 = vmatpush.bf16.msra.mxu2 %v4147_v43  ;;  %2461 = vmatpush.bf16.msra.mxu3 %v4114_v26 }
 0x494   :  { %2423 = vmatpush.bf16.msra.mxu0 %v4145_v40  ;;  %2436 = vmatpush.bf16.msra.mxu1 %v4157_v48 }
 0x495   :  { %2449 = vmatpush.bf16.msra.mxu2 %v4201_v10  ;;  %2462 = vmatpush.bf16.msra.mxu3 %v4159_v49 }
 0x497   :  { %2424 = vmatmul.bf16.vlgmr.msra.gmra.mxu0 %v2236_v51  ;;  %2437 = vmatmul.bf16.vlgmr.msra.gmra.mxu1 %v2236_v51 }
 0x498   :  { %2537 = vmatpush.bf16.msrb.mxu0 %v4167_v52  ;;  %2550 = vmatpush.bf16.msrb.mxu1 %v4169_v55 }
 0x499   :  { %2450 = vmatmul.bf16.vlgmr.msra.gmra.mxu2 %v2236_v51  ;;  %2463 = vmatmul.bf16.vlgmr.msra.gmra.mxu3 %v2236_v51  ;;  %v6533_v51 = vld [vmem:[#allocation39_spill] sm:$0xff] }
 0x49a   :  { %2563 = vmatpush.bf16.msrb.mxu2 %v4205_v11  ;;  %2576 = vmatpush.bf16.msrb.mxu3 %v4177_v60 }
 0x49c   :  { %2538 = vmatpush.bf16.msrb.mxu0 %v4207_v13  ;;  %2551 = vmatpush.bf16.msrb.mxu1 %v6509_v37 }
 0x49e   :  { %2564 = vmatpush.bf16.msrb.mxu2 %v6510_v47  ;;  %2577 = vmatpush.bf16.msrb.mxu3 %v6511_v63 }
 0x4a0   :  { %2539 = vmatpush.bf16.msrb.mxu0 %v6512_v18  ;;  %2552 = vmatpush.bf16.msrb.mxu1 %v6513_v36 }
 0x4a2   :  { %2565 = vmatpush.bf16.msrb.mxu2 %v6514_v56  ;;  %2578 = vmatpush.bf16.msrb.mxu3 %v6515_v0 }
 0x4a4   :  { %2540 = vmatpush.bf16.msrb.mxu0 %v6516_v38  ;;  %2553 = vmatpush.bf16.msrb.mxu1 %v6517_v23  ;;  %v6568_v23 = vld [vmem:[#allocation74_spill] sm:$0xff]  ;;  %v6569_v38 = vld [vmem:[#allocation75_spill] sm:$0xff] }
 0x4a6   :  { %2566 = vmatpush.bf16.msrb.mxu2 %v6518_v2  ;;  %2579 = vmatpush.bf16.msrb.mxu3 %v6519_v44 }
 0x4a8   :  { %2541 = vmatpush.bf16.msrb.mxu0 %v6520_v4  ;;  %2554 = vmatpush.bf16.msrb.mxu1 %v6521_v58 }
 0x4aa   :  { %2567 = vmatpush.bf16.msrb.mxu2 %v6522_v59  ;;  %2580 = vmatpush.bf16.msrb.mxu3 %v6523_v22  ;;  %v6534_v22 = vld [vmem:[#allocation42_spill] sm:$0xff] }
 0x4ac   :  { %2542 = vmatpush.bf16.msrb.mxu0 %v6524_v39  ;;  %2555 = vmatpush.bf16.msrb.mxu1 %v6525_v9  ;;  %v6535_v39 = vld [vmem:[#allocation43_spill] sm:$0xff]  ;;  %v6536_v9 = vld [vmem:[#allocation40_spill] sm:$0xff] }
 0x4ae   :  { %2568 = vmatpush.bf16.msrb.mxu2 %v6526_v46  ;;  %2581 = vmatpush.bf16.msrb.mxu3 %v6527_v62  ;;  %v6537_v46 = vld [vmem:[#allocation41_spill] sm:$0xff]  ;;  %v6538_v62 = vld [vmem:[#allocation44_spill] sm:$0xff] }
 0x4b0   :  { %2543 = vmatpush.bf16.msrb.mxu0 %v6528_v29  ;;  %2556 = vmatpush.bf16.msrb.mxu1 %v6529_v14  ;;  %v6539_v29 = vld [vmem:[#allocation45_spill] sm:$0xff]  ;;  %v6540_v14 = vld [vmem:[#allocation46_spill] sm:$0xff] }
 0x4b2   :  { %2569 = vmatpush.bf16.msrb.mxu2 %v6530_v20  ;;  %2582 = vmatpush.bf16.msrb.mxu3 %v6531_v6  ;;  %v6541_v20 = vld [vmem:[#allocation47_spill] sm:$0xff]  ;;  %v6542_v6 = vld [vmem:[#allocation48_spill] sm:$0xff] }
 0x4b4   :  { %2544 = vmatpush.bf16.msrb.mxu0 %v6532_v19  ;;  %2557 = vmatpush.bf16.msrb.mxu1 %v6533_v51  ;;  %v6543_v19 = vld [vmem:[#allocation49_spill] sm:$0xff]  ;;  %v6544_v51 = vld [vmem:[#allocation50_spill] sm:$0xff] }
 0x4b6   :  { %2570 = vmatpush.bf16.msrb.mxu2 %v6536_v9  ;;  %2583 = vmatpush.bf16.msrb.mxu3 %v6537_v46  ;;  %v6547_v9 = vld [vmem:[#allocation53_spill] sm:$0xff]  ;;  %v6548_v46 = vld [vmem:[#allocation54_spill] sm:$0xff] }
 0x4b8   :  { %2589 = vmatpush.bf16.msra.mxu0 %v6534_v22  ;;  %2602 = vmatpush.bf16.msra.mxu1 %v6535_v39  ;;  %v6545_v22 = vld [vmem:[#allocation51_spill] sm:$0xff]  ;;  %v6546_v39 = vld [vmem:[#allocation52_spill] sm:$0xff] }
 0x4ba   :  { %2615 = vmatpush.bf16.msra.mxu2 %v6538_v62  ;;  %2628 = vmatpush.bf16.msra.mxu3 %v6539_v29  ;;  %v6549_v62 = vld [vmem:[#allocation55_spill] sm:$0xff]  ;;  %v6550_v29 = vld [vmem:[#allocation56_spill] sm:$0xff] }
 0x4bc   :  { %2590 = vmatpush.bf16.msra.mxu0 %v6540_v14  ;;  %2603 = vmatpush.bf16.msra.mxu1 %v6541_v20  ;;  %v6551_v14 = vld [vmem:[#allocation57_spill] sm:$0xff]  ;;  %v6552_v20 = vld [vmem:[#allocation58_spill] sm:$0xff] }
 0x4be   :  { %2616 = vmatpush.bf16.msra.mxu2 %v6542_v6  ;;  %2629 = vmatpush.bf16.msra.mxu3 %v6543_v19  ;;  %v6553_v6 = vld [vmem:[#allocation59_spill] sm:$0xff]  ;;  %v6554_v19 = vld [vmem:[#allocation60_spill] sm:$0xff] }
 0x4c0   :  { %2591 = vmatpush.bf16.msra.mxu0 %v6544_v51  ;;  %2604 = vmatpush.bf16.msra.mxu1 %v6545_v22  ;;  %v6555_v51 = vld [vmem:[#allocation61_spill] sm:$0xff]  ;;  %v6556_v22 = vld [vmem:[#allocation62_spill] sm:$0xff] }
 0x4c2   :  { %2617 = vmatpush.bf16.msra.mxu2 %v6546_v39  ;;  %2630 = vmatpush.bf16.msra.mxu3 %v6547_v9  ;;  %v6557_v39 = vld [vmem:[#allocation63_spill] sm:$0xff]  ;;  %v6558_v9 = vld [vmem:[#allocation64_spill] sm:$0xff] }
 0x4c4   :  { %2592 = vmatpush.bf16.msra.mxu0 %v6548_v46  ;;  %2605 = vmatpush.bf16.msra.mxu1 %v6549_v62  ;;  %v6559_v46 = vld [vmem:[#allocation65_spill] sm:$0xff]  ;;  %v6560_v62 = vld [vmem:[#allocation66_spill] sm:$0xff] }
 0x4c6   :  { %2618 = vmatpush.bf16.msra.mxu2 %v6550_v29  ;;  %2631 = vmatpush.bf16.msra.mxu3 %v6551_v14  ;;  %v6561_v29 = vld [vmem:[#allocation67_spill] sm:$0xff]  ;;  %v6562_v14 = vld [vmem:[#allocation68_spill] sm:$0xff] }
 0x4c8   :  { %2593 = vmatpush.bf16.msra.mxu0 %v6552_v20  ;;  %2606 = vmatpush.bf16.msra.mxu1 %v6553_v6  ;;  %v6563_v20 = vld [vmem:[#allocation69_spill] sm:$0xff]  ;;  %v6564_v6 = vld [vmem:[#allocation70_spill] sm:$0xff] }
 0x4ca   :  { %2619 = vmatpush.bf16.msra.mxu2 %v6554_v19  ;;  %2632 = vmatpush.bf16.msra.mxu3 %v6555_v51  ;;  %v6565_v19 = vld [vmem:[#allocation71_spill] sm:$0xff]  ;;  %v6566_v51 = vld [vmem:[#allocation72_spill] sm:$0xff] }
 0x4cc   :  { %2594 = vmatpush.bf16.msra.mxu0 %v6556_v22  ;;  %2607 = vmatpush.bf16.msra.mxu1 %v6557_v39  ;;  %v6567_v22 = vld [vmem:[#allocation73_spill] sm:$0xff] }
 0x4ce   :  { %2620 = vmatpush.bf16.msra.mxu2 %v6558_v9  ;;  %2633 = vmatpush.bf16.msra.mxu3 %v6559_v46 }
 0x4d0   :  { %2595 = vmatpush.bf16.msra.mxu0 %v6560_v62  ;;  %2608 = vmatpush.bf16.msra.mxu1 %v6561_v29 }
 0x4d2   :  { %2621 = vmatpush.bf16.msra.mxu2 %v6562_v14  ;;  %2634 = vmatpush.bf16.msra.mxu3 %v6563_v20 }
 0x4d4   :  { %2596 = vmatpush.bf16.msra.mxu0 %v6564_v6  ;;  %2609 = vmatpush.bf16.msra.mxu1 %v6565_v19 }
 0x4d6   :  { %2622 = vmatpush.bf16.msra.mxu2 %v6566_v51  ;;  %2635 = vmatpush.bf16.msra.mxu3 %v6567_v22 }
 0x4f3   :  { %v2247_v39 = vpop.f32.mrf.mxu0  ;;  %v2260_v9 = vpop.f32.mrf.mxu1 }
 0x4fa   :  { %v2273_v59 = vpop.f32.mrf.mxu2  ;;  %v2286_v46 = vpop.f32.mrf.mxu3 }
 0x4fb   :  { %v2249_v58 = vpop.f32.mrf.mxu0  ;;  %v2262_v62 = vpop.f32.mrf.mxu1 }
 0x4fc   :  { %v6570_v62 = vld [vmem:[#allocation76_spill] sm:$0xff] }
 0x502   :  { %v2275_v4 = vpop.f32.mrf.mxu2  ;;  %v2288_v29 = vpop.f32.mrf.mxu3 }
 0x503   :  { %v2299_v44 = vpop.f32.mrf.mxu0  ;;  %v2312_v14 = vpop.f32.mrf.mxu1 }
 0x504   :  { %v2300_v2 = vadd.f32 %v2299_v44, %v2247_v39  ;;  %v2313_v20 = vadd.f32 %v2312_v14, %v2260_v9 }
 0x506   :  { %v2342_v6 = vadd.f32 %v2300_v2, %v6568_v23  ;;  %v2343_v19 = vadd.f32 %v2313_v20, %v6569_v38 }
 0x508   :  { %v3458_v0 = vmul.f32 -1.442695, %v2342_v6  ;;  %v3459_v51 = vmul.f32 -1.442695, %v2343_v19 }
 0x50a   :  { %3757 = vpow2.f32 %v3458_v0  ;;  %v2325_v22 = vpop.f32.mrf.mxu2  ;;  %v2338_v56 = vpop.f32.mrf.mxu3  ;;  %v3462_v0 = vld [vmem:[%s5979_s0 + $0xc0] sm:$0xff] }
 0x50b   :  { %3759 = vpow2.f32 %v3459_v51  ;;  %v2339_v36 = vadd.f32 %v2338_v56, %v2286_v46  ;;  %v2301_v18 = vpop.f32.mrf.mxu0  ;;  %v2314_v58 = vpop.f32.mrf.mxu1  ;;  %v2326_v46 = vadd.f32 %v2325_v22, %v2273_v59 }
 0x50c   :  { %v3463_v18 = vld [vmem:[%s5979_s0 + $0xc8] sm:$0xff]  ;;  %v6571_v58 = vld [vmem:[#allocation77_spill] sm:$0xff] }
 0x50d   :  { %v2345_v4 = vadd.f32 %v2339_v36, %v6570_v62 }
 0x50f   :  { %v3460_v29 = vmul.f32 -1.442695, %v2345_v4  ;;  %v2344_v4 = vadd.f32 %v2326_v46, %v6571_v58 }
 0x510   :  { %v3758_v63 = vpop.eup %3757 }
 0x511   :  { %v3760_v47 = vpop.eup %3759  ;;  %v2349_v44 = vadd.f32 1.0, %v3758_v63  ;;  %3761 = vpow2.f32 %v3460_v29  ;;  %v3465_v29 = vld [vmem:[%s5979_s0 + $0xd8] sm:$0xff] }
 0x512   :  { %v5728_v39 = vadd.f32 1.0, %v3760_v47  ;;  %v2327_v2 = vpop.f32.mrf.mxu2  ;;  %v2340_v9 = vpop.f32.mrf.mxu3 }
 0x513   :  { %3763 = vrcp.f32 %v2349_v44  ;;  %v2359_v46 = vand.u32 2147483647, %v2349_v44  ;;  %vm2355_vm6 = vweird.f32 %v2349_v44 }
 0x514   :  { %3765 = vrcp.f32 %v5728_v39  ;;  %v2425_v36 = vpop.f32.mrf.mxu0  ;;  %v2438_v56 = vpop.f32.mrf.mxu1  ;;  %vm2374_vm7 = vweird.f32 %v5728_v39 }
 0x515   :  { %v2468_v63 = vadd.f32 %v3462_v0, %v2425_v36  ;;  %v2469_v14 = vadd.f32 %v3463_v18, %v2438_v56  ;;  %vm2360_vm9 = vcmp.eq.f32.partialorder %v2359_v46, 8.507059e+37 }
 0x517   :  { %v3762_v47 = vpop.eup %3761  ;;  %v3466_v20 = vmul.f32 -1.442695, %v2468_v63  ;;  %v3467_v6 = vmul.f32 -1.442695, %v2469_v14 }
 0x518   :  { %v5737_v19 = vadd.f32 1.0, %v3762_v47  ;;  %v2361_v47 = vand.u32 2147483648, %v2349_v44 }
 0x519   :  { %v3764_v51 = vpop.eup %3763  ;;  %3767 = vpow2.f32 %v3466_v20  ;;  %v2380_v20 = vand.u32 2147483648, %v5728_v39 }
 0x51a   :  { %v3766_v2 = vpop.eup %3765  ;;  %v2351_v9 = vmul.f32 %v3764_v51, %v2349_v44  ;;  %3769 = vrcp.f32 %v5737_v19  ;;  %vm2356_vm4 = vweird.f32 %v3764_v51  ;;  %vm2394_vm13 = vweird.f32 %v5737_v19 }
 0x51b   :  { %v2370_v59 = vmul.f32 %v3766_v2, %v5728_v39  ;;  %3771 = vpow2.f32 %v3467_v6  ;;  %vm2375_vm5 = vweird.f32 %v3766_v2  ;;  %v2378_v6 = vand.u32 2147483647, %v5728_v39  ;;  %vm2357_vm8 = vmor %vm2355_vm6, %vm2356_vm4 }
 0x51c   :  { %v2451_v22 = vpop.f32.mrf.mxu2  ;;  %v2464_v0 = vpop.f32.mrf.mxu3  ;;  %v2352_v18 = vsub.f32 1.0, %v2351_v9  ;;  %3773 = vtanh.f32 %v2344_v4  ;;  %vm2376_vm10 = vmor %vm2374_vm7, %vm2375_vm5  ;;  %v2381_v44 = vor.u32 1.1754944e-38, %v2380_v20 }
 0x51d   :  { %v2471_v36 = vadd.f32 %v3465_v29, %v2464_v0  ;;  %v2427_v56 = vpop.f32.mrf.mxu0  ;;  %v2440_v63 = vpop.f32.mrf.mxu1  ;;  %v2371_v14 = vsub.f32 1.0, %v2370_v59  ;;  %v2362_v59 = vor.u32 1.1754944e-38, %v2361_v47  ;;  %vm2379_vm11 = vcmp.eq.f32.partialorder %v2378_v6, 8.507059e+37 }
 0x51e   :  { %v2353_v58 = vmul.f32 %v3764_v51, %v2352_v18 }
 0x51f   :  { %v3468_v62 = vmul.f32 -1.442695, %v2471_v36  ;;  %v3768_v38 = vpop.eup %3767  ;;  %v2372_v23 = vmul.f32 %v3766_v2, %v2371_v14 }
 0x520   :  { %v5747_v37 = vpop.eup %3769  ;;  %v2354_v29 = vadd.f32 %v3764_v51, %v2353_v58  ;;  %v5750_v9 = vadd.f32 1.0, %v3768_v38 }
 0x521   :  { %3775 = vpow2.f32 %v3468_v62  ;;  %v3772_v4 = vpop.eup %3771  ;;  %v2373_v0 = vadd.f32 %v3766_v2, %v2372_v23  ;;  %v2390_v18 = vmul.f32 %v5747_v37, %v5737_v19  ;;  %vm2395_vm12 = vweird.f32 %v5747_v37 }
 0x522   :  { %v2358_v36 = vsel %vm2357_vm8, %v3764_v51, %v2354_v29  ;;  %3777 = vrcp.f32 %v5750_v9  ;;  %v5755_v56 = vadd.f32 1.0, %v3772_v4  ;;  %v3774_v39 = vpop.eup %3773  ;;  %v3464_v51 = vld [vmem:[%s5979_s0 + $0xd0] sm:$0xff]  ;;  %vm5775_vm14 = vmor %vm2394_vm13, %vm2395_vm12  ;;  %vm2481_vm0 = vweird.f32 %v5750_v9 }
 0x523   :  { %v2363_v58 = vsel %vm2360_vm9, %v2362_v59, %v2358_v36  ;;  %v2377_v38 = vsel %vm2376_vm10, %v3766_v2, %v2373_v0  ;;  %v2391_v62 = vsub.f32 1.0, %v2390_v18  ;;  %v2400_v59 = vand.u32 2147483648, %v5737_v19 }
 0x524   :  { %v2453_v63 = vpop.f32.mrf.mxu2  ;;  %v2466_v14 = vpop.f32.mrf.mxu3  ;;  %v2382_v46 = vsel %vm2379_vm11, %v2381_v44, %v2377_v38  ;;  %v2405_v47 = vmul.f32 %v3774_v39, %v2363_v58  ;;  %3779 = vrcp.f32 %v5755_v56  ;;  %v2470_v0 = vadd.f32 %v3464_v51, %v2451_v22 }
 0x525   :  { %v2404_v23 = vmul.f32 %v2382_v46, %v5592_v5  ;;  %v2392_v20 = vmul.f32 %v5747_v37, %v2391_v62  ;;  %v2398_v36 = vand.u32 2147483647, %v5737_v19  ;;  %v2401_v38 = vor.u32 1.1754944e-38, %v2400_v59 }
 0x526   :  { %v2487_v62 = vand.u32 2147483648, %v5750_v9  ;;  %v2485_v19 = vand.u32 2147483647, %v5750_v9  ;;  %vm2500_vm3 = vweird.f32 %v5755_v56 }
 0x527   :  { %v3776_v29 = vpop.eup %3775  ;;  %v5763_v4 = vadd.f32 %v2405_v47, %v2404_v23  ;;  %v2393_v18 = vadd.f32 %v5747_v37, %v2392_v20  ;;  %v2506_v47 = vand.u32 2147483648, %v5755_v56  ;;  %v2504_v23 = vand.u32 2147483647, %v5755_v56 }
 0x528   :  { %v5765_v2 = vadd.f32 1.0, %v3776_v29  ;;  %v3778_v6 = vpop.eup %3777  ;;  %vm2399_vm1 = vcmp.eq.f32.partialorder %v2398_v36, 8.507059e+37  ;;  %vm2486_vm5 = vcmp.eq.f32.partialorder %v2485_v19, 8.507059e+37 }
 0x529   :  { %3781 = vtanh.f32 %v5763_v4  ;;  %v2477_v5 = vmul.f32 %v3778_v6, %v5750_v9  ;;  %v2397_v63 = vsel %vm5775_vm14, %v5747_v37, %v2393_v18  ;;  %vm2482_vm15 = vweird.f32 %v3778_v6 }
 0x52a   :  { %v3780_v44 = vpop.eup %3779  ;;  %3783 = vrcp.f32 %v5765_v2  ;;  %v2402_v59 = vsel %vm2399_vm1, %v2401_v38, %v2397_v63  ;;  %vm2483_vm4 = vmor %vm2481_vm0, %vm2482_vm15  ;;  %v2488_v37 = vor.u32 1.1754944e-38, %v2487_v62  ;;  %vm2505_vm7 = vcmp.eq.f32.partialorder %v2504_v23, 8.507059e+37  ;;  %v6606_v23 = vld [vmem:[#allocation47_spill] sm:$0xff] }
 0x52b   :  { %v2478_v58 = vsub.f32 1.0, %v2477_v5  ;;  %v2496_v22 = vmul.f32 %v3780_v44, %v5755_v56  ;;  %3785 = vtanh.f32 %v2470_v0  ;;  %vm2501_vm2 = vweird.f32 %v3780_v44 }
 0x52c   :  { %vm2502_vm6 = vmor %vm2500_vm3, %vm2501_vm2  ;;  %vm2520_vm9 = vweird.f32 %v5765_v2 }
 0x52d   :  { %v2497_v14 = vsub.f32 1.0, %v2496_v22  ;;  %v2479_v46 = vmul.f32 %v3778_v6, %v2478_v58  ;;  %v2507_v22 = vor.u32 1.1754944e-38, %v2506_v47  ;;  %v2526_v47 = vand.u32 2147483648, %v5765_v2 }
 0x52f   :  { %v3782_v20 = vpop.eup %3781  ;;  %v2498_v51 = vmul.f32 %v3780_v44, %v2497_v14  ;;  %v2480_v29 = vadd.f32 %v3778_v6, %v2479_v46 }
 0x530   :  { %v3784_v0 = vpop.eup %3783  ;;  %v2408_v18 = vmul.f32 %v3782_v20, %v2402_v59  ;;  %v6607_v20 = vld [vmem:[#allocation48_spill] sm:$0xff]  ;;  %v6610_v59 = vld [vmem:[#allocation51_spill] sm:$0xff] }
 0x531   :  { %v2484_v5 = vsel %vm2483_vm4, %v3778_v6, %v2480_v29  ;;  %v2499_v39 = vadd.f32 %v3780_v44, %v2498_v51  ;;  %v2516_v58 = vmul.f32 %v3784_v0, %v5765_v2  ;;  %v3786_v9 = vpop.eup %3785  ;;  %vm2521_vm8 = vweird.f32 %v3784_v0  ;;  %v6608_v51 = vld [vmem:[#allocation49_spill] sm:$0xff]  ;;  %v6609_v29 = vld [vmem:[#allocation50_spill] sm:$0xff] }
 0x532   :  { %v2489_v36 = vsel %vm2486_vm5, %v2488_v37, %v2484_v5  ;;  %3461 = vst [vmem:[%s5981_s5 + $0x28] sm:$0xff] %v2408_v18  ;;  %v2536_v38 = vpack.c.bf16 %v2408_v18, %v2408_v18  ;;  %vm2522_vm10 = vmor %vm2520_vm9, %vm2521_vm8  ;;  %v6612_v37 = vld [vmem:[#allocation53_spill] sm:$0xff]  ;;  %v6613_v18 = vld [vmem:[#allocation54_spill] sm:$0xff] }
 0x533   :  { %v2503_v63 = vsel %vm2502_vm6, %v3780_v44, %v2499_v39  ;;  %v2531_v56 = vmul.f32 %v3786_v9, %v2489_v36  ;;  %v2517_v14 = vsub.f32 1.0, %v2516_v58  ;;  %v6614_v5 = vld [vmem:[#allocation55_spill] sm:$0xff]  ;;  %v6615_v39 = vld [vmem:[#allocation56_spill] sm:$0xff]  ;;  %v6616_v58 = vld [vmem:[#allocation57_spill] sm:$0xff] }
 0x534   :  { %v2508_v62 = vsel %vm2505_vm7, %v2507_v22, %v2503_v63  ;;  %2545 = vmatmul.bf16.vlgmr.msrb.gmra.mxu0 %v2536_v38  ;;  %2558 = vmatmul.bf16.vlgmr.msrb.gmra.mxu1 %v2536_v38  ;;  %v6617_v9 = vld [vmem:[#allocation58_spill] sm:$0xff]  ;;  %v6618_v22 = vld [vmem:[#allocation59_spill] sm:$0xff]  ;;  %v6619_v36 = vld [vmem:[#allocation60_spill] sm:$0xff] }
 0x535   :  { %v2530_v6 = vmul.f32 %v2508_v62, %v5625_v50  ;;  %v2518_v46 = vmul.f32 %v3784_v0, %v2517_v14  ;;  %2571 = vmatmul.bf16.vlgmr.msrb.gmra.mxu2 %v2536_v38  ;;  %2584 = vmatmul.bf16.vlgmr.msrb.gmra.mxu3 %v2536_v38  ;;  %v2524_v50 = vand.u32 2147483647, %v5765_v2  ;;  %v6605_v2 = vld [vmem:[#allocation46_spill] sm:$0xff]  ;;  %v6620_v38 = vld [vmem:[#allocation61_spill] sm:$0xff]  ;;  %v6623_v14 = vld [vmem:[#allocation64_spill] sm:$0xff] }
 0x536   :  { %2715 = vmatpush.bf16.msrb.mxu0 %v3877_v3  ;;  %2728 = vmatpush.bf16.msrb.mxu1 %v3888_v7  ;;  %v2527_v7 = vor.u32 1.1754944e-38, %v2526_v47  ;;  %v6621_v63 = vld [vmem:[#allocation62_spill] sm:$0xff]  ;;  %v6624_v62 = vld [vmem:[#allocation65_spill] sm:$0xff] }
 0x537   :  { %v5796_v19 = vadd.f32 %v2531_v56, %v2530_v6  ;;  %2741 = vmatpush.bf16.msrb.mxu2 %v3928_v21  ;;  %2754 = vmatpush.bf16.msrb.mxu3 %v3890_v8  ;;  %v2519_v44 = vadd.f32 %v3784_v0, %v2518_v46  ;;  %vm2525_vm11 = vcmp.eq.f32.partialorder %v2524_v50, 8.507059e+37  ;;  %v6622_v56 = vld [vmem:[#allocation63_spill] sm:$0xff]  ;;  %v6625_v6 = vld [vmem:[#allocation66_spill] sm:$0xff]  ;;  %v6628_v47 = vld [vmem:[#allocation69_spill] sm:$0xff] }
 0x538   :  { %v6626_v46 = vld [vmem:[#allocation67_spill] sm:$0xff]  ;;  %v6629_v50 = vld [vmem:[#allocation70_spill] sm:$0xff] }
 0x539   :  { %3787 = vtanh.f32 %v5796_v19  ;;  %v2523_v3 = vsel %vm2522_vm10, %v3784_v0, %v2519_v44  ;;  %v6611_v0 = vld [vmem:[#allocation52_spill] sm:$0xff] }
 0x53a   :  { %2716 = vmatpush.bf16.msrb.mxu0 %v3902_v12  ;;  %2729 = vmatpush.bf16.msrb.mxu1 %v3915_v16  ;;  %v2528_v21 = vsel %vm2525_vm11, %v2527_v7, %v2523_v3  ;;  %v6627_v44 = vld [vmem:[#allocation68_spill] sm:$0xff]  ;;  %v6630_v3 = vld [vmem:[#allocation71_spill] sm:$0xff] }
 0x53b   :  { %2742 = vmatpush.bf16.msrb.mxu2 %v3967_v34  ;;  %2755 = vmatpush.bf16.msrb.mxu3 %v3917_v17  ;;  %v6574_v17 = vld [vmem:[#allocation15_spill] sm:$0xff]  ;;  %v6631_v7 = vld [vmem:[#allocation72_spill] sm:$0xff] }
 0x53c   :  { %v6578_v34 = vld [vmem:[#allocation19_spill] sm:$0xff] }
 0x53e   :  { %2717 = vmatpush.bf16.msrb.mxu0 %v3950_v28  ;;  %2730 = vmatpush.bf16.msrb.mxu1 %v3963_v32  ;;  %v6575_v28 = vld [vmem:[#allocation17_spill] sm:$0xff]  ;;  %v6576_v32 = vld [vmem:[#allocation16_spill] sm:$0xff] }
 0x53f   :  { %v3788_v8 = vpop.eup %3787  ;;  %2743 = vmatpush.bf16.msrb.mxu2 %v3991_v42  ;;  %2756 = vmatpush.bf16.msrb.mxu3 %v3965_v33  ;;  %v6577_v33 = vld [vmem:[#allocation18_spill] sm:$0xff]  ;;  %v6580_v42 = vld [vmem:[#allocation20_spill] sm:$0xff] }
 0x540   :  { %v2534_v12 = vmul.f32 %v3788_v8, %v2528_v21  ;;  %v6632_v8 = vld [vmem:[#allocation73_spill] sm:$0xff] }
 0x542   :  { %v2535_v16 = vpack.c.bf16 %v2534_v12, %v2534_v12  ;;  %2718 = vmatpush.bf16.msrb.mxu0 %v3989_v41  ;;  %2731 = vmatpush.bf16.msrb.mxu1 %v4001_v45  ;;  %v6579_v41 = vld [vmem:[#allocation21_spill] sm:$0xff]  ;;  %v6581_v45 = vld [vmem:[#allocation22_spill] sm:$0xff] }
 0x543   :  { %2744 = vmatpush.bf16.msrb.mxu2 %v4027_v54  ;;  %2757 = vmatpush.bf16.msrb.mxu3 %v6249_v31  ;;  %v6582_v54 = vld [vmem:[#allocation23_spill] sm:$0xff]  ;;  %v6596_v31 = vld [vmem:[#allocation36_spill] sm:$0xff] }
 0x544   :  { %2597 = vmatmul.bf16.vlgmr.msra.gmra.mxu0 %v2535_v16  ;;  %2610 = vmatmul.bf16.vlgmr.msra.gmra.mxu1 %v2535_v16 }
 0x545   :  { %2623 = vmatmul.bf16.vlgmr.msra.gmra.mxu2 %v2535_v16  ;;  %2636 = vmatmul.bf16.vlgmr.msra.gmra.mxu3 %v2535_v16 }
 0x546   :  { %2719 = vmatpush.bf16.msrb.mxu0 %v6250_v61  ;;  %2732 = vmatpush.bf16.msrb.mxu1 %v6251_v24  ;;  %v6597_v61 = vld [vmem:[#allocation38_spill] sm:$0xff]  ;;  %v6598_v24 = vld [vmem:[#allocation39_spill] sm:$0xff] }
 0x547   :  { %2745 = vmatpush.bf16.msrb.mxu2 %v6252_v53  ;;  %2758 = vmatpush.bf16.msrb.mxu3 %v6253_v27  ;;  %v6599_v53 = vld [vmem:[#allocation42_spill] sm:$0xff]  ;;  %v6600_v27 = vld [vmem:[#allocation43_spill] sm:$0xff] }
 0x54a   :  { %2720 = vmatpush.bf16.msrb.mxu0 %v4061_v1  ;;  %2733 = vmatpush.bf16.msrb.mxu1 %v6254_v57  ;;  %v6583_v1 = vld [vmem:[#allocation25_spill] sm:$0xff]  ;;  %v6601_v57 = vld [vmem:[#allocation40_spill] sm:$0xff] }
 0x54b   :  { %2746 = vmatpush.bf16.msrb.mxu2 %v6255_v35  ;;  %2759 = vmatpush.bf16.msrb.mxu3 %v6256_v15  ;;  %v6602_v35 = vld [vmem:[#allocation41_spill] sm:$0xff]  ;;  %v6603_v15 = vld [vmem:[#allocation44_spill] sm:$0xff] }
 0x54e   :  { %2721 = vmatpush.bf16.msrb.mxu0 %v6257_v30  ;;  %2734 = vmatpush.bf16.msrb.mxu1 %v4112_v25  ;;  %v6584_v25 = vld [vmem:[#allocation24_spill] sm:$0xff]  ;;  %v6604_v30 = vld [vmem:[#allocation45_spill] sm:$0xff] }
 0x54f   :  { %2747 = vmatpush.bf16.msrb.mxu2 %v4147_v43  ;;  %2760 = vmatpush.bf16.msrb.mxu3 %v4114_v26  ;;  %v6585_v26 = vld [vmem:[#allocation26_spill] sm:$0xff]  ;;  %v6587_v43 = vld [vmem:[#allocation29_spill] sm:$0xff] }
 0x552   :  { %2722 = vmatpush.bf16.msrb.mxu0 %v4145_v40  ;;  %2735 = vmatpush.bf16.msrb.mxu1 %v4157_v48  ;;  %v6586_v40 = vld [vmem:[#allocation27_spill] sm:$0xff]  ;;  %v6588_v48 = vld [vmem:[#allocation28_spill] sm:$0xff] }
 0x553   :  { %2748 = vmatpush.bf16.msrb.mxu2 %v4201_v10  ;;  %2761 = vmatpush.bf16.msrb.mxu3 %v4159_v49  ;;  %v6589_v49 = vld [vmem:[#allocation30_spill] sm:$0xff] }
 0x554   :  { %v6593_v10 = vld [vmem:[#allocation34_spill] sm:$0xff] }
 0x555   :  { %2723 = vmatmul.bf16.vlgmr.msrb.gmra.mxu0 %v2535_v16  ;;  %2736 = vmatmul.bf16.vlgmr.msrb.gmra.mxu1 %v2535_v16 }
 0x556   :  { %2836 = vmatpush.bf16.msra.mxu0 %v4167_v52  ;;  %2849 = vmatpush.bf16.msra.mxu1 %v4169_v55  ;;  %v6590_v52 = vld [vmem:[#allocation31_spill] sm:$0xff]  ;;  %v6591_v55 = vld [vmem:[#allocation33_spill] sm:$0xff] }
 0x557   :  { %2749 = vmatmul.bf16.vlgmr.msrb.gmra.mxu2 %v2535_v16  ;;  %2762 = vmatmul.bf16.vlgmr.msrb.gmra.mxu3 %v2535_v16 }
 0x558   :  { %2862 = vmatpush.bf16.msra.mxu2 %v4205_v11  ;;  %2875 = vmatpush.bf16.msra.mxu3 %v4177_v60  ;;  %v6592_v60 = vld [vmem:[#allocation32_spill] sm:$0xff]  ;;  %v6594_v11 = vld [vmem:[#allocation35_spill] sm:$0xff] }
 0x55a   :  { %2837 = vmatpush.bf16.msra.mxu0 %v4207_v13  ;;  %2850 = vmatpush.bf16.msra.mxu1 %v6574_v17  ;;  %v6595_v13 = vld [vmem:[#allocation37_spill] sm:$0xff] }
 0x55c   :  { %2863 = vmatpush.bf16.msra.mxu2 %v6575_v28  ;;  %2876 = vmatpush.bf16.msra.mxu3 %v6576_v32 }
 0x55e   :  { %2838 = vmatpush.bf16.msra.mxu0 %v6577_v33  ;;  %2851 = vmatpush.bf16.msra.mxu1 %v6578_v34 }
 0x560   :  { %2864 = vmatpush.bf16.msra.mxu2 %v6579_v41  ;;  %2877 = vmatpush.bf16.msra.mxu3 %v6580_v42 }
 0x562   :  { %2839 = vmatpush.bf16.msra.mxu0 %v6581_v45  ;;  %2852 = vmatpush.bf16.msra.mxu1 %v6582_v54 }
 0x564   :  { %2865 = vmatpush.bf16.msra.mxu2 %v6583_v1  ;;  %2878 = vmatpush.bf16.msra.mxu3 %v6584_v25  ;;  %v6633_v1 = vld [vmem:[#allocation74_spill] sm:$0xff] }
 0x566   :  { %2840 = vmatpush.bf16.msra.mxu0 %v6585_v26  ;;  %2853 = vmatpush.bf16.msra.mxu1 %v6586_v40  ;;  %v6634_v26 = vld [vmem:[#allocation75_spill] sm:$0xff] }
 0x568   :  { %2866 = vmatpush.bf16.msra.mxu2 %v6587_v43  ;;  %2879 = vmatpush.bf16.msra.mxu3 %v6588_v48 }
 0x56a   :  { %2841 = vmatpush.bf16.msra.mxu0 %v6589_v49  ;;  %2854 = vmatpush.bf16.msra.mxu1 %v6590_v52 }
 0x56c   :  { %2867 = vmatpush.bf16.msra.mxu2 %v6591_v55  ;;  %2880 = vmatpush.bf16.msra.mxu3 %v6592_v60 }
 0x56e   :  { %2842 = vmatpush.bf16.msra.mxu0 %v6593_v10  ;;  %2855 = vmatpush.bf16.msra.mxu1 %v6594_v11  ;;  %v6635_v11 = vld [vmem:[#allocation76_spill] sm:$0xff] }
 0x570   :  { %2868 = vmatpush.bf16.msra.mxu2 %v6595_v13  ;;  %2881 = vmatpush.bf16.msra.mxu3 %v6596_v31 }
 0x572   :  { %2843 = vmatpush.bf16.msra.mxu0 %v6597_v61  ;;  %2856 = vmatpush.bf16.msra.mxu1 %v6598_v24 }
 0x574   :  { %2869 = vmatpush.bf16.msra.mxu2 %v6601_v57  ;;  %2882 = vmatpush.bf16.msra.mxu3 %v6602_v35 }
 0x576   :  { %2888 = vmatpush.bf16.msrb.mxu0 %v6599_v53  ;;  %2901 = vmatpush.bf16.msrb.mxu1 %v6600_v27 }
 0x578   :  { %2914 = vmatpush.bf16.msrb.mxu2 %v6603_v15  ;;  %2927 = vmatpush.bf16.msrb.mxu3 %v6604_v30  ;;  %v3473_v15 = vld [vmem:[%s5979_s0 + $0xe0] sm:$0xff]  ;;  %v3474_v30 = vld [vmem:[%s5979_s0 + $0xe8] sm:$0xff] }
 0x57a   :  { %2889 = vmatpush.bf16.msrb.mxu0 %v6605_v2  ;;  %2902 = vmatpush.bf16.msrb.mxu1 %v6606_v23 }
 0x57c   :  { %2915 = vmatpush.bf16.msrb.mxu2 %v6607_v20  ;;  %2928 = vmatpush.bf16.msrb.mxu3 %v6608_v51 }
 0x57e   :  { %2890 = vmatpush.bf16.msrb.mxu0 %v6609_v29  ;;  %2903 = vmatpush.bf16.msrb.mxu1 %v6610_v59 }
 0x580   :  { %2916 = vmatpush.bf16.msrb.mxu2 %v6611_v0  ;;  %2929 = vmatpush.bf16.msrb.mxu3 %v6612_v37 }
 0x582   :  { %2891 = vmatpush.bf16.msrb.mxu0 %v6613_v18  ;;  %2904 = vmatpush.bf16.msrb.mxu1 %v6614_v5 }
 0x584   :  { %2917 = vmatpush.bf16.msrb.mxu2 %v6615_v39  ;;  %2930 = vmatpush.bf16.msrb.mxu3 %v6616_v58  ;;  %v6636_v39 = vld [vmem:[#allocation77_spill] sm:$0xff] }
 0x586   :  { %2892 = vmatpush.bf16.msrb.mxu0 %v6617_v9  ;;  %2905 = vmatpush.bf16.msrb.mxu1 %v6618_v22  ;;  %v3476_v9 = vld [vmem:[%s5979_s0 + $0xf8] sm:$0xff] }
 0x588   :  { %2918 = vmatpush.bf16.msrb.mxu2 %v6619_v36  ;;  %2931 = vmatpush.bf16.msrb.mxu3 %v6620_v38 }
 0x58a   :  { %2893 = vmatpush.bf16.msrb.mxu0 %v6621_v63  ;;  %2906 = vmatpush.bf16.msrb.mxu1 %v6622_v56 }
 0x58c   :  { %2919 = vmatpush.bf16.msrb.mxu2 %v6623_v14  ;;  %2932 = vmatpush.bf16.msrb.mxu3 %v6624_v62 }
 0x58e   :  { %2894 = vmatpush.bf16.msrb.mxu0 %v6625_v6  ;;  %2907 = vmatpush.bf16.msrb.mxu1 %v6626_v46 }
 0x590   :  { %2920 = vmatpush.bf16.msrb.mxu2 %v6627_v44  ;;  %2933 = vmatpush.bf16.msrb.mxu3 %v6628_v47 }
 0x592   :  { %2895 = vmatpush.bf16.msrb.mxu0 %v6629_v50  ;;  %2908 = vmatpush.bf16.msrb.mxu1 %v6630_v3 }
 0x594   :  { %2921 = vmatpush.bf16.msrb.mxu2 %v6631_v7  ;;  %2934 = vmatpush.bf16.msrb.mxu3 %v6632_v8 }
 0x5b1   :  { %v2546_v21 = vpop.f32.mrf.mxu0  ;;  %v2559_v12 = vpop.f32.mrf.mxu1 }
 0x5b8   :  { %v2572_v16 = vpop.f32.mrf.mxu2  ;;  %v2585_v17 = vpop.f32.mrf.mxu3 }
 0x5b9   :  { %v2548_v28 = vpop.f32.mrf.mxu0  ;;  %v2561_v32 = vpop.f32.mrf.mxu1 }
 0x5c0   :  { %v2574_v33 = vpop.f32.mrf.mxu2  ;;  %v2587_v34 = vpop.f32.mrf.mxu3 }
 0x5c1   :  { %v2598_v41 = vpop.f32.mrf.mxu0  ;;  %v2611_v42 = vpop.f32.mrf.mxu1 }
 0x5c2   :  { %v2599_v45 = vadd.f32 %v2598_v41, %v2546_v21  ;;  %v2612_v54 = vadd.f32 %v2611_v42, %v2559_v12 }
 0x5c4   :  { %v2641_v25 = vadd.f32 %v2599_v45, %v6633_v1  ;;  %v2642_v40 = vadd.f32 %v2612_v54, %v6634_v26 }
 0x5c6   :  { %v3469_v43 = vmul.f32 -1.442695, %v2641_v25  ;;  %v3470_v48 = vmul.f32 -1.442695, %v2642_v40 }
 0x5c8   :  { %3789 = vpow2.f32 %v3469_v43  ;;  %v2624_v49 = vpop.f32.mrf.mxu2  ;;  %v2637_v52 = vpop.f32.mrf.mxu3 }
 0x5c9   :  { %3791 = vpow2.f32 %v3470_v48  ;;  %v2638_v55 = vadd.f32 %v2637_v52, %v2585_v17  ;;  %v2600_v60 = vpop.f32.mrf.mxu0  ;;  %v2613_v10 = vpop.f32.mrf.mxu1  ;;  %v2625_v20 = vadd.f32 %v2624_v49, %v2572_v16 }
 0x5cb   :  { %v2644_v13 = vadd.f32 %v2638_v55, %v6635_v11  ;;  %v2643_v58 = vadd.f32 %v2625_v20, %v6636_v39 }
 0x5cd   :  { %v3471_v31 = vmul.f32 -1.442695, %v2644_v13 }
 0x5ce   :  { %v3790_v61 = vpop.eup %3789 }
 0x5cf   :  { %v3792_v24 = vpop.eup %3791  ;;  %v2648_v53 = vadd.f32 1.0, %v3790_v61  ;;  %3793 = vpow2.f32 %v3471_v31  ;;  %v3475_v61 = vld [vmem:[%s5979_s0 + $0xf0] sm:$0xff] }
 0x5d0   :  { %v5899_v27 = vadd.f32 1.0, %v3792_v24  ;;  %v2626_v57 = vpop.f32.mrf.mxu2  ;;  %v2639_v35 = vpop.f32.mrf.mxu3 }
 0x5d1   :  { %3795 = vrcp.f32 %v2648_v53  ;;  %v2658_v47 = vand.u32 2147483647, %v2648_v53  ;;  %v2660_v50 = vand.u32 2147483648, %v2648_v53  ;;  %vm2654_vm14 = vweird.f32 %v2648_v53 }
 0x5d2   :  { %3797 = vrcp.f32 %v5899_v27  ;;  %v2724_v2 = vpop.f32.mrf.mxu0  ;;  %v2737_v23 = vpop.f32.mrf.mxu1  ;;  %v2679_v3 = vand.u32 2147483648, %v5899_v27  ;;  %v2677_v16 = vand.u32 2147483647, %v5899_v27  ;;  %vm2673_vm15 = vweird.f32 %v5899_v27 }
 0x5d3   :  { %v2767_v51 = vadd.f32 %v3473_v15, %v2724_v2  ;;  %v2768_v29 = vadd.f32 %v3474_v30, %v2737_v23  ;;  %vm2659_vm1 = vcmp.eq.f32.partialorder %v2658_v47, 8.507059e+37  ;;  %v2661_v34 = vor.u32 1.1754944e-38, %v2660_v50 }
 0x5d4   :  { %v2680_v45 = vor.u32 1.1754944e-38, %v2679_v3  ;;  %vm2678_vm3 = vcmp.eq.f32.partialorder %v2677_v16, 8.507059e+37 }
 0x5d5   :  { %v3794_v59 = vpop.eup %3793  ;;  %v3477_v0 = vmul.f32 -1.442695, %v2767_v51  ;;  %v3478_v37 = vmul.f32 -1.442695, %v2768_v29 }
 0x5d6   :  { %v5908_v18 = vadd.f32 1.0, %v3794_v59 }
 0x5d7   :  { %v3796_v5 = vpop.eup %3795  ;;  %3799 = vpow2.f32 %v3477_v0 }
 0x5d8   :  { %v3798_v22 = vpop.eup %3797  ;;  %v2650_v36 = vmul.f32 %v3796_v5, %v2648_v53  ;;  %3801 = vrcp.f32 %v5908_v18  ;;  %vm2655_vm12 = vweird.f32 %v3796_v5  ;;  %v2699_v35 = vand.u32 2147483648, %v5908_v18 }
 0x5d9   :  { %v2669_v38 = vmul.f32 %v3798_v22, %v5899_v27  ;;  %3803 = vpow2.f32 %v3478_v37  ;;  %vm2674_vm13 = vweird.f32 %v3798_v22  ;;  %vm2656_vm0 = vmor %vm2654_vm14, %vm2655_vm12  ;;  %vm2693_vm5 = vweird.f32 %v5908_v18 }
 0x5da   :  { %v2750_v63 = vpop.f32.mrf.mxu2  ;;  %v2763_v56 = vpop.f32.mrf.mxu3  ;;  %v2651_v14 = vsub.f32 1.0, %v2650_v36  ;;  %3805 = vtanh.f32 %v2643_v58  ;;  %vm2675_vm2 = vmor %vm2673_vm15, %vm2674_vm13  ;;  %v2697_v23 = vand.u32 2147483647, %v5908_v18  ;;  %v2700_v59 = vor.u32 1.1754944e-38, %v2699_v35 }
 0x5db   :  { %v2770_v62 = vadd.f32 %v3476_v9, %v2763_v56  ;;  %v2726_v6 = vpop.f32.mrf.mxu0  ;;  %v2739_v46 = vpop.f32.mrf.mxu1  ;;  %v2670_v44 = vsub.f32 1.0, %v2669_v38  ;;  %v2769_v15 = vadd.f32 %v3475_v61, %v2750_v63 }
 0x5dc   :  { %v2652_v7 = vmul.f32 %v3796_v5, %v2651_v14  ;;  %vm2698_vm9 = vcmp.eq.f32.partialorder %v2697_v23, 8.507059e+37 }
 0x5dd   :  { %v3479_v8 = vmul.f32 -1.442695, %v2770_v62  ;;  %v3800_v21 = vpop.eup %3799  ;;  %v2671_v12 = vmul.f32 %v3798_v22, %v2670_v44 }
 0x5de   :  { %v5918_v17 = vpop.eup %3801  ;;  %v2653_v28 = vadd.f32 %v3796_v5, %v2652_v7  ;;  %v5921_v32 = vadd.f32 1.0, %v3800_v21 }
 0x5df   :  { %3807 = vpow2.f32 %v3479_v8  ;;  %v3804_v33 = vpop.eup %3803  ;;  %v2672_v41 = vadd.f32 %v3798_v22, %v2671_v12  ;;  %v2689_v42 = vmul.f32 %v5918_v17, %v5908_v18  ;;  %vm2694_vm4 = vweird.f32 %v5918_v17 }
 0x5e0   :  { %v2657_v54 = vsel %vm2656_vm0, %v3796_v5, %v2653_v28  ;;  %3809 = vrcp.f32 %v5921_v32  ;;  %v5926_v25 = vadd.f32 1.0, %v3804_v33  ;;  %v3806_v40 = vpop.eup %3805  ;;  %vm5946_vm6 = vmor %vm2693_vm5, %vm2694_vm4  ;;  %v2786_v0 = vand.u32 2147483648, %v5921_v32 }
 0x5e1   :  { %v2662_v43 = vsel %vm2659_vm1, %v2661_v34, %v2657_v54  ;;  %v2676_v48 = vsel %vm2675_vm2, %v3798_v22, %v2672_v41  ;;  %v2690_v49 = vsub.f32 1.0, %v2689_v42  ;;  %v2784_v18 = vand.u32 2147483647, %v5921_v32 }
 0x5e2   :  { %v2752_v52 = vpop.f32.mrf.mxu2  ;;  %v2765_v55 = vpop.f32.mrf.mxu3  ;;  %v2681_v60 = vsel %vm2678_vm3, %v2680_v45, %v2676_v48  ;;  %v2704_v10 = vmul.f32 %v3806_v40, %v2662_v43  ;;  %3811 = vrcp.f32 %v5926_v25  ;;  %v2805_v9 = vand.u32 2147483648, %v5926_v25 }
 0x5e3   :  { %v2703_v13 = vmul.f32 %v2681_v60, %v5763_v4  ;;  %v2691_v31 = vmul.f32 %v5918_v17, %v2690_v49  ;;  %vm2780_vm8 = vweird.f32 %v5921_v32  ;;  %v2803_v22 = vand.u32 2147483647, %v5926_v25 }
 0x5e4   :  { %vm2799_vm11 = vweird.f32 %v5926_v25  ;;  %v2787_v62 = vor.u32 1.1754944e-38, %v2786_v0  ;;  %vm2785_vm13 = vcmp.eq.f32.partialorder %v2784_v18, 8.507059e+37  ;;  %v2806_v3 = vor.u32 1.1754944e-38, %v2805_v9 }
 0x5e5   :  { %v3808_v24 = vpop.eup %3807  ;;  %v5934_v53 = vadd.f32 %v2704_v10, %v2703_v13  ;;  %v2692_v30 = vadd.f32 %v5918_v17, %v2691_v31  ;;  %vm2804_vm15 = vcmp.eq.f32.partialorder %v2803_v22, 8.507059e+37 }
 0x5e6   :  { %v5936_v27 = vadd.f32 1.0, %v3808_v24  ;;  %v3810_v57 = vpop.eup %3809 }
 0x5e7   :  { %3813 = vtanh.f32 %v5934_v53  ;;  %v2776_v4 = vmul.f32 %v3810_v57, %v5921_v32  ;;  %v2696_v37 = vsel %vm5946_vm6, %v5918_v17, %v2692_v30  ;;  %vm2781_vm7 = vweird.f32 %v3810_v57 }
 0x5e8   :  { %v3812_v2 = vpop.eup %3811  ;;  %3815 = vrcp.f32 %v5936_v27  ;;  %v2701_v56 = vsel %vm2698_vm9, %v2700_v59, %v2696_v37  ;;  %vm2782_vm12 = vmor %vm2780_vm8, %vm2781_vm7  ;;  %v2825_v41 = vand.u32 2147483648, %v5936_v27  ;;  %vm2819_vm1 = vweird.f32 %v5936_v27 }
 0x5e9   :  { %v2777_v51 = vsub.f32 1.0, %v2776_v4  ;;  %v2795_v29 = vmul.f32 %v3812_v2, %v5926_v25  ;;  %3817 = vtanh.f32 %v2769_v15  ;;  %vm2800_vm10 = vweird.f32 %v3812_v2 }
 0x5ea   :  { %vm2801_vm14 = vmor %vm2799_vm11, %vm2800_vm10  ;;  %v2823_v42 = vand.u32 2147483647, %v5936_v27  ;;  %v2826_v54 = vor.u32 1.1754944e-38, %v2825_v41 }
 0x5eb   :  { %v2796_v5 = vsub.f32 1.0, %v2795_v29  ;;  %v2778_v58 = vmul.f32 %v3810_v57, %v2777_v51 }
 0x5ec   :  { %vm2824_vm3 = vcmp.eq.f32.partialorder %v2823_v42, 8.507059e+37 }
 0x5ed   :  { %v3814_v36 = vpop.eup %3813  ;;  %v2797_v38 = vmul.f32 %v3812_v2, %v2796_v5  ;;  %v2779_v63 = vadd.f32 %v3810_v57, %v2778_v58 }
 0x5ee   :  { %v3816_v14 = vpop.eup %3815  ;;  %v2707_v6 = vmul.f32 %v3814_v36, %v2701_v56 }
 0x5ef   :  { %v2783_v46 = vsel %vm2782_vm12, %v3810_v57, %v2779_v63  ;;  %v2798_v44 = vadd.f32 %v3812_v2, %v2797_v38  ;;  %v2815_v47 = vmul.f32 %v3816_v14, %v5936_v27  ;;  %v3818_v50 = vpop.eup %3817  ;;  %vm2820_vm0 = vweird.f32 %v3816_v14 }
 0x5f0   :  { %v2788_v7 = vsel %vm2785_vm13, %v2787_v62, %v2783_v46  ;;  %3472 = vst [vmem:[%s5981_s5 + $0x30] sm:$0xff] %v2707_v6  ;;  %v2835_v8 = vpack.c.bf16 %v2707_v6, %v2707_v6  ;;  %vm2821_vm2 = vmor %vm2819_vm1, %vm2820_vm0 }
 0x5f1   :  { %v2802_v21 = vsel %vm2801_vm14, %v3812_v2, %v2798_v44  ;;  %v2830_v12 = vmul.f32 %v3818_v50, %v2788_v7  ;;  %v2816_v16 = vsub.f32 1.0, %v2815_v47 }
 0x5f2   :  { %v2807_v17 = vsel %vm2804_vm15, %v2806_v3, %v2802_v21  ;;  %2844 = vmatmul.bf16.vlgmr.msra.gmra.mxu0 %v2835_v8  ;;  %2857 = vmatmul.bf16.vlgmr.msra.gmra.mxu1 %v2835_v8 }
 0x5f3   :  { %v2829_v28 = vmul.f32 %v2807_v17, %v5796_v19  ;;  %v2817_v32 = vmul.f32 %v3816_v14, %v2816_v16  ;;  %2870 = vmatmul.bf16.vlgmr.msra.gmra.mxu2 %v2835_v8  ;;  %2883 = vmatmul.bf16.vlgmr.msra.gmra.mxu3 %v2835_v8 }
 0x5f5   :  { %v2831_v33 = vadd.f32 %v2830_v12, %v2829_v28  ;;  %v2818_v34 = vadd.f32 %v3816_v14, %v2817_v32 }
 0x5f7   :  { %3819 = vtanh.f32 %v2831_v33  ;;  %v2822_v45 = vsel %vm2821_vm2, %v3816_v14, %v2818_v34 }
 0x5f8   :  { %v2827_v40 = vsel %vm2824_vm3, %v2826_v54, %v2822_v45 }
 0x5fd   :  { %v3820_v25 = vpop.eup %3819 }
 0x5fe   :  { %v2833_v19 = vmul.f32 %v3820_v25, %v2827_v40 }
 0x600   :  { %v2834_v43 = vpack.c.bf16 %v2833_v19, %v2833_v19 }
 0x602   :  { %2896 = vmatmul.bf16.vlgmr.msrb.gmra.mxu0 %v2834_v43  ;;  %2909 = vmatmul.bf16.vlgmr.msrb.gmra.mxu1 %v2834_v43 }
 0x603   :  { %2922 = vmatmul.bf16.vlgmr.msrb.gmra.mxu2 %v2834_v43  ;;  %2935 = vmatmul.bf16.vlgmr.msrb.gmra.mxu3 %v2834_v43 }
 0x66f   :  { %v2845_v48 = vpop.f32.mrf.mxu0  ;;  %v2858_v49 = vpop.f32.mrf.mxu1 }
 0x676   :  { %v2871_v52 = vpop.f32.mrf.mxu2  ;;  %v2884_v55 = vpop.f32.mrf.mxu3 }
 0x677   :  { %v2847_v60 = vpop.f32.mrf.mxu0  ;;  %v2860_v10 = vpop.f32.mrf.mxu1 }
 0x67e   :  { %v2873_v13 = vpop.f32.mrf.mxu2  ;;  %v2886_v31 = vpop.f32.mrf.mxu3 }
 0x67f   :  { %v2897_v61 = vpop.f32.mrf.mxu0  ;;  %v2910_v24 = vpop.f32.mrf.mxu1 }
 0x680   :  { %v2898_v27 = vadd.f32 %v2897_v61, %v2845_v48  ;;  %v2911_v57 = vadd.f32 %v2910_v24, %v2858_v49 }
 0x682   :  { %v2940_v35 = vadd.f32 %v2898_v27, %v6633_v1  ;;  %v2941_v15 = vadd.f32 %v2911_v57, %v6634_v26 }
 0x684   :  { %v3480_v30 = vmul.f32 -1.442695, %v2940_v35  ;;  %v3481_v4 = vmul.f32 -1.442695, %v2941_v15 }
 0x686   :  { %3821 = vpow2.f32 %v3480_v30  ;;  %v2923_v2 = vpop.f32.mrf.mxu2  ;;  %v2936_v23 = vpop.f32.mrf.mxu3 }
 0x687   :  { %3823 = vpow2.f32 %v3481_v4  ;;  %v2937_v20 = vadd.f32 %v2936_v23, %v2884_v55  ;;  %v2899_v51 = vpop.f32.mrf.mxu0  ;;  %v2912_v29 = vpop.f32.mrf.mxu1  ;;  %v2924_v26 = vadd.f32 %v2923_v2, %v2871_v52 }
 0x689   :  { %v2943_v59 = vadd.f32 %v2937_v20, %v6635_v11  ;;  %v2942_v63 = vadd.f32 %v2924_v26, %v6636_v39 }
 0x68b   :  { %v3482_v0 = vmul.f32 -1.442695, %v2943_v59 }
 0x68c   :  { %v3822_v37 = vpop.eup %3821 }
 0x68d   :  { %v3824_v5 = vpop.eup %3823  ;;  %v2947_v58 = vadd.f32 1.0, %v3822_v37  ;;  %3825 = vpow2.f32 %v3482_v0 }
 0x68e   :  { %v2966_v18 = vadd.f32 1.0, %v3824_v5  ;;  %v2925_v1 = vpop.f32.mrf.mxu2  ;;  %v2938_v9 = vpop.f32.mrf.mxu3 }
 0x68f   :  { %3827 = vrcp.f32 %v2947_v58  ;;  %v2959_v46 = vand.u32 2147483648, %v2947_v58  ;;  %v2957_v50 = vand.u32 2147483647, %v2947_v58  ;;  %vm2953_vm6 = vweird.f32 %v2947_v58 }
 0x690   :  { %3829 = vrcp.f32 %v2966_v18  ;;  %v2978_v44 = vand.u32 2147483648, %v2966_v18  ;;  %v2976_v7 = vand.u32 2147483647, %v2966_v18  ;;  %vm2972_vm7 = vweird.f32 %v2966_v18 }
 0x691   :  { %v2960_v39 = vor.u32 1.1754944e-38, %v2959_v46  ;;  %vm2958_vm10 = vcmp.eq.f32.partialorder %v2957_v50, 8.507059e+37 }
 0x692   :  { %v2979_v17 = vor.u32 1.1754944e-38, %v2978_v44  ;;  %vm2977_vm11 = vcmp.eq.f32.partialorder %v2976_v7, 8.507059e+37 }
 0x693   :  { %v3826_v22 = vpop.eup %3825 }
 0x694   :  { %v2986_v36 = vadd.f32 1.0, %v3826_v22 }
 0x695   :  { %v3828_v38 = vpop.eup %3827 }
 0x696   :  { %v3830_v56 = vpop.eup %3829  ;;  %v2949_v14 = vmul.f32 %v3828_v38, %v2947_v58  ;;  %3831 = vrcp.f32 %v2986_v36  ;;  %vm2954_vm4 = vweird.f32 %v3828_v38  ;;  %v2998_v43 = vand.u32 2147483648, %v2986_v36 }
 0x697   :  { %v2968_v11 = vmul.f32 %v3830_v56, %v2966_v18  ;;  %3833 = vtanh.f32 %v2942_v63  ;;  %vm2973_vm5 = vweird.f32 %v3830_v56  ;;  %vm2955_vm8 = vmor %vm2953_vm6, %vm2954_vm4  ;;  %vm2992_vm13 = vweird.f32 %v2986_v36 }
 0x698   :  { %v2950_v62 = vsub.f32 1.0, %v2949_v14  ;;  %vm2974_vm9 = vmor %vm2972_vm7, %vm2973_vm5  ;;  %v2996_v48 = vand.u32 2147483647, %v2986_v36  ;;  %v2999_v52 = vor.u32 1.1754944e-38, %v2998_v43 }
 0x699   :  { %v2969_v6 = vsub.f32 1.0, %v2968_v11 }
 0x69a   :  { %v2951_v47 = vmul.f32 %v3828_v38, %v2950_v62  ;;  %vm2997_vm15 = vcmp.eq.f32.partialorder %v2996_v48, 8.507059e+37 }
 0x69b   :  { %v2970_v3 = vmul.f32 %v3830_v56, %v2969_v6 }
 0x69c   :  { %v3832_v8 = vpop.eup %3831  ;;  %v2952_v21 = vadd.f32 %v3828_v38, %v2951_v47 }
 0x69d   :  { %v2971_v12 = vadd.f32 %v3830_v56, %v2970_v3  ;;  %v2988_v16 = vmul.f32 %v3832_v8, %v2986_v36  ;;  %v3834_v32 = vpop.eup %3833  ;;  %vm2993_vm12 = vweird.f32 %v3832_v8 }
 0x69e   :  { %v2956_v28 = vsel %vm2955_vm8, %v3828_v38, %v2952_v21  ;;  %vm2994_vm14 = vmor %vm2992_vm13, %vm2993_vm12 }
 0x69f   :  { %v2961_v33 = vsel %vm2958_vm10, %v2960_v39, %v2956_v28  ;;  %v2975_v34 = vsel %vm2974_vm9, %v3830_v56, %v2971_v12  ;;  %v2989_v41 = vsub.f32 1.0, %v2988_v16 }
 0x6a0   :  { %v2980_v42 = vsel %vm2977_vm11, %v2979_v17, %v2975_v34  ;;  %v3003_v45 = vmul.f32 %v3834_v32, %v2961_v33 }
 0x6a1   :  { %v3002_v54 = vmul.f32 %v2980_v42, %v5934_v53  ;;  %v2990_v25 = vmul.f32 %v3832_v8, %v2989_v41 }
 0x6a3   :  { %v3004_v40 = vadd.f32 %v3003_v45, %v3002_v54  ;;  %v2991_v19 = vadd.f32 %v3832_v8, %v2990_v25 }
 0x6a5   :  { %3835 = vtanh.f32 %v3004_v40  ;;  %v2995_v49 = vsel %vm2994_vm14, %v3832_v8, %v2991_v19 }
 0x6a6   :  { %v3000_v60 = vsel %vm2997_vm15, %v2999_v52, %v2995_v49 }
 0x6ab   :  { %v3836_v55 = vpop.eup %3835 }
 0x6ac   :  { %v3006_v10 = vmul.f32 %v3836_v55, %v3000_v60 }
 0x6ae   :  { %3483 = vst [vmem:[%s5981_s5 + $0x38] sm:$0xff] %v3006_v10 }

</bundles_post_ra>
